<compile_context>
chip_gen: v5e
topology: v5e:2x2
jax: 0.10.0
libtpu: 0.0.40
codegen_flags: <defaults>
</compile_context>

<pallas_src>
import functools
import math

import jax
import jax.numpy as jnp
from jax import lax
from jax.experimental import pallas as pl
from jax.experimental.pallas import tpu as pltpu

LN_EPS = 1e-5
NEG_INF = -10000000000.0  # matches torch masked_fill value


# ----------------------------- per-generation knobs -----------------------------

def _device_kind():
    try:
        return jax.devices()[0].device_kind.lower()
    except Exception:
        return ""


def _vmem_budget():
    kind = _device_kind()
    if ("v5" in kind) or ("v6" in kind):
        return 100 * 1024 * 1024       # v5e/v6e: 128 MiB physical VMEM
    return 48 * 1024 * 1024            # v7x (64 MiB physical) / unknown: stay conservative


def _transcendental_dtype():
    kind = _device_kind()
    if ("v2" in kind) or ("v3" in kind) or ("v4" in kind) or ("v5" in kind):
        return jnp.float32             # no bf16 EUP/VPU before v6e
    return jnp.bfloat16                # v6e / v7x: bf16 EUP halves exp/tanh cost


_VMEM_LIMIT = _vmem_budget()
_TRANS_DTYPE = _transcendental_dtype()
_WEIGHTS_SINGLE_BUFFER_OK = True       # flipped to False if pl.Buffered(1) is rejected


# ----------------------------- in-kernel helpers -----------------------------

def _layernorm(x, w, b):
    mu = jnp.mean(x, axis=-1, keepdims=True)
    xc = x - mu
    var = jnp.mean(xc * xc, axis=-1, keepdims=True)
    return xc * lax.rsqrt(var + LN_EPS) * w + b


def _gelu_tanh(x, dtype):
    xc = x.astype(dtype)
    c = math.sqrt(2.0 / math.pi)
    return 0.5 * xc * (1.0 + jnp.tanh(c * (xc + 0.044715 * (xc * xc * xc))))


def _pick_tile(n, candidates):
    for c in candidates:
        if c <= n and n % c == 0:
            return c
    return n


# ----------------------------- decoder layer kernel -----------------------------

def decoder_layer_kernel(n_heads, kv_tile,
                         x_ref, bias_ref,
                         ln1_w, ln1_b,
                         wq, bq, wk, bk, wv, bv, wo, bo,
                         ln2_w, ln2_b,
                         w1, b1, w2, b2,
                         out_ref):
    x = x_ref[0].astype(jnp.float32)                  # (S, D) — one batch element per grid step
    S, D = x.shape
    dk = D // n_heads
    scale = 1.0 / math.sqrt(dk)

    # ---- ln_1 ----
    h = _layernorm(x, ln1_w[...], ln1_b[...]).astype(jnp.bfloat16)            # (S, D)

    # ---- fused full-width Q/K/V projections, token-major (no (S,D) transpose) ----
    q = jnp.dot(h, wq[...], preferred_element_type=jnp.float32) + bq[...]     # (S, D) f32
    k = jnp.dot(h, wk[...], preferred_element_type=jnp.float32) + bk[...]
    v = jnp.dot(h, wv[...], preferred_element_type=jnp.float32) + bv[...]
    q = q * scale        # fold 1/sqrt(dk) on the O(S*D) side, not on the O(S^2) scores

    def split_heads(z):  # (S, D) -> (H, S, dk)
        return jnp.swapaxes(z.reshape(S, n_heads, dk), 0, 1)

    qh = split_heads(q).astype(jnp.bfloat16)
    kh = split_heads(k).astype(jnp.bfloat16)
    vh = split_heads(v).astype(jnp.bfloat16)

    # ---- flash-style attention: online softmax over KV tiles; live scores are (H, S, TK) ----
    m = jnp.full((n_heads, S, 1), -jnp.inf, dtype=jnp.float32)
    l = jnp.zeros((n_heads, S, 1), dtype=jnp.float32)
    acc = jnp.zeros((n_heads, S, dk), dtype=jnp.float32)
    for t in range(S // kv_tile):                       # static trip count (unrolled)
        k0 = t * kv_tile
        kt = kh[:, k0:k0 + kv_tile, :]
        vt = vh[:, k0:k0 + kv_tile, :]
        s = jnp.einsum('hqd,hkd->hqk', qh, kt,
                       preferred_element_type=jnp.float32)                   # (H, S, TK) f32
        s = s + bias_ref[:, k0:k0 + kv_tile][None, :, :]                     # additive mask
        m_new = jnp.maximum(m, jnp.max(s, axis=-1, keepdims=True))
        alpha = jnp.exp(m - m_new)
        p = jnp.exp((s - m_new).astype(_TRANS_DTYPE))                        # bf16 exp on v6e/v7x
        l = alpha * l + jnp.sum(p.astype(jnp.float32), axis=-1, keepdims=True)
        acc = alpha * acc + jnp.einsum('hqk,hkd->hqd', p.astype(jnp.bfloat16), vt,
                                       preferred_element_type=jnp.float32)
        m = m_new
    o = acc * pl.reciprocal(l, approx=False)            # deferred normalization: O(H*S*dk)

    # ---- merge heads + full-width output projection ----
    o = jnp.swapaxes(o, 0, 1).reshape(S, D).astype(jnp.bfloat16)             # (S, D)
    attn = jnp.dot(o, wo[...], preferred_element_type=jnp.float32) + bo[...]

    x = x + attn                                         # residual 1 (dropout = identity, eval)

    # ---- ln_2 + FFN (GELU tanh) ----
    h2 = _layernorm(x, ln2_w[...], ln2_b[...]).astype(jnp.bfloat16)
    f = jnp.dot(h2, w1[...], preferred_element_type=jnp.float32) + b1[...]   # (S, Dh) f32
    f = _gelu_tanh(f, _TRANS_DTYPE).astype(jnp.bfloat16)
    f = jnp.dot(f, w2[...], preferred_element_type=jnp.float32) + b2[...]    # (S, D) f32

    out_ref[0] = (x + f).astype(out_ref.dtype)           # residual 2; bf16 residual stream


def decoder_layer(x, bias, p, n_heads):
    global _WEIGHTS_SINGLE_BUFFER_OK
    B, S, D = x.shape
    d_hidden = p['w1'].shape[-1]
    kv_tile = _pick_tile(S, (256, 512, 128, 64))

    weight_args = (p['ln1_w'], p['ln1_b'],
                   p['wq'], p['bq'], p['wk'], p['bk'], p['wv'], p['bv'], p['wo'], p['bo'],
                   p['ln2_w'], p['ln2_b'],
                   p['w1'], p['b1'], p['w2'], p['b2'])

    flops = int(B) * (8 * S * D * D + 4 * S * S * D + 4 * S * D * d_hidden)
    transcendentals = int(B) * (S * S * n_heads + S * d_hidden + 4 * S)
    bytes_accessed = int(2 * x.nbytes + bias.nbytes + sum(int(w.nbytes) for w in weight_args))

    def build(single_buffer):
        wkw = dict(pipeline_mode=pl.Buffered(1)) if single_buffer else {}
        in_specs = [pl.BlockSpec((1, S, D), lambda b: (b, 0, 0)),            # activations: per batch
                    pl.BlockSpec((S, S), lambda b: (0, 0), **wkw)]          # additive mask: resident
        in_specs += [pl.BlockSpec(w.shape, lambda b: (0, 0), **wkw)         # weights: resident,
                     for w in weight_args]                                   # single-buffered
        return pl.pallas_call(
            functools.partial(decoder_layer_kernel, n_heads, kv_tile),
            out_shape=jax.ShapeDtypeStruct((B, S, D), x.dtype),
            grid=(B,),   # TODO(synk): add a query-tile parallel axis so v7x's 2nd TC stays busy
            in_specs=in_specs,
            out_specs=pl.BlockSpec((1, S, D), lambda b: (b, 0, 0)),
            compiler_params=pltpu.CompilerParams(
                dimension_semantics=("parallel",),
                vmem_limit_bytes=_VMEM_LIMIT),
            cost_estimate=pl.CostEstimate(flops=flops, transcendentals=transcendentals,
                                          bytes_accessed=bytes_accessed),
        )

    if _WEIGHTS_SINGLE_BUFFER_OK:
        try:
            return build(True)(x, bias, *weight_args)
        except Exception:
            _WEIGHTS_SINGLE_BUFFER_OK = False   # pl.Buffered(1) unsupported: fall back once
    return build(False)(x, bias, *weight_args)


# ------------------ fused ln_f + lm_head + shifted cross-entropy kernel ------------------

def head_loss_kernel(v_real,
                     x_ref, lnf_w, lnf_b, w_ref, lab_ref,
                     mo_ref, logits_ref, loss_ref,
                     h_sc, m_sc, l_sc, t_sc):
    j = pl.program_id(1)
    nj = pl.num_programs(1)
    tv = logits_ref.shape[-1]

    @pl.when(j == 0)
    def _init():
        h = _layernorm(x_ref[...].astype(jnp.float32), lnf_w[...], lnf_b[...])   # (TR, D) f32
        mo_ref[...] = h                                  # model_out = ln_f(x)
        h_sc[...] = h.astype(h_sc.dtype)                 # bf16 scratch: cast once per row tile
        m_sc[...] = jnp.full(m_sc.shape, -jnp.inf, jnp.float32)
        l_sc[...] = jnp.zeros(l_sc.shape, jnp.float32)
        t_sc[...] = jnp.zeros(t_sc.shape, jnp.float32)

    # lm_head matmul for this vocab tile (lane-dense block), f32 accumulation
    logits = jnp.dot(h_sc[...], w_ref[...], preferred_element_type=jnp.float32)  # (TR, TV) f32
    logits_ref[...] = logits.astype(logits_ref.dtype)    # bf16 logits out: halves HBM write

    # online log-sum-exp across vocab tiles (padded vocab columns masked out)
    vocab_ids = j * tv + lax.broadcasted_iota(jnp.int32, logits.shape, 1)
    lse_in = jnp.where(vocab_ids < v_real, logits, -1e30)
    m_prev = m_sc[...]
    m_new = jnp.maximum(m_prev, jnp.max(lse_in, axis=-1, keepdims=True))
    l_sc[...] = l_sc[...] * jnp.exp(m_prev - m_new) + \
                jnp.sum(jnp.exp(lse_in - m_new), axis=-1, keepdims=True)
    m_sc[...] = m_new

    # target-logit gather for this vocab tile (label == -1 never matches -> ignored rows)
    lab = lab_ref[...]                                   # (TR, 1) int32
    t_sc[...] = t_sc[...] + jnp.sum(jnp.where(vocab_ids == lab, logits, 0.0),
                                    axis=-1, keepdims=True)

    @pl.when(j == nj - 1)
    def _finalize():
        valid = (lab_ref[...] >= 0).astype(jnp.float32)
        loss_ref[...] = (jnp.log(l_sc[...]) + m_sc[...] - t_sc[...]) * valid


def lm_head_and_loss(x2d, lnf_w, lnf_b, lm_w_t, labels2d, v_real):
    N, D = x2d.shape
    Vp = lm_w_t.shape[-1]                                # already padded to a multiple of 128
    large_vmem = _VMEM_LIMIT >= 96 * 1024 * 1024
    TR = _pick_tile(N, (1024, 512, 256, 128, 64, 32, 16, 8) if large_vmem
                    else (512, 256, 128, 64, 32, 16, 8))
    TV = _pick_tile(Vp, (2048, 1024, 512, 256, 128))
    grid = (N // TR, Vp // TV)

    return pl.pallas_call(
        functools.partial(head_loss_kernel, v_real),
        out_shape=(jax.ShapeDtypeStruct((N, D), jnp.float32),     # model_out (ln_f output)
                   jax.ShapeDtypeStruct((N, Vp), jnp.bfloat16),   # logits (padded vocab, bf16)
                   jax.ShapeDtypeStruct((N, 1), jnp.float32)),    # per-row CE (0 for invalid rows)
        grid=grid,
        in_specs=[pl.BlockSpec((TR, D), lambda i, j: (i, 0)),
                  pl.BlockSpec((1, D), lambda i, j: (0, 0)),
                  pl.BlockSpec((1, D), lambda i, j: (0, 0)),
                  pl.BlockSpec((D, TV), lambda i, j: (0, j)),
                  pl.BlockSpec((TR, 1), lambda i, j: (i, 0))],
        out_specs=(pl.BlockSpec((TR, D), lambda i, j: (i, 0)),
                   pl.BlockSpec((TR, TV), lambda i, j: (i, j)),
                   pl.BlockSpec((TR, 1), lambda i, j: (i, 0))),
        scratch_shapes=[pltpu.VMEM((TR, D), jnp.bfloat16),
                        pltpu.VMEM((TR, 1), jnp.float32),
                        pltpu.VMEM((TR, 1), jnp.float32),
                        pltpu.VMEM((TR, 1), jnp.float32)],
        compiler_params=pltpu.CompilerParams(
            dimension_semantics=("parallel", "arbitrary"),
            vmem_limit_bytes=_VMEM_LIMIT),
    )(x2d, lnf_w, lnf_b, lm_w_t, labels2d)


# ----------------------------- model glue -----------------------------

def init_params(key, *, n_layers, d_model, n_heads, d_hidden, max_len, vocab_size):
    del n_heads
    keys = iter(jax.random.split(key, 8 + n_layers * 16))

    def nrm(shape, scale=0.02, dtype=jnp.float32):
        return (scale * jax.random.normal(next(keys), shape, jnp.float32)).astype(dtype)

    vocab_padded = ((vocab_size + 127) // 128) * 128
    # lm_head.weight is (V, D) in torch; store its transpose (D, Vp), bf16, vocab zero-padded.
    lm_w = nrm((d_model, vocab_size), dtype=jnp.bfloat16)
    lm_w = jnp.pad(lm_w, ((0, 0), (0, vocab_padded - vocab_size)))

    params = {
        'vocab_size': vocab_size,
        'wte': nrm((vocab_size, d_model)),
        'wpe': nrm((max_len, d_model)),
        'lnf_w': 1.0 + nrm((1, d_model), 0.01),
        'lnf_b': nrm((1, d_model), 0.01),
        'lm_w_t': lm_w,
        'layers': [],
    }
    for _ in range(n_layers):
        layer = {
            'ln1_w': 1.0 + nrm((1, d_model), 0.01), 'ln1_b': nrm((1, d_model), 0.01),
            'ln2_w': 1.0 + nrm((1, d_model), 0.01), 'ln2_b': nrm((1, d_model), 0.01),
            # projections stored (in_features, out_features) -> y = x @ W + b
            # (i.e. the transpose of the torch nn.Linear .weight layout).
            'wq': nrm((d_model, d_model), dtype=jnp.bfloat16),
            'wk': nrm((d_model, d_model), dtype=jnp.bfloat16),
            'wv': nrm((d_model, d_model), dtype=jnp.bfloat16),
            'wo': nrm((d_model, d_model), dtype=jnp.bfloat16),
            'bq': nrm((1, d_model)), 'bk': nrm((1, d_model)),
            'bv': nrm((1, d_model)), 'bo': nrm((1, d_model)),
            'w1': nrm((d_model, d_hidden), dtype=jnp.bfloat16), 'b1': nrm((1, d_hidden)),
            'w2': nrm((d_hidden, d_model), dtype=jnp.bfloat16), 'b2': nrm((1, d_model)),
        }
        params['layers'].append(layer)
    return params


def gpt2_lm_forward(params, input_ids, labels, mask, *, n_heads):
    """Mirrors GPT2_LM.forward(input_ids, labels, mask) -> (model_out, (loss, logits))."""
    B, S = input_ids.shape
    D = params['wte'].shape[-1]
    V = params['vocab_size']

    # Embedding (glue): token gather + positional embedding; residual stream carried in bf16.
    x = (params['wte'][input_ids] + params['wpe'][:S]).astype(jnp.bfloat16)      # (B, S, D)

    # Additive mask built once (mask == 0 -> -1e10, else 0), matching masked_fill semantics.
    bias = jnp.where(mask == 0, NEG_INF, 0.0).astype(jnp.float32)                # (S, S)

    for layer_p in params['layers']:
        x = decoder_layer(x, bias, layer_p, n_heads)

    # NOTE: faithfully reproduces the reference, which builds the shift targets from input_ids.
    ids = input_ids.astype(jnp.int32)
    shift = jnp.concatenate([ids[:, 1:], jnp.full((B, 1), -1, jnp.int32)], axis=1)  # -1 = ignore
    x2d = x.reshape(B * S, D)
    labels2d = shift.reshape(B * S, 1)

    mo2d, logits2d, per_row = lm_head_and_loss(
        x2d, params['lnf_w'], params['lnf_b'], params['lm_w_t'], labels2d, V)

    model_out = mo2d.reshape(B, S, D)
    logits = logits2d[:, :V].reshape(B, S, V)

    loss = None
    if labels is not None:
        n_valid = jnp.maximum(jnp.sum((shift >= 0).astype(jnp.float32)), 1.0)
        loss = jnp.sum(per_row) / n_valid

    return model_out, (loss, logits)


# ----------------------------- main -----------------------------

if __name__ == "__main__":
    # Small, forward-consistent config (vocab a multiple of 128 -> 3 vocab tiles in the head).
    N_LAYERS = 2
    D_MODEL = 32
    N_HEADS = 4
    D_HIDDEN = 128
    MAX_LEN = 16
    VOCAB = 384
    B, S = 2, 8

    key = jax.random.PRNGKey(0)
    k_param, k_ids = jax.random.split(key)

    params = init_params(k_param, n_layers=N_LAYERS, d_model=D_MODEL, n_heads=N_HEADS,
                         d_hidden=D_HIDDEN, max_len=MAX_LEN, vocab_size=VOCAB)

    input_ids = jax.random.randint(k_ids, (B, S), 0, VOCAB, dtype=jnp.int32)
    labels = input_ids                                    # passed through (matches torch code)
    mask = jnp.tril(jnp.ones((S, S), dtype=jnp.float32))  # causal mask, 0 => masked

    model_out, (loss, logits) = gpt2_lm_forward(params, input_ids, labels, mask, n_heads=N_HEADS)

    model_out = jax.block_until_ready(model_out)
    logits = jax.block_until_ready(logits)
    loss = jax.block_until_ready(loss)

    assert model_out.shape == (B, S, D_MODEL)
    assert logits.shape == (B, S, VOCAB)
    assert loss.shape == ()
    assert bool(jnp.isfinite(loss))

    print("KERNEL_OK")
</pallas_src>

<mosaic_0001>
module attributes {stable_mosaic.version = 11 : i64} {
  func.func @decoder_layer_kernel(%arg0: i32, %arg1: memref<1x8x32xbf16, #tpu.memory_space<vmem>>, %arg2: memref<8x8xf32, #tpu.memory_space<vmem>>, %arg3: memref<1x32xf32, #tpu.memory_space<vmem>>, %arg4: memref<1x32xf32, #tpu.memory_space<vmem>>, %arg5: memref<32x32xbf16, #tpu.memory_space<vmem>>, %arg6: memref<1x32xf32, #tpu.memory_space<vmem>>, %arg7: memref<32x32xbf16, #tpu.memory_space<vmem>>, %arg8: memref<1x32xf32, #tpu.memory_space<vmem>>, %arg9: memref<32x32xbf16, #tpu.memory_space<vmem>>, %arg10: memref<1x32xf32, #tpu.memory_space<vmem>>, %arg11: memref<32x32xbf16, #tpu.memory_space<vmem>>, %arg12: memref<1x32xf32, #tpu.memory_space<vmem>>, %arg13: memref<1x32xf32, #tpu.memory_space<vmem>>, %arg14: memref<1x32xf32, #tpu.memory_space<vmem>>, %arg15: memref<32x128xbf16, #tpu.memory_space<vmem>>, %arg16: memref<1x128xf32, #tpu.memory_space<vmem>>, %arg17: memref<128x32xbf16, #tpu.memory_space<vmem>>, %arg18: memref<1x32xf32, #tpu.memory_space<vmem>>, %arg19: memref<1x8x32xbf16, #tpu.memory_space<vmem>>) attributes {dimension_semantics = [#tpu.dimension_semantics<parallel>], iteration_bounds = array<i64: 2>, scalar_prefetch = 0 : i64, scratch_operands = 0 : i64, tpu.core_type = #tpu.core_type<tc>, window_params = [{transform_indices = @transform_0, window_bounds = array<i64: 1, 8, 32>}, {pipeline_mode = #tpu.pipeline_mode<synchronous>, transform_indices = @transform_1, window_bounds = array<i64: 8, 8>}, {pipeline_mode = #tpu.pipeline_mode<synchronous>, transform_indices = @transform_2, window_bounds = array<i64: 1, 32>}, {pipeline_mode = #tpu.pipeline_mode<synchronous>, transform_indices = @transform_3, window_bounds = array<i64: 1, 32>}, {pipeline_mode = #tpu.pipeline_mode<synchronous>, transform_indices = @transform_4, window_bounds = array<i64: 32, 32>}, {pipeline_mode = #tpu.pipeline_mode<synchronous>, transform_indices = @transform_5, window_bounds = array<i64: 1, 32>}, {pipeline_mode = #tpu.pipeline_mode<synchronous>, transform_indices = @transform_6, window_bounds = array<i64: 32, 32>}, {pipeline_mode = #tpu.pipeline_mode<synchronous>, transform_indices = @transform_7, window_bounds = array<i64: 1, 32>}, {pipeline_mode = #tpu.pipeline_mode<synchronous>, transform_indices = @transform_8, window_bounds = array<i64: 32, 32>}, {pipeline_mode = #tpu.pipeline_mode<synchronous>, transform_indices = @transform_9, window_bounds = array<i64: 1, 32>}, {pipeline_mode = #tpu.pipeline_mode<synchronous>, transform_indices = @transform_10, window_bounds = array<i64: 32, 32>}, {pipeline_mode = #tpu.pipeline_mode<synchronous>, transform_indices = @transform_11, window_bounds = array<i64: 1, 32>}, {pipeline_mode = #tpu.pipeline_mode<synchronous>, transform_indices = @transform_12, window_bounds = array<i64: 1, 32>}, {pipeline_mode = #tpu.pipeline_mode<synchronous>, transform_indices = @transform_13, window_bounds = array<i64: 1, 32>}, {pipeline_mode = #tpu.pipeline_mode<synchronous>, transform_indices = @transform_14, window_bounds = array<i64: 32, 128>}, {pipeline_mode = #tpu.pipeline_mode<synchronous>, transform_indices = @transform_15, window_bounds = array<i64: 1, 128>}, {pipeline_mode = #tpu.pipeline_mode<synchronous>, transform_indices = @transform_16, window_bounds = array<i64: 128, 32>}, {pipeline_mode = #tpu.pipeline_mode<synchronous>, transform_indices = @transform_17, window_bounds = array<i64: 1, 32>}, {transform_indices = @transform_18, window_bounds = array<i64: 1, 8, 32>}]} {
    %c0 = arith.constant 0 : index
    %c0_0 = arith.constant 0 : index
    %c0_1 = arith.constant 0 : index
    %0 = vector.load %arg1[%c0, %c0_0, %c0_1] : memref<1x8x32xbf16, #tpu.memory_space<vmem>>, vector<1x8x32xbf16>
    %1 = vector.shape_cast %0 : vector<1x8x32xbf16> to vector<8x32xbf16>
    %2 = arith.extf %1 : vector<8x32xbf16> to vector<8x32xf32>
    %c0_2 = arith.constant 0 : index
    %c0_3 = arith.constant 0 : index
    %3 = vector.load %arg3[%c0_2, %c0_3] : memref<1x32xf32, #tpu.memory_space<vmem>>, vector<1x32xf32>
    %c0_4 = arith.constant 0 : index
    %c0_5 = arith.constant 0 : index
    %4 = vector.load %arg4[%c0_4, %c0_5] : memref<1x32xf32, #tpu.memory_space<vmem>>, vector<1x32xf32>
    %cst = arith.constant dense<0.000000e+00> : vector<8xf32>
    %5 = vector.multi_reduction <add>, %2, %cst [1] : vector<8x32xf32> to vector<8xf32>
    %6 = vector.shape_cast %5 : vector<8xf32> to vector<8x1xf32>
    %cst_6 = arith.constant 3.200000e+01 : f32
    %7 = vector.broadcast %cst_6 : f32 to vector<8x1xf32>
    %8 = arith.divf %6, %7 : vector<8x1xf32>
    %9 = vector.broadcast %8 : vector<8x1xf32> to vector<8x32xf32>
    %10 = arith.subf %2, %9 : vector<8x32xf32>
    %11 = arith.mulf %10, %10 : vector<8x32xf32>
    %cst_7 = arith.constant dense<0.000000e+00> : vector<8xf32>
    %12 = vector.multi_reduction <add>, %11, %cst_7 [1] : vector<8x32xf32> to vector<8xf32>
    %13 = vector.shape_cast %12 : vector<8xf32> to vector<8x1xf32>
    %cst_8 = arith.constant 3.200000e+01 : f32
    %14 = vector.broadcast %cst_8 : f32 to vector<8x1xf32>
    %15 = arith.divf %13, %14 : vector<8x1xf32>
    %cst_9 = arith.constant 9.99999974E-6 : f32
    %16 = vector.broadcast %cst_9 : f32 to vector<8x1xf32>
    %17 = arith.addf %15, %16 : vector<8x1xf32>
    %18 = math.rsqrt %17 : vector<8x1xf32>
    %19 = vector.broadcast %18 : vector<8x1xf32> to vector<8x32xf32>
    %20 = arith.mulf %10, %19 : vector<8x32xf32>
    %21 = vector.broadcast %3 : vector<1x32xf32> to vector<8x32xf32>
    %22 = arith.mulf %20, %21 : vector<8x32xf32>
    %23 = vector.broadcast %4 : vector<1x32xf32> to vector<8x32xf32>
    %24 = arith.addf %22, %23 : vector<8x32xf32>
    %25 = arith.truncf %24 : vector<8x32xf32> to vector<8x32xbf16>
    %c0_10 = arith.constant 0 : index
    %c0_11 = arith.constant 0 : index
    %26 = vector.load %arg5[%c0_10, %c0_11] : memref<32x32xbf16, #tpu.memory_space<vmem>>, vector<32x32xbf16>
    %cst_12 = arith.constant dense<0.000000e+00> : vector<8x32xf32>
    %27 = tpu.matmul %25, %26, %cst_12 {dimension_numbers = #tpu.dot_dimension_numbers<[1], [0], [0], [1], [0, 0, 1, 1], [], []>} : vector<8x32xbf16>, vector<32x32xbf16>, vector<8x32xf32> -> vector<8x32xf32>
    %c0_13 = arith.constant 0 : index
    %c0_14 = arith.constant 0 : index
    %28 = vector.load %arg6[%c0_13, %c0_14] : memref<1x32xf32, #tpu.memory_space<vmem>>, vector<1x32xf32>
    %29 = vector.broadcast %28 : vector<1x32xf32> to vector<8x32xf32>
    %30 = arith.addf %27, %29 : vector<8x32xf32>
    %c0_15 = arith.constant 0 : index
    %c0_16 = arith.constant 0 : index
    %31 = vector.load %arg7[%c0_15, %c0_16] : memref<32x32xbf16, #tpu.memory_space<vmem>>, vector<32x32xbf16>
    %cst_17 = arith.constant dense<0.000000e+00> : vector<8x32xf32>
    %32 = tpu.matmul %25, %31, %cst_17 {dimension_numbers = #tpu.dot_dimension_numbers<[1], [0], [0], [1], [0, 0, 1, 1], [], []>} : vector<8x32xbf16>, vector<32x32xbf16>, vector<8x32xf32> -> vector<8x32xf32>
    %c0_18 = arith.constant 0 : index
    %c0_19 = arith.constant 0 : index
    %33 = vector.load %arg8[%c0_18, %c0_19] : memref<1x32xf32, #tpu.memory_space<vmem>>, vector<1x32xf32>
    %34 = vector.broadcast %33 : vector<1x32xf32> to vector<8x32xf32>
    %35 = arith.addf %32, %34 : vector<8x32xf32>
    %c0_20 = arith.constant 0 : index
    %c0_21 = arith.constant 0 : index
    %36 = vector.load %arg9[%c0_20, %c0_21] : memref<32x32xbf16, #tpu.memory_space<vmem>>, vector<32x32xbf16>
    %cst_22 = arith.constant dense<0.000000e+00> : vector<8x32xf32>
    %37 = tpu.matmul %25, %36, %cst_22 {dimension_numbers = #tpu.dot_dimension_numbers<[1], [0], [0], [1], [0, 0, 1, 1], [], []>} : vector<8x32xbf16>, vector<32x32xbf16>, vector<8x32xf32> -> vector<8x32xf32>
    %c0_23 = arith.constant 0 : index
    %c0_24 = arith.constant 0 : index
    %38 = vector.load %arg10[%c0_23, %c0_24] : memref<1x32xf32, #tpu.memory_space<vmem>>, vector<1x32xf32>
    %39 = vector.broadcast %38 : vector<1x32xf32> to vector<8x32xf32>
    %40 = arith.addf %37, %39 : vector<8x32xf32>
    %cst_25 = arith.constant 0.353553385 : f32
    %41 = vector.broadcast %cst_25 : f32 to vector<8x32xf32>
    %42 = arith.mulf %30, %41 : vector<8x32xf32>
    %43 = vector.shape_cast %42 : vector<8x32xf32> to vector<8x4x8xf32>
    %44 = tpu.transpose %43, [1, 0, 2] : vector<8x4x8xf32> -> vector<4x8x8xf32>
    %45 = arith.truncf %44 : vector<4x8x8xf32> to vector<4x8x8xbf16>
    %46 = vector.shape_cast %35 : vector<8x32xf32> to vector<8x4x8xf32>
    %47 = tpu.transpose %46, [1, 0, 2] : vector<8x4x8xf32> -> vector<4x8x8xf32>
    %48 = arith.truncf %47 : vector<4x8x8xf32> to vector<4x8x8xbf16>
    %49 = vector.shape_cast %40 : vector<8x32xf32> to vector<8x4x8xf32>
    %50 = tpu.transpose %49, [1, 0, 2] : vector<8x4x8xf32> -> vector<4x8x8xf32>
    %51 = arith.truncf %50 : vector<4x8x8xf32> to vector<4x8x8xbf16>
    %cst_26 = arith.constant 0xFF800000 : f32
    %52 = vector.broadcast %cst_26 : f32 to vector<4x8x1xf32>
    %cst_27 = arith.constant 0.000000e+00 : f32
    %53 = vector.broadcast %cst_27 : f32 to vector<4x8x1xf32>
    %cst_28 = arith.constant 0.000000e+00 : f32
    %54 = vector.broadcast %cst_28 : f32 to vector<4x8x8xf32>
    "tpu.trace_start"() <{level = 10 : i32, message = "hqd,hkd->hqk"}> : () -> ()
    %cst_29 = arith.constant dense<0.000000e+00> : vector<4x8x8xf32>
    %55 = tpu.matmul %45, %48, %cst_29 {dimension_numbers = #tpu.dot_dimension_numbers<[2], [2], [1], [1], [0, 0, 0, 1, 1, 1], [0], [0]>} : vector<4x8x8xbf16>, vector<4x8x8xbf16>, vector<4x8x8xf32> -> vector<4x8x8xf32>
    "tpu.trace_stop"() : () -> ()
    %c0_30 = arith.constant 0 : index
    %c0_31 = arith.constant 0 : index
    %56 = vector.load %arg2[%c0_30, %c0_31] : memref<8x8xf32, #tpu.memory_space<vmem>>, vector<8x8xf32>
    %57 = vector.shape_cast %56 : vector<8x8xf32> to vector<1x8x8xf32>
    %58 = vector.broadcast %57 : vector<1x8x8xf32> to vector<4x8x8xf32>
    %59 = arith.addf %55, %58 : vector<4x8x8xf32>
    %cst_32 = arith.constant dense<0xFF800000> : vector<4x8xf32>
    %60 = vector.multi_reduction <maximumf>, %59, %cst_32 [2] : vector<4x8x8xf32> to vector<4x8xf32>
    %61 = vector.shape_cast %60 : vector<4x8xf32> to vector<4x8x1xf32>
    %62 = arith.maximumf %52, %61 : vector<4x8x1xf32>
    %63 = arith.subf %52, %62 : vector<4x8x1xf32>
    %64 = math.exp %63 : vector<4x8x1xf32>
    %65 = vector.broadcast %62 : vector<4x8x1xf32> to vector<4x8x8xf32>
    %66 = arith.subf %59, %65 : vector<4x8x8xf32>
    %67 = arith.truncf %66 : vector<4x8x8xf32> to vector<4x8x8xbf16>
    %68 = math.exp %67 : vector<4x8x8xbf16>
    %69 = arith.mulf %64, %53 : vector<4x8x1xf32>
    %70 = arith.extf %68 : vector<4x8x8xbf16> to vector<4x8x8xf32>
    %cst_33 = arith.constant dense<0.000000e+00> : vector<4x8xf32>
    %71 = vector.multi_reduction <add>, %70, %cst_33 [2] : vector<4x8x8xf32> to vector<4x8xf32>
    %72 = vector.shape_cast %71 : vector<4x8xf32> to vector<4x8x1xf32>
    %73 = arith.addf %69, %72 : vector<4x8x1xf32>
    %74 = vector.broadcast %64 : vector<4x8x1xf32> to vector<4x8x8xf32>
    %75 = arith.mulf %74, %54 : vector<4x8x8xf32>
    "tpu.trace_start"() <{level = 10 : i32, message = "hqk,hkd->hqd"}> : () -> ()
    %cst_34 = arith.constant dense<0.000000e+00> : vector<4x8x8xf32>
    %76 = tpu.matmul %68, %51, %cst_34 {dimension_numbers = #tpu.dot_dimension_numbers<[2], [1], [1], [2], [0, 0, 0, 1, 1, 2], [0], [0]>} : vector<4x8x8xbf16>, vector<4x8x8xbf16>, vector<4x8x8xf32> -> vector<4x8x8xf32>
    "tpu.trace_stop"() : () -> ()
    %77 = arith.addf %75, %76 : vector<4x8x8xf32>
    %78 = tpu.reciprocal %73 : vector<4x8x1xf32> -> vector<4x8x1xf32>
    %79 = vector.broadcast %78 : vector<4x8x1xf32> to vector<4x8x8xf32>
    %80 = arith.mulf %77, %79 : vector<4x8x8xf32>
    %81 = tpu.transpose %80, [1, 0, 2] : vector<4x8x8xf32> -> vector<8x4x8xf32>
    %82 = vector.shape_cast %81 : vector<8x4x8xf32> to vector<8x32xf32>
    %83 = arith.truncf %82 : vector<8x32xf32> to vector<8x32xbf16>
    %c0_35 = arith.constant 0 : index
    %c0_36 = arith.constant 0 : index
    %84 = vector.load %arg11[%c0_35, %c0_36] : memref<32x32xbf16, #tpu.memory_space<vmem>>, vector<32x32xbf16>
    %cst_37 = arith.constant dense<0.000000e+00> : vector<8x32xf32>
    %85 = tpu.matmul %83, %84, %cst_37 {dimension_numbers = #tpu.dot_dimension_numbers<[1], [0], [0], [1], [0, 0, 1, 1], [], []>} : vector<8x32xbf16>, vector<32x32xbf16>, vector<8x32xf32> -> vector<8x32xf32>
    %c0_38 = arith.constant 0 : index
    %c0_39 = arith.constant 0 : index
    %86 = vector.load %arg12[%c0_38, %c0_39] : memref<1x32xf32, #tpu.memory_space<vmem>>, vector<1x32xf32>
    %87 = vector.broadcast %86 : vector<1x32xf32> to vector<8x32xf32>
    %88 = arith.addf %85, %87 : vector<8x32xf32>
    %89 = arith.addf %2, %88 : vector<8x32xf32>
    %c0_40 = arith.constant 0 : index
    %c0_41 = arith.constant 0 : index
    %90 = vector.load %arg13[%c0_40, %c0_41] : memref<1x32xf32, #tpu.memory_space<vmem>>, vector<1x32xf32>
    %c0_42 = arith.constant 0 : index
    %c0_43 = arith.constant 0 : index
    %91 = vector.load %arg14[%c0_42, %c0_43] : memref<1x32xf32, #tpu.memory_space<vmem>>, vector<1x32xf32>
    %cst_44 = arith.constant dense<0.000000e+00> : vector<8xf32>
    %92 = vector.multi_reduction <add>, %89, %cst_44 [1] : vector<8x32xf32> to vector<8xf32>
    %93 = vector.shape_cast %92 : vector<8xf32> to vector<8x1xf32>
    %cst_45 = arith.constant 3.200000e+01 : f32
    %94 = vector.broadcast %cst_45 : f32 to vector<8x1xf32>
    %95 = arith.divf %93, %94 : vector<8x1xf32>
    %96 = vector.broadcast %95 : vector<8x1xf32> to vector<8x32xf32>
    %97 = arith.subf %89, %96 : vector<8x32xf32>
    %98 = arith.mulf %97, %97 : vector<8x32xf32>
    %cst_46 = arith.constant dense<0.000000e+00> : vector<8xf32>
    %99 = vector.multi_reduction <add>, %98, %cst_46 [1] : vector<8x32xf32> to vector<8xf32>
    %100 = vector.shape_cast %99 : vector<8xf32> to vector<8x1xf32>
    %cst_47 = arith.constant 3.200000e+01 : f32
    %101 = vector.broadcast %cst_47 : f32 to vector<8x1xf32>
    %102 = arith.divf %100, %101 : vector<8x1xf32>
    %cst_48 = arith.constant 9.99999974E-6 : f32
    %103 = vector.broadcast %cst_48 : f32 to vector<8x1xf32>
    %104 = arith.addf %102, %103 : vector<8x1xf32>
    %105 = math.rsqrt %104 : vector<8x1xf32>
    %106 = vector.broadcast %105 : vector<8x1xf32> to vector<8x32xf32>
    %107 = arith.mulf %97, %106 : vector<8x32xf32>
    %108 = vector.broadcast %90 : vector<1x32xf32> to vector<8x32xf32>
    %109 = arith.mulf %107, %108 : vector<8x32xf32>
    %110 = vector.broadcast %91 : vector<1x32xf32> to vector<8x32xf32>
    %111 = arith.addf %109, %110 : vector<8x32xf32>
    %112 = arith.truncf %111 : vector<8x32xf32> to vector<8x32xbf16>
    %c0_49 = arith.constant 0 : index
    %c0_50 = arith.constant 0 : index
    %113 = vector.load %arg15[%c0_49, %c0_50] : memref<32x128xbf16, #tpu.memory_space<vmem>>, vector<32x128xbf16>
    %cst_51 = arith.constant dense<0.000000e+00> : vector<8x128xf32>
    %114 = tpu.matmul %112, %113, %cst_51 {dimension_numbers = #tpu.dot_dimension_numbers<[1], [0], [0], [1], [0, 0, 1, 1], [], []>} : vector<8x32xbf16>, vector<32x128xbf16>, vector<8x128xf32> -> vector<8x128xf32>
    %c0_52 = arith.constant 0 : index
    %c0_53 = arith.constant 0 : index
    %115 = vector.load %arg16[%c0_52, %c0_53] : memref<1x128xf32, #tpu.memory_space<vmem>>, vector<1x128xf32>
    %116 = vector.broadcast %115 : vector<1x128xf32> to vector<8x128xf32>
    %117 = arith.addf %114, %116 : vector<8x128xf32>
    %118 = arith.truncf %117 : vector<8x128xf32> to vector<8x128xbf16>
    %cst_54 = arith.constant 5.000000e-01 : bf16
    %119 = vector.broadcast %cst_54 : bf16 to vector<8x128xbf16>
    %120 = arith.mulf %119, %118 : vector<8x128xbf16>
    %121 = arith.mulf %118, %118 : vector<8x128xbf16>
    %122 = arith.mulf %121, %118 : vector<8x128xbf16>
    %cst_55 = arith.constant 4.467770e-02 : bf16
    %123 = vector.broadcast %cst_55 : bf16 to vector<8x128xbf16>
    %124 = arith.mulf %123, %122 : vector<8x128xbf16>
    %125 = arith.addf %118, %124 : vector<8x128xbf16>
    %cst_56 = arith.constant 7.968750e-01 : bf16
    %126 = vector.broadcast %cst_56 : bf16 to vector<8x128xbf16>
    %127 = arith.mulf %126, %125 : vector<8x128xbf16>
    %128 = math.tanh %127 : vector<8x128xbf16>
    %cst_57 = arith.constant 1.000000e+00 : bf16
    %129 = vector.broadcast %cst_57 : bf16 to vector<8x128xbf16>
    %130 = arith.addf %129, %128 : vector<8x128xbf16>
    %131 = arith.mulf %120, %130 : vector<8x128xbf16>
    %c0_58 = arith.constant 0 : index
    %c0_59 = arith.constant 0 : index
    %132 = vector.load %arg17[%c0_58, %c0_59] : memref<128x32xbf16, #tpu.memory_space<vmem>>, vector<128x32xbf16>
    %cst_60 = arith.constant dense<0.000000e+00> : vector<8x32xf32>
    %133 = tpu.matmul %131, %132, %cst_60 {dimension_numbers = #tpu.dot_dimension_numbers<[1], [0], [0], [1], [0, 0, 1, 1], [], []>} : vector<8x128xbf16>, vector<128x32xbf16>, vector<8x32xf32> -> vector<8x32xf32>
    %c0_61 = arith.constant 0 : index
    %c0_62 = arith.constant 0 : index
    %134 = vector.load %arg18[%c0_61, %c0_62] : memref<1x32xf32, #tpu.memory_space<vmem>>, vector<1x32xf32>
    %135 = vector.broadcast %134 : vector<1x32xf32> to vector<8x32xf32>
    %136 = arith.addf %133, %135 : vector<8x32xf32>
    %137 = arith.addf %89, %136 : vector<8x32xf32>
    %138 = arith.truncf %137 : vector<8x32xf32> to vector<8x32xbf16>
    %c0_63 = arith.constant 0 : index
    %c0_64 = arith.constant 0 : index
    %c0_65 = arith.constant 0 : index
    %139 = vector.load %arg19[%c0_63, %c0_64, %c0_65] : memref<1x8x32xbf16, #tpu.memory_space<vmem>>, vector<1x8x32xbf16>
    %140 = vector.shape_cast %139 : vector<1x8x32xbf16> to vector<8x32xbf16>
    %141 = vector.shape_cast %138 : vector<8x32xbf16> to vector<1x8x32xbf16>
    tpu.vector_store %arg19[%c0_63, %c0_64, %c0_65], %141 {strides = array<i32>} : memref<1x8x32xbf16, #tpu.memory_space<vmem>>, vector<1x8x32xbf16>,
    return
  }
  func.func @transform_0(%arg0: i32) -> (i32, i32, i32) {
    %c0_i32 = arith.constant 0 : i32
    %c0_i32_0 = arith.constant 0 : i32
    %c0_i32_1 = arith.constant 0 : i32
    return %arg0, %c0_i32, %c0_i32_0 : i32, i32, i32
  }
  func.func @transform_1(%arg0: i32) -> (i32, i32) {
    %c0_i32 = arith.constant 0 : i32
    %c0_i32_0 = arith.constant 0 : i32
    %c0_i32_1 = arith.constant 0 : i32
    return %c0_i32, %c0_i32_0 : i32, i32
  }
  func.func @transform_2(%arg0: i32) -> (i32, i32) {
    %c0_i32 = arith.constant 0 : i32
    %c0_i32_0 = arith.constant 0 : i32
    %c0_i32_1 = arith.constant 0 : i32
    return %c0_i32, %c0_i32_0 : i32, i32
  }
  func.func @transform_3(%arg0: i32) -> (i32, i32) {
    %c0_i32 = arith.constant 0 : i32
    %c0_i32_0 = arith.constant 0 : i32
    %c0_i32_1 = arith.constant 0 : i32
    return %c0_i32, %c0_i32_0 : i32, i32
  }
  func.func @transform_4(%arg0: i32) -> (i32, i32) {
    %c0_i32 = arith.constant 0 : i32
    %c0_i32_0 = arith.constant 0 : i32
    %c0_i32_1 = arith.constant 0 : i32
    return %c0_i32, %c0_i32_0 : i32, i32
  }
  func.func @transform_5(%arg0: i32) -> (i32, i32) {
    %c0_i32 = arith.constant 0 : i32
    %c0_i32_0 = arith.constant 0 : i32
    %c0_i32_1 = arith.constant 0 : i32
    return %c0_i32, %c0_i32_0 : i32, i32
  }
  func.func @transform_6(%arg0: i32) -> (i32, i32) {
    %c0_i32 = arith.constant 0 : i32
    %c0_i32_0 = arith.constant 0 : i32
    %c0_i32_1 = arith.constant 0 : i32
    return %c0_i32, %c0_i32_0 : i32, i32
  }
  func.func @transform_7(%arg0: i32) -> (i32, i32) {
    %c0_i32 = arith.constant 0 : i32
    %c0_i32_0 = arith.constant 0 : i32
    %c0_i32_1 = arith.constant 0 : i32
    return %c0_i32, %c0_i32_0 : i32, i32
  }
  func.func @transform_8(%arg0: i32) -> (i32, i32) {
    %c0_i32 = arith.constant 0 : i32
    %c0_i32_0 = arith.constant 0 : i32
    %c0_i32_1 = arith.constant 0 : i32
    return %c0_i32, %c0_i32_0 : i32, i32
  }
  func.func @transform_9(%arg0: i32) -> (i32, i32) {
    %c0_i32 = arith.constant 0 : i32
    %c0_i32_0 = arith.constant 0 : i32
    %c0_i32_1 = arith.constant 0 : i32
    return %c0_i32, %c0_i32_0 : i32, i32
  }
  func.func @transform_10(%arg0: i32) -> (i32, i32) {
    %c0_i32 = arith.constant 0 : i32
    %c0_i32_0 = arith.constant 0 : i32
    %c0_i32_1 = arith.constant 0 : i32
    return %c0_i32, %c0_i32_0 : i32, i32
  }
  func.func @transform_11(%arg0: i32) -> (i32, i32) {
    %c0_i32 = arith.constant 0 : i32
    %c0_i32_0 = arith.constant 0 : i32
    %c0_i32_1 = arith.constant 0 : i32
    return %c0_i32, %c0_i32_0 : i32, i32
  }
  func.func @transform_12(%arg0: i32) -> (i32, i32) {
    %c0_i32 = arith.constant 0 : i32
    %c0_i32_0 = arith.constant 0 : i32
    %c0_i32_1 = arith.constant 0 : i32
    return %c0_i32, %c0_i32_0 : i32, i32
  }
  func.func @transform_13(%arg0: i32) -> (i32, i32) {
    %c0_i32 = arith.constant 0 : i32
    %c0_i32_0 = arith.constant 0 : i32
    %c0_i32_1 = arith.constant 0 : i32
    return %c0_i32, %c0_i32_0 : i32, i32
  }
  func.func @transform_14(%arg0: i32) -> (i32, i32) {
    %c0_i32 = arith.constant 0 : i32
    %c0_i32_0 = arith.constant 0 : i32
    %c0_i32_1 = arith.constant 0 : i32
    return %c0_i32, %c0_i32_0 : i32, i32
  }
  func.func @transform_15(%arg0: i32) -> (i32, i32) {
    %c0_i32 = arith.constant 0 : i32
    %c0_i32_0 = arith.constant 0 : i32
    %c0_i32_1 = arith.constant 0 : i32
    return %c0_i32, %c0_i32_0 : i32, i32
  }
  func.func @transform_16(%arg0: i32) -> (i32, i32) {
    %c0_i32 = arith.constant 0 : i32
    %c0_i32_0 = arith.constant 0 : i32
    %c0_i32_1 = arith.constant 0 : i32
    return %c0_i32, %c0_i32_0 : i32, i32
  }
  func.func @transform_17(%arg0: i32) -> (i32, i32) {
    %c0_i32 = arith.constant 0 : i32
    %c0_i32_0 = arith.constant 0 : i32
    %c0_i32_1 = arith.constant 0 : i32
    return %c0_i32, %c0_i32_0 : i32, i32
  }
  func.func @transform_18(%arg0: i32) -> (i32, i32, i32) {
    %c0_i32 = arith.constant 0 : i32
    %c0_i32_0 = arith.constant 0 : i32
    %c0_i32_1 = arith.constant 0 : i32
    return %arg0, %c0_i32, %c0_i32_0 : i32, i32, i32
  }
}

module attributes {stable_mosaic.version = 11 : i64} {
  func.func @decoder_layer_kernel(%arg0: i32, %arg1: memref<1x8x32xbf16, #tpu.memory_space<vmem>>, %arg2: memref<8x8xf32, #tpu.memory_space<vmem>>, %arg3: memref<1x32xf32, #tpu.memory_space<vmem>>, %arg4: memref<1x32xf32, #tpu.memory_space<vmem>>, %arg5: memref<32x32xbf16, #tpu.memory_space<vmem>>, %arg6: memref<1x32xf32, #tpu.memory_space<vmem>>, %arg7: memref<32x32xbf16, #tpu.memory_space<vmem>>, %arg8: memref<1x32xf32, #tpu.memory_space<vmem>>, %arg9: memref<32x32xbf16, #tpu.memory_space<vmem>>, %arg10: memref<1x32xf32, #tpu.memory_space<vmem>>, %arg11: memref<32x32xbf16, #tpu.memory_space<vmem>>, %arg12: memref<1x32xf32, #tpu.memory_space<vmem>>, %arg13: memref<1x32xf32, #tpu.memory_space<vmem>>, %arg14: memref<1x32xf32, #tpu.memory_space<vmem>>, %arg15: memref<32x128xbf16, #tpu.memory_space<vmem>>, %arg16: memref<1x128xf32, #tpu.memory_space<vmem>>, %arg17: memref<128x32xbf16, #tpu.memory_space<vmem>>, %arg18: memref<1x32xf32, #tpu.memory_space<vmem>>, %arg19: memref<1x8x32xbf16, #tpu.memory_space<vmem>>) attributes {dimension_semantics = [#tpu.dimension_semantics<parallel>], iteration_bounds = array<i64: 2>, scalar_prefetch = 0 : i64, scratch_operands = 0 : i64, tpu.core_type = #tpu.core_type<tc>, window_params = [{transform_indices = @transform_0, window_bounds = array<i64: 1, 8, 32>}, {pipeline_mode = #tpu.pipeline_mode<synchronous>, transform_indices = @transform_1, window_bounds = array<i64: 8, 8>}, {pipeline_mode = #tpu.pipeline_mode<synchronous>, transform_indices = @transform_2, window_bounds = array<i64: 1, 32>}, {pipeline_mode = #tpu.pipeline_mode<synchronous>, transform_indices = @transform_3, window_bounds = array<i64: 1, 32>}, {pipeline_mode = #tpu.pipeline_mode<synchronous>, transform_indices = @transform_4, window_bounds = array<i64: 32, 32>}, {pipeline_mode = #tpu.pipeline_mode<synchronous>, transform_indices = @transform_5, window_bounds = array<i64: 1, 32>}, {pipeline_mode = #tpu.pipeline_mode<synchronous>, transform_indices = @transform_6, window_bounds = array<i64: 32, 32>}, {pipeline_mode = #tpu.pipeline_mode<synchronous>, transform_indices = @transform_7, window_bounds = array<i64: 1, 32>}, {pipeline_mode = #tpu.pipeline_mode<synchronous>, transform_indices = @transform_8, window_bounds = array<i64: 32, 32>}, {pipeline_mode = #tpu.pipeline_mode<synchronous>, transform_indices = @transform_9, window_bounds = array<i64: 1, 32>}, {pipeline_mode = #tpu.pipeline_mode<synchronous>, transform_indices = @transform_10, window_bounds = array<i64: 32, 32>}, {pipeline_mode = #tpu.pipeline_mode<synchronous>, transform_indices = @transform_11, window_bounds = array<i64: 1, 32>}, {pipeline_mode = #tpu.pipeline_mode<synchronous>, transform_indices = @transform_12, window_bounds = array<i64: 1, 32>}, {pipeline_mode = #tpu.pipeline_mode<synchronous>, transform_indices = @transform_13, window_bounds = array<i64: 1, 32>}, {pipeline_mode = #tpu.pipeline_mode<synchronous>, transform_indices = @transform_14, window_bounds = array<i64: 32, 128>}, {pipeline_mode = #tpu.pipeline_mode<synchronous>, transform_indices = @transform_15, window_bounds = array<i64: 1, 128>}, {pipeline_mode = #tpu.pipeline_mode<synchronous>, transform_indices = @transform_16, window_bounds = array<i64: 128, 32>}, {pipeline_mode = #tpu.pipeline_mode<synchronous>, transform_indices = @transform_17, window_bounds = array<i64: 1, 32>}, {transform_indices = @transform_18, window_bounds = array<i64: 1, 8, 32>}]} {
    %c0 = arith.constant 0 : index
    %c0_0 = arith.constant 0 : index
    %c0_1 = arith.constant 0 : index
    %0 = vector.load %arg1[%c0, %c0_0, %c0_1] : memref<1x8x32xbf16, #tpu.memory_space<vmem>>, vector<1x8x32xbf16>
    %1 = vector.shape_cast %0 : vector<1x8x32xbf16> to vector<8x32xbf16>
    %2 = arith.extf %1 : vector<8x32xbf16> to vector<8x32xf32>
    %c0_2 = arith.constant 0 : index
    %c0_3 = arith.constant 0 : index
    %3 = vector.load %arg3[%c0_2, %c0_3] : memref<1x32xf32, #tpu.memory_space<vmem>>, vector<1x32xf32>
    %c0_4 = arith.constant 0 : index
    %c0_5 = arith.constant 0 : index
    %4 = vector.load %arg4[%c0_4, %c0_5] : memref<1x32xf32, #tpu.memory_space<vmem>>, vector<1x32xf32>
    %cst = arith.constant dense<0.000000e+00> : vector<8xf32>
    %5 = vector.multi_reduction <add>, %2, %cst [1] : vector<8x32xf32> to vector<8xf32>
    %6 = vector.shape_cast %5 : vector<8xf32> to vector<8x1xf32>
    %cst_6 = arith.constant 3.200000e+01 : f32
    %7 = vector.broadcast %cst_6 : f32 to vector<8x1xf32>
    %8 = arith.divf %6, %7 : vector<8x1xf32>
    %9 = vector.broadcast %8 : vector<8x1xf32> to vector<8x32xf32>
    %10 = arith.subf %2, %9 : vector<8x32xf32>
    %11 = arith.mulf %10, %10 : vector<8x32xf32>
    %cst_7 = arith.constant dense<0.000000e+00> : vector<8xf32>
    %12 = vector.multi_reduction <add>, %11, %cst_7 [1] : vector<8x32xf32> to vector<8xf32>
    %13 = vector.shape_cast %12 : vector<8xf32> to vector<8x1xf32>
    %cst_8 = arith.constant 3.200000e+01 : f32
    %14 = vector.broadcast %cst_8 : f32 to vector<8x1xf32>
    %15 = arith.divf %13, %14 : vector<8x1xf32>
    %cst_9 = arith.constant 9.99999974E-6 : f32
    %16 = vector.broadcast %cst_9 : f32 to vector<8x1xf32>
    %17 = arith.addf %15, %16 : vector<8x1xf32>
    %18 = math.rsqrt %17 : vector<8x1xf32>
    %19 = vector.broadcast %18 : vector<8x1xf32> to vector<8x32xf32>
    %20 = arith.mulf %10, %19 : vector<8x32xf32>
    %21 = vector.broadcast %3 : vector<1x32xf32> to vector<8x32xf32>
    %22 = arith.mulf %20, %21 : vector<8x32xf32>
    %23 = vector.broadcast %4 : vector<1x32xf32> to vector<8x32xf32>
    %24 = arith.addf %22, %23 : vector<8x32xf32>
    %25 = arith.truncf %24 : vector<8x32xf32> to vector<8x32xbf16>
    %c0_10 = arith.constant 0 : index
    %c0_11 = arith.constant 0 : index
    %26 = vector.load %arg5[%c0_10, %c0_11] : memref<32x32xbf16, #tpu.memory_space<vmem>>, vector<32x32xbf16>
    %cst_12 = arith.constant dense<0.000000e+00> : vector<8x32xf32>
    %27 = tpu.matmul %25, %26, %cst_12 {dimension_numbers = #tpu.dot_dimension_numbers<[1], [0], [0], [1], [0, 0, 1, 1], [], []>} : vector<8x32xbf16>, vector<32x32xbf16>, vector<8x32xf32> -> vector<8x32xf32>
    %c0_13 = arith.constant 0 : index
    %c0_14 = arith.constant 0 : index
    %28 = vector.load %arg6[%c0_13, %c0_14] : memref<1x32xf32, #tpu.memory_space<vmem>>, vector<1x32xf32>
    %29 = vector.broadcast %28 : vector<1x32xf32> to vector<8x32xf32>
    %30 = arith.addf %27, %29 : vector<8x32xf32>
    %c0_15 = arith.constant 0 : index
    %c0_16 = arith.constant 0 : index
    %31 = vector.load %arg7[%c0_15, %c0_16] : memref<32x32xbf16, #tpu.memory_space<vmem>>, vector<32x32xbf16>
    %cst_17 = arith.constant dense<0.000000e+00> : vector<8x32xf32>
    %32 = tpu.matmul %25, %31, %cst_17 {dimension_numbers = #tpu.dot_dimension_numbers<[1], [0], [0], [1], [0, 0, 1, 1], [], []>} : vector<8x32xbf16>, vector<32x32xbf16>, vector<8x32xf32> -> vector<8x32xf32>
    %c0_18 = arith.constant 0 : index
    %c0_19 = arith.constant 0 : index
    %33 = vector.load %arg8[%c0_18, %c0_19] : memref<1x32xf32, #tpu.memory_space<vmem>>, vector<1x32xf32>
    %34 = vector.broadcast %33 : vector<1x32xf32> to vector<8x32xf32>
    %35 = arith.addf %32, %34 : vector<8x32xf32>
    %c0_20 = arith.constant 0 : index
    %c0_21 = arith.constant 0 : index
    %36 = vector.load %arg9[%c0_20, %c0_21] : memref<32x32xbf16, #tpu.memory_space<vmem>>, vector<32x32xbf16>
    %cst_22 = arith.constant dense<0.000000e+00> : vector<8x32xf32>
    %37 = tpu.matmul %25, %36, %cst_22 {dimension_numbers = #tpu.dot_dimension_numbers<[1], [0], [0], [1], [0, 0, 1, 1], [], []>} : vector<8x32xbf16>, vector<32x32xbf16>, vector<8x32xf32> -> vector<8x32xf32>
    %c0_23 = arith.constant 0 : index
    %c0_24 = arith.constant 0 : index
    %38 = vector.load %arg10[%c0_23, %c0_24] : memref<1x32xf32, #tpu.memory_space<vmem>>, vector<1x32xf32>
    %39 = vector.broadcast %38 : vector<1x32xf32> to vector<8x32xf32>
    %40 = arith.addf %37, %39 : vector<8x32xf32>
    %cst_25 = arith.constant 0.353553385 : f32
    %41 = vector.broadcast %cst_25 : f32 to vector<8x32xf32>
    %42 = arith.mulf %30, %41 : vector<8x32xf32>
    %43 = vector.shape_cast %42 : vector<8x32xf32> to vector<8x4x8xf32>
    %44 = tpu.transpose %43, [1, 0, 2] : vector<8x4x8xf32> -> vector<4x8x8xf32>
    %45 = arith.truncf %44 : vector<4x8x8xf32> to vector<4x8x8xbf16>
    %46 = vector.shape_cast %35 : vector<8x32xf32> to vector<8x4x8xf32>
    %47 = tpu.transpose %46, [1, 0, 2] : vector<8x4x8xf32> -> vector<4x8x8xf32>
    %48 = arith.truncf %47 : vector<4x8x8xf32> to vector<4x8x8xbf16>
    %49 = vector.shape_cast %40 : vector<8x32xf32> to vector<8x4x8xf32>
    %50 = tpu.transpose %49, [1, 0, 2] : vector<8x4x8xf32> -> vector<4x8x8xf32>
    %51 = arith.truncf %50 : vector<4x8x8xf32> to vector<4x8x8xbf16>
    %cst_26 = arith.constant 0xFF800000 : f32
    %52 = vector.broadcast %cst_26 : f32 to vector<4x8x1xf32>
    %cst_27 = arith.constant 0.000000e+00 : f32
    %53 = vector.broadcast %cst_27 : f32 to vector<4x8x1xf32>
    %cst_28 = arith.constant 0.000000e+00 : f32
    %54 = vector.broadcast %cst_28 : f32 to vector<4x8x8xf32>
    "tpu.trace_start"() <{level = 10 : i32, message = "hqd,hkd->hqk"}> : () -> ()
    %cst_29 = arith.constant dense<0.000000e+00> : vector<4x8x8xf32>
    %55 = tpu.matmul %45, %48, %cst_29 {dimension_numbers = #tpu.dot_dimension_numbers<[2], [2], [1], [1], [0, 0, 0, 1, 1, 1], [0], [0]>} : vector<4x8x8xbf16>, vector<4x8x8xbf16>, vector<4x8x8xf32> -> vector<4x8x8xf32>
    "tpu.trace_stop"() : () -> ()
    %c0_30 = arith.constant 0 : index
    %c0_31 = arith.constant 0 : index
    %56 = vector.load %arg2[%c0_30, %c0_31] : memref<8x8xf32, #tpu.memory_space<vmem>>, vector<8x8xf32>
    %57 = vector.shape_cast %56 : vector<8x8xf32> to vector<1x8x8xf32>
    %58 = vector.broadcast %57 : vector<1x8x8xf32> to vector<4x8x8xf32>
    %59 = arith.addf %55, %58 : vector<4x8x8xf32>
    %cst_32 = arith.constant dense<0xFF800000> : vector<4x8xf32>
    %60 = vector.multi_reduction <maximumf>, %59, %cst_32 [2] : vector<4x8x8xf32> to vector<4x8xf32>
    %61 = vector.shape_cast %60 : vector<4x8xf32> to vector<4x8x1xf32>
    %62 = arith.maximumf %52, %61 : vector<4x8x1xf32>
    %63 = arith.subf %52, %62 : vector<4x8x1xf32>
    %64 = math.exp %63 : vector<4x8x1xf32>
    %65 = vector.broadcast %62 : vector<4x8x1xf32> to vector<4x8x8xf32>
    %66 = arith.subf %59, %65 : vector<4x8x8xf32>
    %67 = arith.truncf %66 : vector<4x8x8xf32> to vector<4x8x8xbf16>
    %68 = math.exp %67 : vector<4x8x8xbf16>
    %69 = arith.mulf %64, %53 : vector<4x8x1xf32>
    %70 = arith.extf %68 : vector<4x8x8xbf16> to vector<4x8x8xf32>
    %cst_33 = arith.constant dense<0.000000e+00> : vector<4x8xf32>
    %71 = vector.multi_reduction <add>, %70, %cst_33 [2] : vector<4x8x8xf32> to vector<4x8xf32>
    %72 = vector.shape_cast %71 : vector<4x8xf32> to vector<4x8x1xf32>
    %73 = arith.addf %69, %72 : vector<4x8x1xf32>
    %74 = vector.broadcast %64 : vector<4x8x1xf32> to vector<4x8x8xf32>
    %75 = arith.mulf %74, %54 : vector<4x8x8xf32>
    "tpu.trace_start"() <{level = 10 : i32, message = "hqk,hkd->hqd"}> : () -> ()
    %cst_34 = arith.constant dense<0.000000e+00> : vector<4x8x8xf32>
    %76 = tpu.matmul %68, %51, %cst_34 {dimension_numbers = #tpu.dot_dimension_numbers<[2], [1], [1], [2], [0, 0, 0, 1, 1, 2], [0], [0]>} : vector<4x8x8xbf16>, vector<4x8x8xbf16>, vector<4x8x8xf32> -> vector<4x8x8xf32>
    "tpu.trace_stop"() : () -> ()
    %77 = arith.addf %75, %76 : vector<4x8x8xf32>
    %78 = tpu.reciprocal %73 : vector<4x8x1xf32> -> vector<4x8x1xf32>
    %79 = vector.broadcast %78 : vector<4x8x1xf32> to vector<4x8x8xf32>
    %80 = arith.mulf %77, %79 : vector<4x8x8xf32>
    %81 = tpu.transpose %80, [1, 0, 2] : vector<4x8x8xf32> -> vector<8x4x8xf32>
    %82 = vector.shape_cast %81 : vector<8x4x8xf32> to vector<8x32xf32>
    %83 = arith.truncf %82 : vector<8x32xf32> to vector<8x32xbf16>
    %c0_35 = arith.constant 0 : index
    %c0_36 = arith.constant 0 : index
    %84 = vector.load %arg11[%c0_35, %c0_36] : memref<32x32xbf16, #tpu.memory_space<vmem>>, vector<32x32xbf16>
    %cst_37 = arith.constant dense<0.000000e+00> : vector<8x32xf32>
    %85 = tpu.matmul %83, %84, %cst_37 {dimension_numbers = #tpu.dot_dimension_numbers<[1], [0], [0], [1], [0, 0, 1, 1], [], []>} : vector<8x32xbf16>, vector<32x32xbf16>, vector<8x32xf32> -> vector<8x32xf32>
    %c0_38 = arith.constant 0 : index
    %c0_39 = arith.constant 0 : index
    %86 = vector.load %arg12[%c0_38, %c0_39] : memref<1x32xf32, #tpu.memory_space<vmem>>, vector<1x32xf32>
    %87 = vector.broadcast %86 : vector<1x32xf32> to vector<8x32xf32>
    %88 = arith.addf %85, %87 : vector<8x32xf32>
    %89 = arith.addf %2, %88 : vector<8x32xf32>
    %c0_40 = arith.constant 0 : index
    %c0_41 = arith.constant 0 : index
    %90 = vector.load %arg13[%c0_40, %c0_41] : memref<1x32xf32, #tpu.memory_space<vmem>>, vector<1x32xf32>
    %c0_42 = arith.constant 0 : index
    %c0_43 = arith.constant 0 : index
    %91 = vector.load %arg14[%c0_42, %c0_43] : memref<1x32xf32, #tpu.memory_space<vmem>>, vector<1x32xf32>
    %cst_44 = arith.constant dense<0.000000e+00> : vector<8xf32>
    %92 = vector.multi_reduction <add>, %89, %cst_44 [1] : vector<8x32xf32> to vector<8xf32>
    %93 = vector.shape_cast %92 : vector<8xf32> to vector<8x1xf32>
    %cst_45 = arith.constant 3.200000e+01 : f32
    %94 = vector.broadcast %cst_45 : f32 to vector<8x1xf32>
    %95 = arith.divf %93, %94 : vector<8x1xf32>
    %96 = vector.broadcast %95 : vector<8x1xf32> to vector<8x32xf32>
    %97 = arith.subf %89, %96 : vector<8x32xf32>
    %98 = arith.mulf %97, %97 : vector<8x32xf32>
    %cst_46 = arith.constant dense<0.000000e+00> : vector<8xf32>
    %99 = vector.multi_reduction <add>, %98, %cst_46 [1] : vector<8x32xf32> to vector<8xf32>
    %100 = vector.shape_cast %99 : vector<8xf32> to vector<8x1xf32>
    %cst_47 = arith.constant 3.200000e+01 : f32
    %101 = vector.broadcast %cst_47 : f32 to vector<8x1xf32>
    %102 = arith.divf %100, %101 : vector<8x1xf32>
    %cst_48 = arith.constant 9.99999974E-6 : f32
    %103 = vector.broadcast %cst_48 : f32 to vector<8x1xf32>
    %104 = arith.addf %102, %103 : vector<8x1xf32>
    %105 = math.rsqrt %104 : vector<8x1xf32>
    %106 = vector.broadcast %105 : vector<8x1xf32> to vector<8x32xf32>
    %107 = arith.mulf %97, %106 : vector<8x32xf32>
    %108 = vector.broadcast %90 : vector<1x32xf32> to vector<8x32xf32>
    %109 = arith.mulf %107, %108 : vector<8x32xf32>
    %110 = vector.broadcast %91 : vector<1x32xf32> to vector<8x32xf32>
    %111 = arith.addf %109, %110 : vector<8x32xf32>
    %112 = arith.truncf %111 : vector<8x32xf32> to vector<8x32xbf16>
    %c0_49 = arith.constant 0 : index
    %c0_50 = arith.constant 0 : index
    %113 = vector.load %arg15[%c0_49, %c0_50] : memref<32x128xbf16, #tpu.memory_space<vmem>>, vector<32x128xbf16>
    %cst_51 = arith.constant dense<0.000000e+00> : vector<8x128xf32>
    %114 = tpu.matmul %112, %113, %cst_51 {dimension_numbers = #tpu.dot_dimension_numbers<[1], [0], [0], [1], [0, 0, 1, 1], [], []>} : vector<8x32xbf16>, vector<32x128xbf16>, vector<8x128xf32> -> vector<8x128xf32>
    %c0_52 = arith.constant 0 : index
    %c0_53 = arith.constant 0 : index
    %115 = vector.load %arg16[%c0_52, %c0_53] : memref<1x128xf32, #tpu.memory_space<vmem>>, vector<1x128xf32>
    %116 = vector.broadcast %115 : vector<1x128xf32> to vector<8x128xf32>
    %117 = arith.addf %114, %116 : vector<8x128xf32>
    %118 = arith.truncf %117 : vector<8x128xf32> to vector<8x128xbf16>
    %cst_54 = arith.constant 5.000000e-01 : bf16
    %119 = vector.broadcast %cst_54 : bf16 to vector<8x128xbf16>
    %120 = arith.mulf %119, %118 : vector<8x128xbf16>
    %121 = arith.mulf %118, %118 : vector<8x128xbf16>
    %122 = arith.mulf %121, %118 : vector<8x128xbf16>
    %cst_55 = arith.constant 4.467770e-02 : bf16
    %123 = vector.broadcast %cst_55 : bf16 to vector<8x128xbf16>
    %124 = arith.mulf %123, %122 : vector<8x128xbf16>
    %125 = arith.addf %118, %124 : vector<8x128xbf16>
    %cst_56 = arith.constant 7.968750e-01 : bf16
    %126 = vector.broadcast %cst_56 : bf16 to vector<8x128xbf16>
    %127 = arith.mulf %126, %125 : vector<8x128xbf16>
    %128 = math.tanh %127 : vector<8x128xbf16>
    %cst_57 = arith.constant 1.000000e+00 : bf16
    %129 = vector.broadcast %cst_57 : bf16 to vector<8x128xbf16>
    %130 = arith.addf %129, %128 : vector<8x128xbf16>
    %131 = arith.mulf %120, %130 : vector<8x128xbf16>
    %c0_58 = arith.constant 0 : index
    %c0_59 = arith.constant 0 : index
    %132 = vector.load %arg17[%c0_58, %c0_59] : memref<128x32xbf16, #tpu.memory_space<vmem>>, vector<128x32xbf16>
    %cst_60 = arith.constant dense<0.000000e+00> : vector<8x32xf32>
    %133 = tpu.matmul %131, %132, %cst_60 {dimension_numbers = #tpu.dot_dimension_numbers<[1], [0], [0], [1], [0, 0, 1, 1], [], []>} : vector<8x128xbf16>, vector<128x32xbf16>, vector<8x32xf32> -> vector<8x32xf32>
    %c0_61 = arith.constant 0 : index
    %c0_62 = arith.constant 0 : index
    %134 = vector.load %arg18[%c0_61, %c0_62] : memref<1x32xf32, #tpu.memory_space<vmem>>, vector<1x32xf32>
    %135 = vector.broadcast %134 : vector<1x32xf32> to vector<8x32xf32>
    %136 = arith.addf %133, %135 : vector<8x32xf32>
    %137 = arith.addf %89, %136 : vector<8x32xf32>
    %138 = arith.truncf %137 : vector<8x32xf32> to vector<8x32xbf16>
    %c0_63 = arith.constant 0 : index
    %c0_64 = arith.constant 0 : index
    %c0_65 = arith.constant 0 : index
    %139 = vector.load %arg19[%c0_63, %c0_64, %c0_65] : memref<1x8x32xbf16, #tpu.memory_space<vmem>>, vector<1x8x32xbf16>
    %140 = vector.shape_cast %139 : vector<1x8x32xbf16> to vector<8x32xbf16>
    %141 = vector.shape_cast %138 : vector<8x32xbf16> to vector<1x8x32xbf16>
    tpu.vector_store %arg19[%c0_63, %c0_64, %c0_65], %141 {strides = array<i32>} : memref<1x8x32xbf16, #tpu.memory_space<vmem>>, vector<1x8x32xbf16>,
    return
  }
  func.func @transform_0(%arg0: i32) -> (i32, i32, i32) {
    %c0_i32 = arith.constant 0 : i32
    %c0_i32_0 = arith.constant 0 : i32
    %c0_i32_1 = arith.constant 0 : i32
    return %arg0, %c0_i32, %c0_i32_0 : i32, i32, i32
  }
  func.func @transform_1(%arg0: i32) -> (i32, i32) {
    %c0_i32 = arith.constant 0 : i32
    %c0_i32_0 = arith.constant 0 : i32
    %c0_i32_1 = arith.constant 0 : i32
    return %c0_i32, %c0_i32_0 : i32, i32
  }
  func.func @transform_2(%arg0: i32) -> (i32, i32) {
    %c0_i32 = arith.constant 0 : i32
    %c0_i32_0 = arith.constant 0 : i32
    %c0_i32_1 = arith.constant 0 : i32
    return %c0_i32, %c0_i32_0 : i32, i32
  }
  func.func @transform_3(%arg0: i32) -> (i32, i32) {
    %c0_i32 = arith.constant 0 : i32
    %c0_i32_0 = arith.constant 0 : i32
    %c0_i32_1 = arith.constant 0 : i32
    return %c0_i32, %c0_i32_0 : i32, i32
  }
  func.func @transform_4(%arg0: i32) -> (i32, i32) {
    %c0_i32 = arith.constant 0 : i32
    %c0_i32_0 = arith.constant 0 : i32
    %c0_i32_1 = arith.constant 0 : i32
    return %c0_i32, %c0_i32_0 : i32, i32
  }
  func.func @transform_5(%arg0: i32) -> (i32, i32) {
    %c0_i32 = arith.constant 0 : i32
    %c0_i32_0 = arith.constant 0 : i32
    %c0_i32_1 = arith.constant 0 : i32
    return %c0_i32, %c0_i32_0 : i32, i32
  }
  func.func @transform_6(%arg0: i32) -> (i32, i32) {
    %c0_i32 = arith.constant 0 : i32
    %c0_i32_0 = arith.constant 0 : i32
    %c0_i32_1 = arith.constant 0 : i32
    return %c0_i32, %c0_i32_0 : i32, i32
  }
  func.func @transform_7(%arg0: i32) -> (i32, i32) {
    %c0_i32 = arith.constant 0 : i32
    %c0_i32_0 = arith.constant 0 : i32
    %c0_i32_1 = arith.constant 0 : i32
    return %c0_i32, %c0_i32_0 : i32, i32
  }
  func.func @transform_8(%arg0: i32) -> (i32, i32) {
    %c0_i32 = arith.constant 0 : i32
    %c0_i32_0 = arith.constant 0 : i32
    %c0_i32_1 = arith.constant 0 : i32
    return %c0_i32, %c0_i32_0 : i32, i32
  }
  func.func @transform_9(%arg0: i32) -> (i32, i32) {
    %c0_i32 = arith.constant 0 : i32
    %c0_i32_0 = arith.constant 0 : i32
    %c0_i32_1 = arith.constant 0 : i32
    return %c0_i32, %c0_i32_0 : i32, i32
  }
  func.func @transform_10(%arg0: i32) -> (i32, i32) {
    %c0_i32 = arith.constant 0 : i32
    %c0_i32_0 = arith.constant 0 : i32
    %c0_i32_1 = arith.constant 0 : i32
    return %c0_i32, %c0_i32_0 : i32, i32
  }
  func.func @transform_11(%arg0: i32) -> (i32, i32) {
    %c0_i32 = arith.constant 0 : i32
    %c0_i32_0 = arith.constant 0 : i32
    %c0_i32_1 = arith.constant 0 : i32
    return %c0_i32, %c0_i32_0 : i32, i32
  }
  func.func @transform_12(%arg0: i32) -> (i32, i32) {
    %c0_i32 = arith.constant 0 : i32
    %c0_i32_0 = arith.constant 0 : i32
    %c0_i32_1 = arith.constant 0 : i32
    return %c0_i32, %c0_i32_0 : i32, i32
  }
  func.func @transform_13(%arg0: i32) -> (i32, i32) {
    %c0_i32 = arith.constant 0 : i32
    %c0_i32_0 = arith.constant 0 : i32
    %c0_i32_1 = arith.constant 0 : i32
    return %c0_i32, %c0_i32_0 : i32, i32
  }
  func.func @transform_14(%arg0: i32) -> (i32, i32) {
    %c0_i32 = arith.constant 0 : i32
    %c0_i32_0 = arith.constant 0 : i32
    %c0_i32_1 = arith.constant 0 : i32
    return %c0_i32, %c0_i32_0 : i32, i32
  }
  func.func @transform_15(%arg0: i32) -> (i32, i32) {
    %c0_i32 = arith.constant 0 : i32
    %c0_i32_0 = arith.constant 0 : i32
    %c0_i32_1 = arith.constant 0 : i32
    return %c0_i32, %c0_i32_0 : i32, i32
  }
  func.func @transform_16(%arg0: i32) -> (i32, i32) {
    %c0_i32 = arith.constant 0 : i32
    %c0_i32_0 = arith.constant 0 : i32
    %c0_i32_1 = arith.constant 0 : i32
    return %c0_i32, %c0_i32_0 : i32, i32
  }
  func.func @transform_17(%arg0: i32) -> (i32, i32) {
    %c0_i32 = arith.constant 0 : i32
    %c0_i32_0 = arith.constant 0 : i32
    %c0_i32_1 = arith.constant 0 : i32
    return %c0_i32, %c0_i32_0 : i32, i32
  }
  func.func @transform_18(%arg0: i32) -> (i32, i32, i32) {
    %c0_i32 = arith.constant 0 : i32
    %c0_i32_0 = arith.constant 0 : i32
    %c0_i32_1 = arith.constant 0 : i32
    return %arg0, %c0_i32, %c0_i32_0 : i32, i32, i32
  }
}

</mosaic_0001>

<bundles_post_ra>
// kernel: tpu_custom_call.1
= control target key start
LH: loop header
LB: loop body
LE: loop exit
PB: predicated region body
PF: predicated region fallthrough
CT: control target
= control target key end

     0   :  { %s2810_s0 = inlined_call_operand.hbm [shape: bf16[2,8,32], index: 0, kind: input, shape index: {}]   ;;  %s2811_s1 = inlined_call_operand.hbm [shape: f32[8,8], index: 1, kind: input, shape index: {}]   ;;  %s2812_s2 = inlined_call_operand.vmem [shape: f32[1,32], index: 2, kind: input, shape index: {}]   ;;  %s2813_s3 = inlined_call_operand.vmem [shape: f32[1,32], index: 3, kind: input, shape index: {}]   ;;  %s2814_s4 = inlined_call_operand.vmem [shape: bf16[32,32], index: 4, kind: input, shape index: {}]   ;;  %s2815_s5 = inlined_call_operand.vmem [shape: f32[1,32], index: 5, kind: input, shape index: {}]   ;;  %s2816_s6 = inlined_call_operand.vmem [shape: bf16[32,32], index: 6, kind: input, shape index: {}]   ;;  %s2817_s7 = inlined_call_operand.vmem [shape: f32[1,32], index: 7, kind: input, shape index: {}]   ;;  %s2818_s8 = inlined_call_operand.vmem [shape: bf16[32,32], index: 8, kind: input, shape index: {}]   ;;  %s2819_s9 = inlined_call_operand.vmem [shape: f32[1,32], index: 9, kind: input, shape index: {}]   ;;  %s2820_s10 = inlined_call_operand.vmem [shape: bf16[32,32], index: 10, kind: input, shape index: {}]   ;;  %s2821_s11 = inlined_call_operand.vmem [shape: f32[1,32], index: 11, kind: input, shape index: {}]   ;;  %s2822_s12 = inlined_call_operand.vmem [shape: f32[1,32], index: 12, kind: input, shape index: {}]   ;;  %s2823_s13 = inlined_call_operand.vmem [shape: f32[1,32], index: 13, kind: input, shape index: {}]   ;;  %s2824_s14 = inlined_call_operand.vmem [shape: bf16[32,128], index: 14, kind: input, shape index: {}]   ;;  %s2825_s15 = inlined_call_operand.vmem [shape: f32[1,128], index: 15, kind: input, shape index: {}]   ;;  %s2826_s16 = inlined_call_operand.vmem [shape: bf16[128,32], index: 16, kind: input, shape index: {}]   ;;  %s2827_s17 = inlined_call_operand.vmem [shape: f32[1,32], index: 17, kind: input, shape index: {}]   ;;  %s2828_s18 = inlined_call_operand.hbm [shape: bf16[2,8,32], index: 18, kind: output, shape index: {}]  }
   0x1   :  { %2839 = sst [smem:[#allocation17_spill]] %s2810_s0 }
   0x2   :  { %2840 = sst [smem:[#allocation18_spill]] %s2811_s1 }
   0x3   :  { %2841 = sst [smem:[#allocation19_spill]] %s2812_s2 }
   0x4   :  { %2842 = sst [smem:[#allocation20_spill]] %s2825_s15 }
   0x5   :  { %2843 = sst [smem:[#allocation21_spill]] %s2826_s16 }
   0x6   :  { %2844 = sst [smem:[#allocation22_spill]] %s2827_s17 }
   0x7   :  { %2845 = sst [smem:[#allocation23_spill]] %s2828_s18 }
   0x8   :  { %23 = vsyncpa [#allocation3], 0 }
   0x9   :  { %25 = vsyncpa [#allocation3 + $0x1], 0 }
   0xa   :  { %26 = vsyncpa [#allocation6], 0 }
   0xb   :  { %27 = vsyncpa [#allocation4], 0 }
   0xc   :  { %29 = vsyncpa [#allocation4 + $0x1], 0  ;;  %s2324_s27 = smov 0   ;;  %s2326_s28 = smov 0  }
   0xd   :  { %s2328_s29 = smov 0   ;;  %s2330_s30 = smov 0  }
   0xe LB: > { %2846 = sst [smem:[#allocation11_spill]] %s2205_s27  ;;  %s2345_s0 = sadd.s32 4294967295, %s2217_s30   ;;  %s2217_s30 = sphi %s2330_s30, %s2869_s30   ;;  %s2213_s29 = sphi %s2328_s29, %s2871_s29   ;;  %s2209_s28 = sphi %s2326_s28, %s2873_s28   ;;  %s2205_s27 = sphi %s2324_s27, %s2872_s27  }
   0xf   : > { %2847 = sst [smem:[#allocation12_spill]] %s2213_s29  ;;  %s1862_s19 = sadd.s32 4294967294, %s2217_s30  }
  0x10   : > { %p55_p0 = scmp.ne.s32.totalorder %s2209_s28, %s2205_s27  ;;  %p56_p1 = scmp.eq.s32.totalorder %s2345_s0, 0 }
  0x11   : > { %p436_p2 = scmp.eq.s32.totalorder %s2345_s0, 1  ;;  %p442_p3 = scmp.eq.s32.totalorder %s1862_s19, 1 }
  0x12   : > { %p2354_p4 = por %p56_p1, %p55_p0  ;;  %p1863_p5 = scmp.ge.s32.totalorder %s2217_s30, 1 }
  0x13   : > { %p2359_p6 = por %p442_p3, %p55_p0  ;;  %p449_p7 = scmp.lt.s32.totalorder %s2217_s30, 3 }
  0x14   : > { %s2851_s2 = sld [smem:[#allocation18_spill]]  ;;  %s2219_s25 = smov [#allocation5]  }
  0x15   : > { %s2849_s20 = scalar_select %p2359_p6, 1, 0 }
  0x16   : > { %p2367_p8 = pnand %p1863_p5, %p449_p7  ;;  %s463_s26 = sshll.u32 %s2219_s25, 4  ;;  %s464_s26 = int_to_ptr.vmem [resolvable:$true] %s463_s26 }
  0x17   : > { %2850 = sst [smem:[#allocation13_spill]] %s2849_s20  ;;  %s2377_s19 = sadd.s32 1, %s2217_s30  }
  0x18   : > { %p1987_p10 = pneg %p2367_p8  ;;  %2853 = sst [smem:[#allocation14_spill]] %s2377_s19 }
  0x19   : > { %s42_s21 = sadd.s32 1, %s2213_s29  ;;  %s39_s22 = ssub.s32 %s2217_s30, %s2377_s19 }
  0x1a   : > { %s461_s23 = sshll.u32 %s2851_s2, 4  ;;  %p1988_p11 = pnand %p1987_p10, %p56_p1  ;;  %s462_s23 = int_to_ptr.hbm [resolvable:$true] %s461_s23 }
  0x1b   : > { %p40_p12 = scmp.eq.s32.totalorder %s39_s22, 0  ;;  %p49_p13 = scmp.ne.s32.totalorder %s2213_s29, %s2209_s28 }
  0x1c   : > { %1990 = dma.hbm_to_vmem [thread:$0]  (!%p1988_p11), %s462_s23, 128, %s464_s26, [#allocation6]  }
  0x1d   : > { %p50_p0 = scmp.eq.s32.totalorder %s2217_s30, 0  ;;  %p2390_p3 = por %p436_p2, %p49_p13 }
  0x1e   : > { %s2386_s2 = scalar_select %p40_p12, %s2213_s29, %s42_s21  }
  0x1f   : > { %s2855_s20 = scalar_select %p2390_p3, 1, 0 }
  0x20   : > { %2854 = sst [smem:[#allocation15_spill]] %s2386_s2  ;;  %p2000_p5 = scmp.lt.s32.totalorder %s2217_s30, 2 }
  0x21   : > { %2856 = sst [smem:[#allocation16_spill]] %s2855_s20  ;;  %s522_s25 = sand.u32 1, %s2213_s29  }
  0x22   : > { %s1867_s27 = sshll.u32 %s2217_s30, 2  ;;  %p51_p7 = por %p50_p0, %p49_p13 }
  0x23   : > { %s1866_s18 = sshll.u32 %s522_s25, 2  ;;  %s2857_s15 = sld [smem:[#allocation17_spill]] }
  0x24   : > { %s526_s26 = scalar_lea.vmem [#allocation2], %s1866_s18  ;;  %p2400_p10 = pnand %p2000_p5, %p51_p7 }
  0x25   : > { %s534_s22 = sshll.u32 %s526_s26, 4  ;;  %s523_s2 = scalar_lea.sflag [#allocation3], %s522_s25  ;;  %s535_s22 = int_to_ptr.vmem [resolvable:$true] %s534_s22 }
  0x26   : > { %p2121_p11 = pneg %p2400_p10 }
  0x29   : > { %s530_s19 = scalar_lea.hbm %s2857_s15, %s1867_s27  ;;  %s2124_s18 = scalar_lea.hbm %s2857_s15, 8 }
  0x2a   : > { %s532_s23 = sshll.u32 %s530_s19, 4  ;;  %s533_s23 = int_to_ptr.hbm [resolvable:$true] %s532_s23 }
  0x2b   : > { %s2117_s20 = sshra.s32 %s533_s23, 4  ;;  %s2118_s20 = int_to_ptr.hbm [resolvable:$true] %s2117_s20 }
  0x2c   : > { %s2119_s29 = scalar_lea.hbm %s2118_s20, 4  ;;  %p2125_p0 = scmp.lt.s32.totalorder %s2118_s20, %s2857_s15 }
  0x2d   : > { %p2120_p2 = scmp.ne.s32.totalorder %s2118_s20, %s2119_s29  ;;  %p2126_p5 = scmp.lt.s32.totalorder %s2124_s18, %s2119_s29 }
  0x2f   : > { %p2122_p12 = pnand %p2121_p11, %p2120_p2  ;;  %p2127_p7 = por %p2126_p5, %p2125_p0 }
  0x31   : > { %p2123_p13 = pneg %p2122_p12 }
  0x33   : > { %p2128_p9 = pnand %p2127_p7, %p2123_p13 }
  0x35   : > { %2131 = shalt.err (!%p2128_p9)
}
  0x36   : > { %1994 = dma.hbm_to_vmem [thread:$0]  (!%p2400_p10), %s533_s23, 64, %s535_s22, %s523_s2  }
  0x37   : > { %543 = sbr.rel (%p2367_p8) target bundleno = 1920 (0x780), region = 92  ;;  %s2417_s25 = sand.u32 (!%p2367_p8), 1, %s2209_s28  }
  0x38   : > { %s1869_s26 = sshll.u32 (!%p2367_p8), %s2417_s25, 2  ;;  %s546_s16 = scalar_lea.sflag (!%p2367_p8), [#allocation3], %s2417_s25 }
  0x39   : > { %s549_s29 = scalar_lea.vmem (!%p2367_p8), [#allocation2], %s1869_s26 }
  0x3c   : > { %2192 = dma.done.wait (%p2354_p4), %s546_s16, 64  }
  0x3d   : > { %2194 = vsyncadd (%p2354_p4), %s546_s16, 4294967232 }
  0x3e   : > { %2196 = dma.done.wait (%p56_p1), [#allocation6], 128  }
  0x3f   : > { %2198 = vsyncadd (%p56_p1), [#allocation6], 4294967168  ;;  %vm613_vm0 = vcmask 261120   ;;  %v609_v0 = vld [vmem:[%s549_s29] sm:$0xf]  ;;  %v2220_v3 = vmov 32.0  }
  0x40   : > { %v2431_v1 = vunpack.c.l.bf16 %v609_v0  ;;  %2055 = vrcp.f32 %v2220_v3  ;;  %v1962_v15 = vld [vmem:[%s2814_s4 + $0x8] sm:$0xff]  ;;  %v1961_v17 = vld [vmem:[%s2814_s4] sm:$0xff]  ;;  %s2859_s20 = sld [smem:[#allocation19_spill]]  ;;  %s2221_s18 = smov 112   ;;  %v2224_v53 = vmov 1983009808  }
  0x41   : > { %v1964_v16 = vld [vmem:[%s2816_s6 + $0x8] sm:$0xff]  ;;  %681 = vmatpush.bf16.msra.mxu0 %v1962_v15  ;;  %v1963_v18 = vld [vmem:[%s2816_s6] sm:$0xff]  ;;  %s2222_s27 = smov 104   ;;  %s2223_s19 = smov 120   ;;  %v771_v54 = vunpack.c.l.s4 %v2224_v53  ;;  %vm766_vm5 = vcmask 1047556   ;;  %vm1129_vm6 = vcmask 64512  }
  0x42   : > { %v614_v2 = vsel %vm613_vm0, %v2431_v1, 0.0  ;;  %714 = vmatpush.bf16.msra.mxu2 %v1964_v16  ;;  %v1966_v19 = vld [vmem:[%s2818_s8 + $0x8] sm:$0xff]  ;;  %v1965_v22 = vld [vmem:[%s2818_s8] sm:$0xff]  ;;  %v2225_v0 = vmov 1934713408   ;;  %vm1281_vm7 = vcmask 1043456  }
  0x43   : > { %615 = vadd.xlane.f32.xlu0 %v614_v2  ;;  %v2046_v33 = vld [vmem:[%s2813_s3] ss:$0 sm:$0xff]  ;;  %v2485_v60 = vunpack.c.0.s8 %v771_v54  ;;  %v795_v2 = vunpack.c.l.s4 %v2225_v0  ;;  %s2226_s1 = smov 24   ;;  %s2228_s24 = smov 8  }
  0x44   : > { %v2047_v37 = vld [vmem:[%s2815_s5] ss:$0 sm:$0xff]  ;;  %s2860_s21 = sld [smem:[#allocation20_spill]] }
  0x45   : > { %682 = vmatpush.bf16.msra.mxu0 %v1961_v17  ;;  %v2048_v41 = vld [vmem:[%s2817_s7] ss:$0 sm:$0xff]  ;;  %s2863_s2 = sld [smem:[#allocation22_spill]] }
  0x46   : > { %v2056_v4 = vpop.eup %2055  ;;  %715 = vmatpush.bf16.msra.mxu2 %v1963_v18  ;;  %v2045_v30 = vld [vmem:[%s2859_s20] ss:$0 sm:$0xff]  ;;  %s2227_s20 = smov 16  }
  0x47   : > { %v618_v5 = vmul.f32 32.0, %v2056_v4  ;;  %vm622_vm1 = vweird.f32 %v2056_v4  ;;  %v2049_v46 = vld [vmem:[%s2819_s9] ss:$0 sm:$0xff] }
  0x49   : > { %v619_v6 = vsub.f32 1.0, %v618_v5 }
  0x4a   : > { %747 = vmatpush.bf16.msrb.mxu2 %v1966_v19 }
  0x4b   : > { %v620_v7 = vmul.f32 %v2056_v4, %v619_v6 }
  0x4d   : > { %v621_v8 = vadd.f32 %v2056_v4, %v620_v7 }
  0x4e   : > { %748 = vmatpush.bf16.msrb.mxu2 %v1965_v22 }
  0x4f   : > { %v2435_v9 = vsel %vm622_vm1, %v2056_v4, %v621_v8 }
  0xb6   : > { %v616_v10 = vpop.xlane.xlu0 %615 }
  0xb7   : > { %v624_v11 = vmul.f32 %v2435_v9, %v616_v10 }
  0xb9   : > { %v625_v12 = vsub.f32 %v2431_v1, %v624_v11 }
  0xbb   : > { %v626_v13 = vmul.f32 %v625_v12, %v625_v12 }
  0xbd   : > { %v627_v14 = vsel %vm613_vm0, %v626_v13, 0.0  ;;  %v2492_v13 = vunpack.c.0.s8 %v795_v2 }
  0xbe   : > { %628 = vadd.xlane.f32.xlu0 %v627_v14 }
 0x131   : > { %v629_v20 = vpop.xlane.xlu0 %628 }
 0x132   : > { %v630_v21 = vmul.f32 %v629_v20, %v2435_v9 }
 0x134   : > { %v631_v23 = vadd.f32 1e-05, %v630_v21 }
 0x136   : > { %2057 = vrsqrt.f32 %v631_v23  ;;  %vm638_vm3 = vweird.f32 %v631_v23 }
 0x13c   : > { %v2058_v24 = vpop.eup %2057 }
 0x13d   : > { %v633_v25 = vmul.f32 %v2058_v24, %v631_v23  ;;  %vm639_vm2 = vweird.f32 %v2058_v24 }
 0x13e   : > { %vm640_vm4 = vmor %vm638_vm3, %vm639_vm2 }
 0x13f   : > { %v634_v26 = vmul.f32 %v2058_v24, %v633_v25 }
 0x141   : > { %v635_v27 = vmul.f32 0.5, %v634_v26 }
 0x143   : > { %v636_v28 = vsub.f32 1.5, %v635_v27 }
 0x145   : > { %v637_v29 = vmul.f32 %v2058_v24, %v636_v28 }
 0x147   : > { %v641_v31 = vsel %vm640_vm4, %v2058_v24, %v637_v29 }
 0x148   : > { %v642_v32 = vmul.f32 %v641_v31, %v625_v12 }
 0x14a   : > { %v646_v34 = vmul.f32 %v2045_v30, %v642_v32 }
 0x14c   : > { %v650_v35 = vadd.f32 %v2046_v33, %v646_v34 }
 0x14e   : > { %v651_v36 = vpack.c.bf16 %v650_v35, %v650_v35 }
 0x150   : > { %1880 = vmatmul.msk.bf16.vlgmr.msra.gmra.mxu0 %vm613_vm0, %v651_v36  ;;  %1889 = vmatmul.msk.bf16.vlgmr.msra.gmra.mxu2 %vm613_vm0, %v651_v36 }
 0x160   : > { %1898 = vmatmul.msk.bf16.vlgmr.msrb.gmra.mxu2 %vm613_vm0, %v651_v36 }
 0x1cd   : > { %v684_v38 = vpop.f32.mrf.mxu0 }
 0x1ce   : > { %v685_v39 = vadd.f32 %v2047_v37, %v684_v38 }
 0x1d0   : > { %v754_v40 = vmul.f32 0.35355338, %v685_v39 }
 0x1d2   : > { %759 = vrot.lane.b32.xlu0 %v754_v40, %s2221_s18  ;;  %v768_v3 = vrot.slane %v754_v40, 4 }
 0x1d3   : > { %v717_v42 = vpop.f32.mrf.mxu2 }
 0x1d4   : > { %v718_v43 = vadd.f32 %v2048_v41, %v717_v42 }
 0x1d5   : > { %v686_v44 = vpop.f32.mrf.mxu0 }
 0x1d6   : > { %887 = vrot.lane.b32.xlu2 %v718_v43, %s2222_s27  ;;  %881 = vrot.lane.b32.xlu1 %v718_v43, %s2223_s19  ;;  %v892_v6 = vrot.slane %v718_v43, 4 }
 0x1db   : > { %v719_v45 = vpop.f32.mrf.mxu2 }
 0x1de   : > { %884 = vrot.lane.b32.xlu1 %v718_v43, %s2221_s18  ;;  %756 = vrot.lane.b32.xlu2 %v754_v40, %s2223_s19 }
 0x1e3   : > { %v750_v47 = vpop.f32.mrf.mxu2 }
 0x1e4   : > { %v2477_v48 = vadd.f32 %v2049_v46, %v750_v47 }
 0x1e6   : > { %762 = vrot.lane.b32.xlu1 %v754_v40, %s2222_s27  ;;  %1005 = vrot.lane.b32.xlu2 %v2477_v48, %s2223_s19  ;;  %v1016_v36 = vrot.slane %v2477_v48, 4 }
 0x1eb   : > { %v752_v49 = vpop.f32.mrf.mxu2 }
 0x1ee   : > { %1008 = vrot.lane.b32.xlu1 %v2477_v48, %s2221_s18  ;;  %1011 = vrot.lane.b32.xlu2 %v2477_v48, %s2222_s27  ;;  %s2861_s27 = sld [smem:[#allocation21_spill]] }
 0x1f4   : > { %s2862_s19 = smov %s2861_s27 }
 0x230   : > { %v888_v50 = vpop.permute.xlu2 %887 }
 0x231   : > { %v902_v58 = vrot.slane %v888_v50, 4 }
 0x238   : > { %v2482_v51 = vpop.permute.xlu2 %756 }
 0x239   : > { %v780_v37 = vrot.slane %v2482_v51, 4 }
 0x240   : > { %v1006_v52 = vpop.permute.xlu2 %1005 }
 0x241   : > { %v1028_v7 = vrot.slane %v1006_v52, 4 }
 0x244   : > { %v760_v56 = vpop.permute.xlu0 %759 }
 0x245   : > { %v765_v61 = vrot.slane %v760_v56, 4  ;;  %v769_v10 = vsel %vm766_vm5, %v760_v56, %v768_v3 }
 0x246   : > { %v777_v20 = vperm.slane %v769_v10, %v2485_v60 }
 0x247   : > { %v767_v8 = vsel %vm766_vm5, %v765_v61, %v754_v40 }
 0x248   : > { %v882_v55 = vpop.permute.xlu1 %881  ;;  %v1012_v62 = vpop.permute.xlu2 %1011  ;;  %v773_v19 = vperm.slane %v767_v8, %v2485_v60  ;;  %v804_v39 = vrot.slane %v777_v20, 4 }
 0x249   : > { %v904_v57 = vrot.slane %v882_v55, 4  ;;  %v903_v63 = vsel %vm766_vm5, %v902_v58, %v882_v55  ;;  %v1026_v5 = vrot.slane %v1012_v62, 4  ;;  %v1029_v17 = vsel %vm766_vm5, %v1012_v62, %v1028_v7 }
 0x24a   : > { %v909_v11 = vperm.slane %v903_v63, %v2485_v60  ;;  %v2504_v27 = vperm.slane %v1029_v17, %v2485_v60  ;;  %v792_v38 = vrot.slane %v773_v19, 4 }
 0x24b   : > { %v905_v59 = vsel %vm766_vm5, %v888_v50, %v904_v57  ;;  %v1027_v21 = vsel %vm766_vm5, %v1026_v5, %v1006_v52 }
 0x24c   : > { %v913_v4 = vperm.slane %v905_v59, %v2485_v60  ;;  %v914_v23 = vrot.slane %v909_v11, 4  ;;  %v2508_v29 = vperm.slane %v1027_v21, %v2485_v60  ;;  %v1050_v42 = vrot.slane %v2504_v27, 4 }
 0x24e   : > { %v926_v16 = vrot.slane %v913_v4, 4  ;;  %v1038_v46 = vrot.slane %v2508_v29, 4 }
 0x250   : > { %v885_v12 = vpop.permute.xlu1 %884 }
 0x251   : > { %v890_v14 = vrot.slane %v885_v12, 4  ;;  %v893_v15 = vsel %vm766_vm5, %v885_v12, %v892_v6 }
 0x252   : > { %v901_v18 = vperm.slane %v893_v15, %v2485_v60 }
 0x253   : > { %v891_v22 = vsel %vm766_vm5, %v890_v14, %v718_v43 }
 0x254   : > { %v897_v24 = vperm.slane %v891_v22, %v2485_v60  ;;  %v927_v25 = vsel %vm766_vm5, %v926_v16, %v901_v18  ;;  %v928_v26 = vrot.slane %v901_v18, 4 }
 0x255   : > { %v933_v28 = vperm.slane %v927_v25, %v2492_v13 }
 0x256   : > { %v915_v30 = vsel %vm766_vm5, %v914_v23, %v897_v24  ;;  %v916_v31 = vrot.slane %v897_v24, 4  ;;  %v929_v32 = vsel %vm766_vm5, %v913_v4, %v928_v26 }
 0x257   : > { %v921_v33 = vperm.slane %v915_v30, %v2492_v13  ;;  %v937_v34 = vperm.slane %v929_v32, %v2492_v13  ;;  %v942_v35 = vrot.slane %v933_v28, 4 }
 0x258   : > { %v917_v40 = vsel %vm766_vm5, %v909_v11, %v916_v31  ;;  %v763_v41 = vpop.permute.xlu1 %762 }
 0x259   : > { %v925_v43 = vperm.slane %v917_v40, %v2492_v13  ;;  %v938_v44 = vrot.slane %v921_v33, 4  ;;  %v944_v45 = vrot.slane %v937_v34, 4  ;;  %v943_v47 = vsel %vm766_vm5, 0.0, %v942_v35 }
 0x25a   : > { %v778_v49 = vrot.slane %v763_v41, 4  ;;  %v781_v50 = vsel %vm766_vm5, %v763_v41, %v780_v37 }
 0x25b   : > { %v940_v52 = vrot.slane %v925_v43, 4  ;;  %v945_v53 = vsel %vm766_vm5, 0.0, %v944_v45  ;;  %v957_v54 = vsel %vm766_vm5, %v944_v45, %v933_v28  ;;  %v789_v55 = vperm.slane %v781_v50, %v2485_v60 }
 0x25c   : > { %v2526_v56 = vperm.slane %v957_v54, %v2485_v60  ;;  %v962_v57 = vrot.slane %v945_v53, 4  ;;  %v779_v58 = vsel %vm766_vm5, %v778_v49, %v2482_v51  ;;  %v939_v59 = vsel %vm766_vm5, 0.0, %v938_v44 }
 0x25d   : > { %v941_v61 = vsel %vm766_vm5, 0.0, %v940_v52  ;;  %v785_v62 = vperm.slane %v779_v58, %v2485_v60  ;;  %v802_v63 = vrot.slane %v789_v55, 4  ;;  %v805_v0 = vsel %vm766_vm5, %v789_v55, %v804_v39 }
 0x25e   : > { %v963_v2 = vsel %vm766_vm5, %v962_v57, %v943_v47  ;;  %v813_v3 = vperm.slane %v805_v0, %v2492_v13  ;;  %v946_v4 = vsel %vm766_vm5, %v940_v52, %v921_v33  ;;  %v951_v5 = vrot.slane %v941_v61, 4 }
 0x25f   : > { %v790_v6 = vrot.slane %v785_v62, 4  ;;  %v793_v7 = vsel %vm766_vm5, %v785_v62, %v792_v38  ;;  %v803_v51 = vsel %vm766_vm5, %v802_v63, %v777_v20  ;;  %v950_v8 = vperm.slane %v946_v4, %v2485_v60 }
 0x260   : > { %v801_v10 = vperm.slane %v793_v7, %v2492_v13  ;;  %v809_v11 = vperm.slane %v803_v51, %v2492_v13  ;;  %v820_v12 = vrot.slane %v813_v3, 4  ;;  %v1009_v14 = vpop.permute.xlu1 %1008  ;;  %v952_v15 = vsel %vm766_vm5, %v951_v5, %v939_v59 }
 0x261   : > { %v791_v16 = vsel %vm766_vm5, %v790_v6, %v773_v19  ;;  %v1014_v17 = vrot.slane %v1009_v14, 4  ;;  %v1017_v18 = vsel %vm766_vm5, %v1009_v14, %v1016_v36  ;;  %v956_v21 = vperm.slane %v952_v15, %v2485_v60 }
 0x262   : > { %v797_v22 = vperm.slane %v791_v16, %v2492_v13  ;;  %v816_v20 = vrot.slane %v801_v10, 4  ;;  %v818_v23 = vrot.slane %v809_v11, 4  ;;  %v821_v24 = vsel %vm766_vm5, 0.0, %v820_v12 }
 0x263   : > { %v833_v25 = vsel %vm766_vm5, %v820_v12, %v809_v11  ;;  %v838_v26 = vrot.slane %v821_v24, 4  ;;  %v1015_v28 = vsel %vm766_vm5, %v1014_v17, %v2477_v48  ;;  %v1025_v30 = vperm.slane %v1017_v18, %v2485_v60 }
 0x264   : > { %v814_v19 = vrot.slane %v797_v22, 4  ;;  %v817_v31 = vsel %vm766_vm5, 0.0, %v816_v20  ;;  %v819_v32 = vsel %vm766_vm5, 0.0, %v818_v23  ;;  %v2555_v33 = vperm.slane %v833_v25, %v2485_v60 }
 0x265   : > { %v827_v34 = vrot.slane %v817_v31, 4  ;;  %v839_v35 = vsel %vm766_vm5, %v838_v26, %v819_v32  ;;  %v1021_v36 = vperm.slane %v1015_v28, %v2485_v60  ;;  %v1051_v37 = vsel %vm766_vm5, %v1050_v42, %v1025_v30 }
 0x266   : > { %v1052_v38 = vrot.slane %v1025_v30, 4  ;;  %v1057_v48 = vperm.slane %v1051_v37, %v2492_v13  ;;  %v967_v39 = vperm.slane %v963_v2, %v2485_v60  ;;  %v970_v40 = vrot.slane %v950_v8, 4 }
 0x267   : > { %v1039_v41 = vsel %vm766_vm5, %v1038_v46, %v1021_v36  ;;  %v1040_v43 = vrot.slane %v1021_v36, 4  ;;  %v982_v44 = vrot.slane %v2526_v56, 4  ;;  %v968_v45 = vrot.slane %v956_v21, 4 }
 0x268   : > { %v1045_v47 = vperm.slane %v1039_v41, %v2492_v13  ;;  %v1053_v49 = vsel %vm766_vm5, %v2504_v27, %v1052_v38  ;;  %v1066_v50 = vrot.slane %v1057_v48, 4  ;;  %v971_v42 = vsel %vm766_vm5, %v956_v21, %v970_v40 }
 0x269   : > { %v1041_v52 = vsel %vm766_vm5, %v2508_v29, %v1040_v43  ;;  %v1061_v53 = vperm.slane %v1053_v49, %v2492_v13  ;;  %v979_v54 = vperm.slane %v971_v42, %v2492_v13  ;;  %v983_v46 = vsel %vm766_vm5, %v967_v39, %v982_v44 }
 0x26a   : > { %v1049_v55 = vperm.slane %v1041_v52, %v2492_v13  ;;  %v1062_v57 = vrot.slane %v1045_v47, 4  ;;  %v1067_v58 = vsel %vm766_vm5, 0.0, %v1066_v50  ;;  %v991_v59 = vperm.slane %v983_v46, %v2492_v13 }
 0x26b   : > { %v1068_v27 = vrot.slane %v1061_v53, 4  ;;  %v998_v61 = vrot.slane %v979_v54, 4  ;;  %v969_v62 = vsel %vm766_vm5, %v968_v45, %v950_v8  ;;  %v980_v63 = vrot.slane %v967_v39, 4 }
 0x26c   : > { %v1064_v0 = vrot.slane %v1049_v55, 4  ;;  %v996_v29 = vrot.slane %v991_v59, 4  ;;  %v975_v2 = vperm.slane %v969_v62, %v2492_v13  ;;  %v815_v3 = vsel %vm766_vm5, 0.0, %v814_v19 }
 0x26d   : > { %v1069_v4 = vsel %vm766_vm5, 0.0, %v1068_v27  ;;  %v1081_v5 = vsel %vm766_vm5, %v1068_v27, %v1057_v48  ;;  %v981_v6 = vsel %vm766_vm5, %v980_v63, %v2526_v56  ;;  %v999_v7 = vsel %vm766_vm5, %v991_v59, %v998_v61 }
 0x26e   : > { %v1065_v51 = vsel %vm766_vm5, 0.0, %v1064_v0  ;;  %v2586_v8 = vperm.slane %v1081_v5, %v2485_v60  ;;  %v1086_v10 = vrot.slane %v1069_v4, 4  ;;  %v997_v11 = vsel %vm766_vm5, %v996_v29, %v979_v54 }
 0x26f   : > { %v1075_v12 = vrot.slane %v1065_v51, 4  ;;  %v1002_v14 = vpack.c.bf16 %v997_v11, %v997_v11  ;;  %v987_v15 = vperm.slane %v981_v6, %v2492_v13  ;;  %v1003_v16 = vpack.c.bf16 %v999_v7, %v999_v7 }
 0x270   : > { %v1087_v17 = vsel %vm766_vm5, %v1086_v10, %v1067_v58  ;;  %v994_v18 = vrot.slane %v975_v2, 4  ;;  %v822_v56 = vsel %vm766_vm5, %v816_v20, %v797_v22  ;;  %v828_v21 = vsel %vm766_vm5, %v827_v34, %v815_v3 }
 0x271   : > { %v1172_v23 = vsel %vm1129_vm6, %v1002_v14, 0  ;;  %v992_v24 = vrot.slane %v987_v15, 4  ;;  %v1191_v25 = vsel %vm1129_vm6, %v1003_v16, 0  ;;  %v826_v26 = vperm.slane %v822_v56, %v2485_v60 }
 0x272   : > { %1181 = vmatpush.bf16.xpose.msra.mxu1 %v1172_v23  ;;  %1200 = vmatpush.bf16.xpose.msra.mxu2 %v1191_v25  ;;  %v995_v28 = vsel %vm766_vm5, %v987_v15, %v994_v18  ;;  %v832_v30 = vperm.slane %v828_v21, %v2485_v60  ;;  %v843_v19 = vperm.slane %v839_v35, %v2485_v60  ;;  %v858_v31 = vrot.slane %v2555_v33, 4 }
 0x273   : > { %v993_v22 = vsel %vm766_vm5, %v992_v24, %v975_v2  ;;  %v1001_v20 = vpack.c.bf16 %v995_v28, %v995_v28  ;;  %v846_v32 = vrot.slane %v826_v26, 4  ;;  %v1063_v34 = vsel %vm766_vm5, 0.0, %v1062_v57 }
 0x274   : > { %v1000_v36 = vpack.c.bf16 %v993_v22, %v993_v22  ;;  %v859_v37 = vsel %vm766_vm5, %v843_v19, %v858_v31  ;;  %v844_v38 = vrot.slane %v832_v30, 4  ;;  %v856_v48 = vrot.slane %v843_v19, 4 }
 0x275   : > { %v1153_v39 = vsel %vm1129_vm6, %v1001_v20, 0  ;;  %v847_v40 = vsel %vm766_vm5, %v832_v30, %v846_v32  ;;  %v867_v41 = vperm.slane %v859_v37, %v2492_v13  ;;  %v1070_v35 = vsel %vm766_vm5, %v1064_v0, %v1045_v47  ;;  %v1128_v32 = vld [vmem:[#allocation5] sm:$0xff] }
 0x276   : > { %v1134_v43 = vsel %vm1129_vm6, %v1000_v36, 0  ;;  %1162 = vmatpush.bf16.xpose.msrb.mxu0 %v1153_v39  ;;  %v855_v44 = vperm.slane %v847_v40, %v2492_v13  ;;  %v845_v45 = vsel %vm766_vm5, %v844_v38, %v826_v26  ;;  %v857_v49 = vsel %vm766_vm5, %v856_v48, %v2555_v33 }
 0x277   : > { %1143 = vmatpush.bf16.xpose.msra.mxu3 %v1134_v43  ;;  %v872_v50 = vrot.slane %v867_v41, 4  ;;  %v851_v42 = vperm.slane %v845_v45, %v2492_v13  ;;  %v863_v52 = vperm.slane %v857_v49, %v2492_v13  ;;  %v1074_v53 = vperm.slane %v1070_v35, %v2485_v60 }
 0x278   : > { %v874_v54 = vrot.slane %v855_v44, 4  ;;  %v1076_v47 = vsel %vm766_vm5, %v1075_v12, %v1063_v34  ;;  %v1091_v46 = vperm.slane %v1087_v17, %v2485_v60  ;;  %v1106_v55 = vrot.slane %v2586_v8, 4 }
 0x279   : > { %v873_v57 = vsel %vm766_vm5, %v872_v50, %v855_v44  ;;  %v868_v58 = vrot.slane %v863_v52, 4  ;;  %v870_v59 = vrot.slane %v851_v42, 4  ;;  %v1080_v33 = vperm.slane %v1076_v47, %v2485_v60 }
 0x27a   : > { %v878_v27 = vpack.c.bf16 %v873_v57, %v873_v57  ;;  %v875_v61 = vsel %vm766_vm5, %v867_v41, %v874_v54  ;;  %v1094_v62 = vrot.slane %v1074_v53, 4  ;;  %v1107_v63 = vsel %vm766_vm5, %v1091_v46, %v1106_v55 }
 0x27b   : > { %v869_v0 = vsel %vm766_vm5, %v868_v58, %v851_v42  ;;  %v879_v29 = vpack.c.bf16 %v875_v61, %v875_v61  ;;  %v871_v2 = vsel %vm766_vm5, %v863_v52, %v870_v59  ;;  %v1115_v3 = vperm.slane %v1107_v63, %v2492_v13 }
 0x27c   : > { %1901 = vmatmul.msk.bf16.vlgmr.msra.gmra.mxu1 %vm1129_vm6, %v878_v27  ;;  %v876_v4 = vpack.c.bf16 %v869_v0, %v869_v0  ;;  %v877_v5 = vpack.c.bf16 %v871_v2, %v871_v2  ;;  %v1095_v6 = vsel %vm766_vm5, %v1080_v33, %v1094_v62  ;;  %v1092_v10 = vrot.slane %v1080_v33, 4 }
 0x27d   : > { %1902 = vmatmul.msk.bf16.vlgmr.msra.gmra.mxu2 %vm1129_vm6, %v879_v29  ;;  %v1103_v7 = vperm.slane %v1095_v6, %v2492_v13  ;;  %v1120_v51 = vrot.slane %v1115_v3, 4  ;;  %v1104_v11 = vrot.slane %v1091_v46, 4 }
 0x27e   : > { %1899 = vmatmul.msk.bf16.vlgmr.msra.gmra.mxu3 %vm1129_vm6, %v876_v4  ;;  %1900 = vmatmul.msk.bf16.vlgmr.msrb.gmra.mxu0 %vm1129_vm6, %v877_v5  ;;  %v1093_v15 = vsel %vm766_vm5, %v1092_v10, %v1074_v53 }
 0x27f   : > { %v1121_v12 = vsel %vm766_vm5, %v1120_v51, %v1103_v7  ;;  %v1122_v14 = vrot.slane %v1103_v7, 4  ;;  %v1105_v16 = vsel %vm766_vm5, %v1104_v11, %v2586_v8  ;;  %v1099_v18 = vperm.slane %v1093_v15, %v2492_v13 }
 0x280   : > { %v1126_v17 = vpack.c.bf16 %v1121_v12, %v1121_v12  ;;  %v1111_v56 = vperm.slane %v1105_v16, %v2492_v13 }
 0x281   : > { %v1123_v21 = vsel %vm766_vm5, %v1115_v3, %v1122_v14  ;;  %v1118_v25 = vrot.slane %v1099_v18, 4 }
 0x282   : > { %v1321_v23 = vsel %vm1281_vm7, %v1126_v17, 0  ;;  %v1116_v24 = vrot.slane %v1111_v56, 4  ;;  %v1127_v26 = vpack.c.bf16 %v1123_v21, %v1123_v21 }
 0x283   : > { %1330 = vmatpush.bf16.msrb.mxu1 %v1321_v23  ;;  %v1119_v19 = vsel %vm766_vm5, %v1111_v56, %v1118_v25 }
 0x284   : > { %v1117_v28 = vsel %vm766_vm5, %v1116_v24, %v1099_v18  ;;  %v1340_v30 = vsel %vm1281_vm7, %v1127_v26, 0  ;;  %v1125_v31 = vpack.c.bf16 %v1119_v19, %v1119_v19 }
 0x285   : > { %v1124_v8 = vpack.c.bf16 %v1117_v28, %v1117_v28  ;;  %1349 = vmatpush.bf16.msrb.mxu2 %v1340_v30 }
 0x286   : > { %v1302_v20 = vsel %vm1281_vm7, %v1125_v31, 0 }
 0x287   : > { %v1283_v22 = vsel %vm1281_vm7, %v1124_v8, 0  ;;  %1311 = vmatpush.bf16.msra.mxu0 %v1302_v20 }
 0x288   : > { %1292 = vmatpush.bf16.msrb.mxu3 %v1283_v22 }
 0x2f9   : > { %v1183_v34 = vpop.f32.mrf.mxu1 }
 0x2fa   : > { %v1184_v36 = vadd.f32 %v1183_v34, %v1128_v32 }
 0x2fb   : > { %v1164_v37 = vpop.f32.mrf.mxu0 }
 0x2fc   : > { %v1212_v38 = vsel %vm1129_vm6, %v1184_v36, -inf  ;;  %v1165_v49 = vadd.f32 %v1164_v37, %v1128_v32 }
 0x2fd   : > { %1213 = vmax.xlane.f32.xlu0 %v1212_v38 }
 0x2fe   : > { %v1209_v52 = vsel %vm1129_vm6, %v1165_v49, -inf }
 0x300   : > { %v1202_v48 = vpop.f32.mrf.mxu2 }
 0x301   : > { %v1145_v39 = vpop.f32.mrf.mxu3  ;;  %v1185_v40 = vpop.f32.mrf.mxu1  ;;  %v1203_v41 = vadd.f32 %v1202_v48, %v1128_v32 }
 0x302   : > { %v1146_v35 = vadd.f32 %v1145_v39, %v1128_v32 }
 0x303   : > { %v1215_v43 = vsel %vm1129_vm6, %v1203_v41, -inf  ;;  %v1166_v44 = vpop.f32.mrf.mxu0 }
 0x304   : > { %1216 = vmax.xlane.f32.xlu2 %v1215_v43  ;;  %v1206_v45 = vsel %vm1129_vm6, %v1146_v35, -inf }
 0x305   : > { %1207 = vmax.xlane.f32.xlu1 %v1206_v45 }
 0x308   : > { %v1204_v50 = vpop.f32.mrf.mxu2 }
 0x309   : > { %v1147_v42 = vpop.f32.mrf.mxu3 }
 0x30c   : > { %1210 = vmax.xlane.f32.xlu2 %v1209_v52 }
 0x370   : > { %v1214_v53 = vpop.xlane.xlu0 %1213 }
 0x371   : > { %v1232_v54 = vsub.f32 %v1184_v36, %v1214_v53  ;;  %v1220_v28 = vsub.f32 -inf, %v1214_v53 }
 0x373   : > { %v1236_v47 = vpack.c.bf16 %v1232_v54, %v1232_v54  ;;  %v1226_v30 = vmul.f32 1.442695, %v1220_v28 }
 0x375   : > { %v1240_v46 = vunpack.c.l.bf16 %v1236_v47 }
 0x377   : > { %v1246_v55 = vmul.f32 1.442695, %v1240_v46  ;;  %v1217_v57 = vpop.xlane.xlu2 %1216 }
 0x378   : > { %v1233_v58 = vsub.f32 %v1203_v41, %v1217_v57  ;;  %v1208_v59 = vpop.xlane.xlu1 %1207  ;;  %v1221_v19 = vsub.f32 -inf, %v1217_v57 }
 0x379   : > { %2059 = vpow2.f32 %v1246_v55  ;;  %v1230_v33 = vsub.f32 %v1146_v35, %v1208_v59  ;;  %v1218_v8 = vsub.f32 -inf, %v1208_v59 }
 0x37a   : > { %v1237_v27 = vpack.c.bf16 %v1233_v58, %v1233_v58  ;;  %v1228_v31 = vmul.f32 1.442695, %v1221_v19 }
 0x37b   : > { %v1234_v61 = vpack.c.bf16 %v1230_v33, %v1230_v33  ;;  %v1222_v22 = vmul.f32 1.442695, %v1218_v8 }
 0x37c   : > { %v1241_v62 = vunpack.c.l.bf16 %v1237_v27 }
 0x37d   : > { %v1238_v63 = vunpack.c.l.bf16 %v1234_v61 }
 0x37e   : > { %v1248_v0 = vmul.f32 1.442695, %v1241_v62 }
 0x37f   : > { %v2060_v29 = vpop.eup %2059  ;;  %v1242_v2 = vmul.f32 1.442695, %v1238_v63  ;;  %v1211_v3 = vpop.xlane.xlu2 %1210 }
 0x380   : > { %v1252_v4 = vpack.c.bf16 %v2060_v29, %v2060_v29  ;;  %2061 = vpow2.f32 %v1248_v0  ;;  %v1231_v5 = vsub.f32 %v1165_v49, %v1211_v3  ;;  %v1219_v32 = vsub.f32 -inf, %v1211_v3 }
 0x381   : > { %2063 = vpow2.f32 %v1242_v2 }
 0x382   : > { %v1235_v6 = vpack.c.bf16 %v1231_v5, %v1231_v5  ;;  %1905 = vmatmul.msk.bf16.vlgmr.msrb.gmra.mxu1 %vm1129_vm6, %v1252_v4  ;;  %v1260_v7 = vunpack.c.l.bf16 %v1252_v4  ;;  %v1224_v37 = vmul.f32 1.442695, %v1219_v32 }
 0x384   : > { %v1239_v51 = vunpack.c.l.bf16 %v1235_v6  ;;  %v1268_v10 = vsel %vm1129_vm6, %v1260_v7, 0.0 }
 0x385   : > { %1269 = vadd.xlane.f32.xlu1 %v1268_v10 }
 0x386   : > { %v2062_v11 = vpop.eup %2061  ;;  %v1244_v12 = vmul.f32 1.442695, %v1239_v51 }
 0x387   : > { %v2064_v14 = vpop.eup %2063  ;;  %v1253_v15 = vpack.c.bf16 %v2062_v11, %v2062_v11 }
 0x388   : > { %v1250_v16 = vpack.c.bf16 %v2064_v14, %v2064_v14  ;;  %2065 = vpow2.f32 %v1244_v12 }
 0x389   : > { %1906 = vmatmul.msk.bf16.vlgmr.msrb.gmra.mxu2 %vm1129_vm6, %v1253_v15  ;;  %v1261_v17 = vunpack.c.l.bf16 %v1253_v15  ;;  %2067 = vpow2.f32 %v1226_v30 }
 0x38a   : > { %1903 = vmatmul.msk.bf16.vlgmr.msrb.gmra.mxu3 %vm1129_vm6, %v1250_v16  ;;  %v1258_v18 = vunpack.c.l.bf16 %v1250_v16  ;;  %2069 = vpow2.f32 %v1228_v31 }
 0x38b   : > { %v1271_v56 = vsel %vm1129_vm6, %v1261_v17, 0.0  ;;  %2071 = vpow2.f32 %v1222_v22 }
 0x38c   : > { %1272 = vadd.xlane.f32.xlu2 %v1271_v56  ;;  %v1262_v21 = vsel %vm1129_vm6, %v1258_v18, 0.0 }
 0x38d   : > { %1263 = vadd.xlane.f32.xlu0 %v1262_v21 }
 0x38e   : > { %v2066_v23 = vpop.eup %2065 }
 0x38f   : > { %v1251_v24 = vpack.c.bf16 %v2066_v23, %v2066_v23  ;;  %v2068_v20 = vpop.eup %2067 }
 0x390   : > { %v1256_v34 = vmul.f32 0.0, %v2068_v20  ;;  %v2070_v48 = vpop.eup %2069 }
 0x391   : > { %1904 = vmatmul.msk.bf16.vlgmr.msra.gmra.mxu0 %vm1129_vm6, %v1251_v24  ;;  %v1259_v25 = vunpack.c.l.bf16 %v1251_v24  ;;  %v2072_v39 = vpop.eup %2071  ;;  %v2656_v40 = vmul.f32 0.0, %v2070_v48 }
 0x392   : > { %v1254_v43 = vmul.f32 0.0, %v2072_v39 }
 0x393   : > { %v1265_v26 = vsel %vm1129_vm6, %v1259_v25, 0.0 }
 0x394   : > { %1266 = vadd.xlane.f32.xlu1 %v1265_v26 }
 0x3f8   : > { %v1270_v36 = vpop.xlane.xlu1 %1269 }
 0x3f9   : > { %v1276_v38 = vadd.f32 %v1270_v36, %v1256_v34 }
 0x3fb   : > { %2073 = vrcp.f32 %v1276_v38  ;;  %v1396_v59 = vand.u32 2147483647, %v1276_v38  ;;  %v1398_v33 = vand.u32 2147483648, %v1276_v38  ;;  %vm1392_vm9 = vweird.f32 %v1276_v38 }
 0x3fc   : > { %2075 = vpow2.f32 %v1224_v37 }
 0x3fd   : > { %vm1397_vm11 = vcmp.eq.f32.partialorder %v1396_v59, 8.507059e+37  ;;  %v1399_v2 = vor.u32 1.1754944e-38, %v1398_v33 }
 0x3ff   : > { %v1332_v41 = vpop.f32.mrf.mxu1  ;;  %v1273_v35 = vpop.xlane.xlu2 %1272 }
 0x400   : > { %v1277_v44 = vadd.f32 %v1273_v35, %v2656_v40  ;;  %v1264_v45 = vpop.xlane.xlu0 %1263  ;;  %v1357_v15 = vadd.f32 %v1332_v41, %v1256_v34 }
 0x401   : > { %v2074_v49 = vpop.eup %2073  ;;  %v1274_v50 = vadd.f32 %v1264_v45, %v1254_v43 }
 0x402   : > { %v1388_v42 = vmul.f32 %v2074_v49, %v1276_v38  ;;  %2077 = vrcp.f32 %v1277_v44  ;;  %v2076_v52 = vpop.eup %2075  ;;  %vm1393_vm8 = vweird.f32 %v2074_v49  ;;  %v1412_v12 = vand.u32 2147483648, %v1277_v44 }
 0x403   : > { %2079 = vrcp.f32 %v1274_v50  ;;  %v2659_v47 = vmul.f32 0.0, %v2076_v52  ;;  %vm1394_vm10 = vmor %vm1392_vm9, %vm1393_vm8  ;;  %v1368_v6 = vand.u32 2147483647, %v1274_v50  ;;  %v1370_v7 = vand.u32 2147483648, %v1274_v50 }
 0x404   : > { %v1389_v53 = vsub.f32 1.0, %v1388_v42  ;;  %vm1406_vm14 = vweird.f32 %v1277_v44  ;;  %v1410_v17 = vand.u32 2147483647, %v1277_v44  ;;  %vm1364_vm15 = vweird.f32 %v1274_v50 }
 0x405   : > { %v1371_v24 = vor.u32 1.1754944e-38, %v1370_v7  ;;  %vm1369_vm3 = vcmp.eq.f32.partialorder %v1368_v6, 8.507059e+37  ;;  %v1413_v30 = vor.u32 1.1754944e-38, %v1412_v12 }
 0x406   : > { %v1390_v54 = vmul.f32 %v2074_v49, %v1389_v53  ;;  %vm1411_vm4 = vcmp.eq.f32.partialorder %v1410_v17, 8.507059e+37 }
 0x407   : > { %v1334_v46 = vpop.f32.mrf.mxu1  ;;  %v1267_v55 = vpop.xlane.xlu1 %1266 }
 0x408   : > { %v2078_v57 = vpop.eup %2077  ;;  %v1391_v58 = vadd.f32 %v2074_v49, %v1390_v54  ;;  %v2662_v27 = vadd.f32 %v1267_v55, %v2659_v47 }
 0x409   : > { %v2080_v61 = vpop.eup %2079  ;;  %v1402_v62 = vmul.f32 %v2078_v57, %v1277_v44  ;;  %vm1407_vm12 = vweird.f32 %v2078_v57 }
 0x40a   : > { %v1360_v63 = vmul.f32 %v2080_v61, %v1274_v50  ;;  %2081 = vrcp.f32 %v2662_v27  ;;  %v1395_v0 = vsel %vm1394_vm10, %v2074_v49, %v1391_v58  ;;  %vm1365_vm13 = vweird.f32 %v2080_v61  ;;  %vm1408_vm1 = vmor %vm1406_vm14, %vm1407_vm12 }
 0x40b   : > { %v1403_v29 = vsub.f32 1.0, %v1402_v62  ;;  %v1400_v10 = vsel %vm1397_vm11, %v1399_v2, %v1395_v0  ;;  %vm1366_vm2 = vmor %vm1364_vm15, %vm1365_vm13  ;;  %v1382_v20 = vand.u32 2147483647, %v2662_v27  ;;  %v1384_v32 = vand.u32 2147483648, %v2662_v27 }
 0x40c   : > { %v1361_v3 = vsub.f32 1.0, %v1360_v63  ;;  %v1351_v4 = vpop.f32.mrf.mxu2  ;;  %v1417_v21 = vmul.f32 %v1400_v10, %v1357_v15  ;;  %vm1378_vm8 = vweird.f32 %v2662_v27  ;;  %vm1542_vm11 = vcmask 130048  }
 0x40d   : > { %v1294_v5 = vpop.f32.mrf.mxu3  ;;  %v1404_v51 = vmul.f32 %v2078_v57, %v1403_v29  ;;  %v1358_v37 = vadd.f32 %v1351_v4, %v2656_v40  ;;  %v1385_v45 = vor.u32 1.1754944e-38, %v1384_v32  ;;  %vm1383_vm10 = vcmp.eq.f32.partialorder %v1382_v20, 8.507059e+37 }
 0x40e   : > { %v1362_v11 = vmul.f32 %v2080_v61, %v1361_v3  ;;  %v1313_v14 = vpop.f32.mrf.mxu0  ;;  %v1355_v26 = vadd.f32 %v1294_v5, %v1254_v43  ;;  %v1419_v36 = vrot.slane %v1417_v21, 4  ;;  %vm1544_vm12 = vcmask 195584  }
 0x40f   : > { %v1405_v16 = vadd.f32 %v2078_v57, %v1404_v51  ;;  %v1356_v50 = vadd.f32 %v1313_v14, %v2659_v47 }
 0x410   : > { %v2082_v18 = vpop.eup %2081  ;;  %v1363_v56 = vadd.f32 %v2080_v61, %v1362_v11 }
 0x411   : > { %v1374_v23 = vmul.f32 %v2082_v18, %v2662_v27  ;;  %v1409_v25 = vsel %vm1408_vm1, %v2078_v57, %v1405_v16  ;;  %vm1379_vm7 = vweird.f32 %v2082_v18 }
 0x412   : > { %v1367_v28 = vsel %vm1366_vm2, %v2080_v61, %v1363_v56  ;;  %v1414_v22 = vsel %vm1411_vm4, %v1413_v30, %v1409_v25  ;;  %vm1380_vm9 = vmor %vm1378_vm8, %vm1379_vm7 }
 0x413   : > { %v1375_v19 = vsub.f32 1.0, %v1374_v23  ;;  %v1372_v8 = vsel %vm1369_vm3, %v1371_v24, %v1367_v28  ;;  %v1418_v43 = vmul.f32 %v1414_v22, %v1358_v37 }
 0x414   : > { %v1415_v31 = vmul.f32 %v1372_v8, %v1355_v26  ;;  %v1353_v34 = vpop.f32.mrf.mxu2 }
 0x415   : > { %v1376_v38 = vmul.f32 %v2082_v18, %v1375_v19  ;;  %v1296_v48 = vpop.f32.mrf.mxu3  ;;  %v1431_v53 = vrot.slane %v1418_v43, 4 }
 0x416   : > { %v1421_v39 = vrot.slane %v1415_v31, 4  ;;  %v1315_v41 = vpop.f32.mrf.mxu0  ;;  %v1420_v35 = vsel %vm766_vm5, %v1419_v36, %v1415_v31 }
 0x417   : > { %v1377_v44 = vadd.f32 %v2082_v18, %v1376_v38  ;;  %v1426_v40 = vperm.slane %v1420_v35, %v2485_v60 }
 0x418   : > { %v1422_v49 = vsel %vm766_vm5, %v1417_v21, %v1421_v39 }
 0x419   : > { %v1381_v42 = vsel %vm1380_vm9, %v2082_v18, %v1377_v44  ;;  %v1430_v46 = vperm.slane %v1422_v49, %v2485_v60  ;;  %v1445_v58 = vrot.slane %v1426_v40, 4 }
 0x41a   : > { %v1386_v52 = vsel %vm1383_vm10, %v1385_v45, %v1381_v42  ;;  %v1968_v42 = vld [vmem:[%s2820_s10 + $0x8] sm:$0xff] }
 0x41b   : > { %v1416_v54 = vmul.f32 %v1386_v52, %v1356_v50  ;;  %v1457_v27 = vrot.slane %v1430_v46, 4  ;;  %1576 = vmatpush.bf16.msra.mxu3 %v1968_v42 }
 0x41d   : > { %v1432_v55 = vsel %vm766_vm5, %v1431_v53, %v1416_v54  ;;  %v1433_v57 = vrot.slane %v1416_v54, 4 }
 0x41e   : > { %v1438_v59 = vperm.slane %v1432_v55, %v2485_v60 }
 0x41f   : > { %v1434_v33 = vsel %vm766_vm5, %v1418_v43, %v1433_v57 }
 0x420   : > { %v1442_v47 = vperm.slane %v1434_v33, %v2485_v60  ;;  %v1443_v61 = vrot.slane %v1438_v59, 4  ;;  %v1446_v62 = vsel %vm766_vm5, %v1438_v59, %v1445_v58  ;;  %v2050_v58 = vld [vmem:[%s2821_s11] ss:$0 sm:$0xff] }
 0x421   : > { %v1454_v63 = vperm.slane %v1446_v62, %v2492_v13 }
 0x422   : > { %v1444_v0 = vsel %vm766_vm5, %v1443_v61, %v1426_v40  ;;  %v1455_v29 = vrot.slane %v1442_v47, 4  ;;  %v1458_v2 = vsel %vm766_vm5, %v1442_v47, %v1457_v27 }
 0x423   : > { %v1450_v3 = vperm.slane %v1444_v0, %v2492_v13  ;;  %v1466_v4 = vperm.slane %v1458_v2, %v2492_v13  ;;  %v1469_v5 = vrot.slane %v1454_v63, 4 }
 0x424   : > { %v1456_v6 = vsel %vm766_vm5, %v1455_v29, %v1430_v46 }
 0x425   : > { %v1462_v7 = vperm.slane %v1456_v6, %v2492_v13  ;;  %v1467_v51 = vrot.slane %v1450_v3, 4  ;;  %v1470_v10 = vsel %vm766_vm5, 0.0, %v1469_v5  ;;  %v1473_v11 = vrot.slane %v1466_v4, 4 }
 0x426   : > { %v1480_v12 = vrot.slane %v1470_v10, 4  ;;  %v1475_v14 = vsel %vm766_vm5, %v1469_v5, %v1450_v3  ;;  %v1970_v3 = vld [vmem:[%s2824_s14 + $0x8] sm:$0xff] }
 0x427   : > { %v1468_v15 = vsel %vm766_vm5, 0.0, %v1467_v51  ;;  %v1471_v16 = vrot.slane %v1462_v7, 4  ;;  %v1474_v17 = vsel %vm766_vm5, 0.0, %v1473_v11  ;;  %v1479_v18 = vperm.slane %v1475_v14, %v2485_v60  ;;  %1646 = vmatpush.bf16.msrb.mxu0 %v1970_v3 }
 0x428   : > { %v1481_v56 = vsel %vm766_vm5, %v1480_v12, %v1468_v15  ;;  %v1486_v21 = vsel %vm766_vm5, %v1473_v11, %v1462_v7  ;;  %v1491_v23 = vrot.slane %v1474_v17, 4  ;;  %v2051_v15 = vld [vmem:[%s2822_s12] ss:$0 sm:$0xff] }
 0x429   : > { %v1472_v24 = vsel %vm766_vm5, 0.0, %v1471_v16  ;;  %v1485_v25 = vperm.slane %v1481_v56, %v2485_v60  ;;  %v1490_v26 = vperm.slane %v1486_v21, %v2485_v60  ;;  %v1499_v28 = vrot.slane %v1479_v18, 4 }
 0x42a   : > { %v1492_v30 = vsel %vm766_vm5, %v1491_v23, %v1472_v24  ;;  %v2053_v23 = vld [vmem:[%s2860_s21] ss:$0 sm:$0xff]  ;;  %v1978_v24 = vld [vmem:[%s2861_s27 + $0x38] sm:$0xff]  ;;  %s2864_s21 = sld [smem:[#allocation23_spill]]  ;;  %s607_s27 = scalar_lea.vmem [#allocation7], %s1869_s26 }
 0x42b   : > { %v1496_v19 = vperm.slane %v1492_v30, %v2485_v60  ;;  %v1500_v8 = vsel %vm766_vm5, %v1485_v25, %v1499_v28  ;;  %v1511_v31 = vrot.slane %v1490_v26, 4  ;;  %v1497_v22 = vrot.slane %v1485_v25, 4  ;;  %1749 = vmatpush.bf16.msra.mxu1 %v1978_v24  ;;  %v1977_v28 = vld [vmem:[%s2862_s19 + $0x30] sm:$0xff]  ;;  %s1779_s16 = sshll.u32 %s607_s27, 4  ;;  %s1780_s16 = int_to_ptr.vmem [resolvable:$true] %s1779_s16 }
 0x42c   : > { %v1508_v20 = vperm.slane %v1500_v8, %v2492_v13  ;;  %v1976_v8 = vld [vmem:[%s2862_s19 + $0x28] sm:$0xff] }
 0x42d   : > { %v1512_v32 = vsel %vm766_vm5, %v1496_v19, %v1511_v31  ;;  %v1498_v34 = vsel %vm766_vm5, %v1497_v22, %v1479_v18  ;;  %v1509_v36 = vrot.slane %v1496_v19, 4  ;;  %v1975_v22 = vld [vmem:[%s2862_s19 + $0x20] sm:$0xff] }
 0x42e   : > { %v1520_v37 = vperm.slane %v1512_v32, %v2492_v13  ;;  %v1527_v38 = vrot.slane %v1508_v20, 4  ;;  %v1504_v48 = vperm.slane %v1498_v34, %v2492_v13 }
 0x42f   : > { %v1510_v39 = vsel %vm766_vm5, %v1509_v36, %v1490_v26  ;;  %1750 = vmatpush.bf16.msra.mxu1 %v1977_v28  ;;  %v1974_v36 = vld [vmem:[%s2862_s19 + $0x18] sm:$0xff] }
 0x430   : > { %v1528_v60 = vsel %vm766_vm5, %v1520_v37, %v1527_v38  ;;  %v1525_v41 = vrot.slane %v1520_v37, 4  ;;  %v1516_v35 = vperm.slane %v1510_v39, %v2492_v13  ;;  %v1523_v43 = vrot.slane %v1504_v48, 4  ;;  %v1967_v13 = vld [vmem:[%s2820_s10] sm:$0xff] }
 0x431   : > { %1538 = vrot.lane.b32.xlu1 %v1528_v60, %s2226_s1  ;;  %1577 = vmatpush.bf16.msra.mxu3 %v1967_v13  ;;  %s1958_s1 = sshll.u32 %s2345_s0, 2  ;;  %s1767_s0 = scalar_lea.sflag [#allocation4], %s2417_s25 }
 0x432   : > { %v1526_v44 = vsel %vm766_vm5, %v1525_v41, %v1508_v20  ;;  %v1521_v45 = vrot.slane %v1516_v35, 4  ;;  %v1524_v49 = vsel %vm766_vm5, %v1516_v35, %v1523_v43  ;;  %v1972_v41 = vld [vmem:[%s2862_s19 + $0x8] sm:$0xff]  ;;  %s1777_s17 = scalar_lea.hbm %s2864_s21, %s1958_s1 }
 0x433   : > { %1534 = vrot.lane.b32.xlu2 %v1526_v44, %s2227_s20  ;;  %1530 = vrot.lane.b32.xlu0 %v1524_v49, %s2228_s24  ;;  %v1971_v44 = vld [vmem:[%s2862_s19] sm:$0xff]  ;;  %s1781_s29 = sshll.u32 %s1777_s17, 4  ;;  %s1782_s29 = int_to_ptr.hbm [resolvable:$true] %s1781_s29 }
 0x434   : > { %v1522_v50 = vsel %vm766_vm5, %v1521_v45, %v1504_v48  ;;  %1751 = vmatpush.bf16.msra.mxu1 %v1976_v8  ;;  %v1973_v48 = vld [vmem:[%s2862_s19 + $0x10] sm:$0xff]  ;;  %s2161_s20 = sshra.s32 %s1782_s29, 4  ;;  %s2162_s20 = int_to_ptr.hbm [resolvable:$true] %s2161_s20 }
 0x435   : > { %s2163_s24 = scalar_lea.hbm %s2162_s20, 4  ;;  %p2168_p9 = scmp.lt.s32.totalorder %s2162_s20, %s2864_s21 }
 0x436   : > { %p2164_p1 = scmp.ne.s32.totalorder %s2162_s20, %s2163_s24 }
 0x438   : > { %1752 = vmatpush.bf16.msra.mxu1 %v1975_v22  ;;  %p2165_p4 = pnand %p2164_p1, %p2390_p3 }
 0x43a   : > { %p2166_p8 = pneg %p2165_p4 }
 0x43c   : > { %1753 = vmatpush.bf16.msra.mxu1 %v1974_v36 }
 0x440   : > { %1754 = vmatpush.bf16.msra.mxu1 %v1973_v48 }
 0x444   : > { %1755 = vmatpush.bf16.msra.mxu1 %v1972_v41 }
 0x448   : > { %1756 = vmatpush.bf16.msra.mxu1 %v1971_v44 }
 0x48d   : > { %v1535_v52 = vpop.permute.xlu2 %1534 }
 0x4a3   : > { %v1539_v54 = vpop.permute.xlu1 %1538 }
 0x4a5   : > { %v1531_v40 = vpop.permute.xlu0 %1530 }
 0x4a6   : > { %v1541_v53 = vsel %vm1129_vm6, %v1522_v50, %v1531_v40 }
 0x4a7   : > { %v1543_v46 = vsel %vm1542_vm11, %v1541_v53, %v1535_v52 }
 0x4a8   : > { %v1545_v55 = vsel %vm1544_vm12, %v1543_v46, %v1539_v54 }
 0x4a9   : > { %v1546_v57 = vpack.c.bf16 %v1545_v55, %v1545_v55 }
 0x4ab   : > { %1915 = vmatmul.msk.bf16.vlgmr.msra.gmra.mxu3 %vm613_vm0, %v1546_v57 }
 0x52e   : > { %v1579_v59 = vpop.f32.mrf.mxu3 }
 0x52f   : > { %v1580_v33 = vadd.f32 %v2050_v58, %v1579_v59 }
 0x531   : > { %v2723_v27 = vadd.f32 %v1580_v33, %v2431_v1  ;;  %v1969_v1 = vld [vmem:[%s2824_s14] sm:$0xff] }
 0x532   : > { %1647 = vmatpush.bf16.msrb.mxu0 %v1969_v1 }
 0x533   : > { %v1586_v47 = vsel %vm613_vm0, %v2723_v27, 0.0 }
 0x534   : > { %1587 = vadd.xlane.f32.xlu0 %v1586_v47 }
 0x536   : > { %v1581_v61 = vpop.f32.mrf.mxu3 }
 0x5a7   : > { %v1588_v62 = vpop.xlane.xlu0 %1587 }
 0x5a8   : > { %v1589_v63 = vmul.f32 %v1588_v62, %v2435_v9  ;;  %v2054_v62 = vld [vmem:[%s2863_s2] ss:$0 sm:$0xff]  ;;  %s2167_s2 = scalar_lea.hbm %s2864_s21, 8 }
 0x5a9   : > { %p2169_p10 = scmp.lt.s32.totalorder %s2167_s2, %s2163_s24 }
 0x5aa   : > { %v1590_v0 = vsub.f32 %v2723_v27, %v1589_v63 }
 0x5ab   : > { %p2170_p2 = por %p2169_p10, %p2168_p9 }
 0x5ac   : > { %v1591_v29 = vmul.f32 %v1590_v0, %v1590_v0 }
 0x5ad   : > { %p2171_p11 = pnand %p2170_p2, %p2166_p8 }
 0x5ae   : > { %v1592_v2 = vsel %vm613_vm0, %v1591_v29, 0.0 }
 0x5af   : > { %1593 = vadd.xlane.f32.xlu2 %v1592_v2 }
 0x622   : > { %v1594_v4 = vpop.xlane.xlu2 %1593 }
 0x623   : > { %v1595_v5 = vmul.f32 %v1594_v4, %v2435_v9  ;;  %v2052_v9 = vld [vmem:[%s2823_s13] ss:$0 sm:$0xff] }
 0x625   : > { %v1596_v6 = vadd.f32 1e-05, %v1595_v5 }
 0x627   : > { %2083 = vrsqrt.f32 %v1596_v6  ;;  %vm1603_vm6 = vweird.f32 %v1596_v6 }
 0x62d   : > { %v2084_v7 = vpop.eup %2083 }
 0x62e   : > { %v1598_v51 = vmul.f32 %v2084_v7, %v1596_v6  ;;  %vm1604_vm5 = vweird.f32 %v2084_v7 }
 0x62f   : > { %vm1605_vm13 = vmor %vm1603_vm6, %vm1604_vm5 }
 0x630   : > { %v1599_v10 = vmul.f32 %v2084_v7, %v1598_v51 }
 0x632   : > { %v1600_v11 = vmul.f32 0.5, %v1599_v10 }
 0x634   : > { %v1601_v12 = vsub.f32 1.5, %v1600_v11 }
 0x636   : > { %v1602_v14 = vmul.f32 %v2084_v7, %v1601_v12 }
 0x638   : > { %v1606_v16 = vsel %vm1605_vm13, %v2084_v7, %v1602_v14 }
 0x639   : > { %v1607_v17 = vmul.f32 %v1606_v16, %v1590_v0 }
 0x63b   : > { %v1611_v18 = vmul.f32 %v2051_v15, %v1607_v17 }
 0x63d   : > { %v1615_v56 = vadd.f32 %v2052_v9, %v1611_v18 }
 0x63f   : > { %v1616_v21 = vpack.c.bf16 %v1615_v56, %v1615_v56 }
 0x641   : > { %1924 = vmatmul.msk.bf16.vlgmr.msrb.gmra.mxu0 %vm613_vm0, %v1616_v21  ;;  %vm1764_vm0 = vcmask 257024  }
 0x6be   : > { %v1649_v25 = vpop.f32.mrf.mxu0 }
 0x6bf   : > { %v1650_v26 = vadd.f32 %v2053_v23, %v1649_v25 }
 0x6c1   : > { %v1653_v30 = vpack.c.bf16 %v1650_v26, %v1650_v26 }
 0x6c3   : > { %v1654_v19 = vunpack.c.l.bf16 %v1653_v30 }
 0x6c5   : > { %v1657_v31 = vmul.f32 %v1654_v19, %v1654_v19  ;;  %v1655_v53 = vmul.f32 0.5, %v1654_v19 }
 0x6c6   : > { %v1651_v20 = vpop.f32.mrf.mxu0 }
 0x6c7   : > { %v1658_v32 = vpack.c.bf16 %v1657_v31, %v1657_v31  ;;  %v1656_v55 = vpack.c.bf16 %v1655_v53, %v1655_v53 }
 0x6c9   : > { %v1659_v34 = vunpack.c.l.bf16 %v1658_v32  ;;  %v1677_v59 = vunpack.c.l.bf16 %v1656_v55 }
 0x6cb   : > { %v1660_v37 = vmul.f32 %v1659_v34, %v1654_v19 }
 0x6cd   : > { %v1661_v38 = vpack.c.bf16 %v1660_v37, %v1660_v37 }
 0x6cf   : > { %v1662_v39 = vunpack.c.l.bf16 %v1661_v38 }
 0x6d1   : > { %v1663_v60 = vmul.f32 0.044677734, %v1662_v39 }
 0x6d3   : > { %v1664_v35 = vpack.c.bf16 %v1663_v60, %v1663_v60 }
 0x6d5   : > { %v1665_v43 = vunpack.c.l.bf16 %v1664_v35 }
 0x6d7   : > { %v1666_v45 = vadd.f32 %v1665_v43, %v1654_v19 }
 0x6d9   : > { %v1667_v49 = vpack.c.bf16 %v1666_v45, %v1666_v45 }
 0x6db   : > { %v1668_v50 = vunpack.c.l.bf16 %v1667_v49 }
 0x6dd   : > { %v1669_v42 = vmul.f32 0.796875, %v1668_v50 }
 0x6df   : > { %v1670_v13 = vpack.c.bf16 %v1669_v42, %v1669_v42 }
 0x6e1   : > { %v1671_v40 = vunpack.c.l.bf16 %v1670_v13 }
 0x6e3   : > { %2085 = vtanh.f32 %v1671_v40 }
 0x6e9   : > { %v2086_v52 = vpop.eup %2085 }
 0x6ea   : > { %v1673_v54 = vpack.c.bf16 %v2086_v52, %v2086_v52 }
 0x6ec   : > { %v1674_v46 = vunpack.c.l.bf16 %v1673_v54 }
 0x6ee   : > { %v1675_v57 = vadd.f32 1.0, %v1674_v46 }
 0x6f0   : > { %v1676_v58 = vpack.c.bf16 %v1675_v57, %v1675_v57 }
 0x6f2   : > { %v1678_v33 = vunpack.c.l.bf16 %v1676_v58 }
 0x6f4   : > { %v1679_v47 = vmul.f32 %v1678_v33, %v1677_v59 }
 0x6f6   : > { %v1680_v61 = vpack.c.bf16 %v1679_v47, %v1679_v47 }
 0x6f8   : > { %1757 = vmatmul.bf16.vlgmr.msra.gmra.mxu1 %v1680_v61 }
 0x775   : > { %v1758_v63 = vpop.f32.mrf.mxu1 }
 0x776   : > { %v1759_v0 = vadd.f32 %v2054_v62, %v1758_v63 }
 0x778   : > { %v1762_v29 = vadd.f32 %v1759_v0, %v2723_v27 }
 0x77a   : > { %v1763_v2 = vpack.c.bf16 %v1762_v29, %v1762_v29 }
 0x77c   : > { %1765 = vst.msk [vmem:[%s607_s27] sm:$0xf] %vm1764_vm0, %v1763_v2 }
 0x77d   : > { %v1760_v3 = vpop.f32.mrf.mxu1 }
 0x77e   : > { %2174 = shalt.err (!%p2171_p11)
}
 0x77f   : > { %1985 = dma.vmem_to_hbm [thread:$0]  (%p2390_p3), %s1780_s16, 64, %s1782_s29, %s1767_s0  }
 0x780 PF: > { %s2866_s25 = sld [smem:[#allocation11_spill]]  ;;  %p2868_p12 = scmp.ge.s32.totalorder %s2217_s30, 2 }
 0x782   : > { %p1996_p13 = pnand %p2868_p12, %p2359_p6 }
 0x784   : > { %p1997_p0 = pneg %p1996_p13 }
 0x786   : > { %s1793_s27 = sand.u32 1, %s2866_s25  }
 0x787   : > { %s1794_s1 = scalar_lea.sflag [#allocation4], %s1793_s27 }
 0x788   : > { %2200 = dma.done.wait (%p1997_p0), %s1794_s1, 64  }
 0x789   : > { %2202 = vsyncadd (%p1997_p0), %s1794_s1, 4294967232  ;;  %s2869_s30 = sld [smem:[#allocation14_spill]]  ;;  %s2872_s27 = smov %s2209_s28 }
 0x78a   : > { %s2870_s20 = sld [smem:[#allocation12_spill]] }
 0x78b   : > { %s2871_s29 = sld [smem:[#allocation15_spill]] }
 0x78f   : > { %p32_p5 = scmp.ge.s32.totalorder %s2869_s30, 4  }
 0x790   : > { %s2873_s28 = smov %s2870_s20 }
 0x791   :  { %34 = sbr.rel (!%p32_p5) target bundleno = 14 (0xe), region = 141 }
 0x796   :  { %1800 = vsyncpa [#allocation3], 1 }
 0x797   :  { %1802 = vsyncpa [#allocation3 + $0x1], 1 }
 0x798   :  { %1803 = vsyncpa [#allocation6], 1 }
 0x799   :  { %1804 = vsyncpa [#allocation4], 1 }
 0x79a   :  { %1806 = vsyncpa [#allocation4 + $0x1], 1 }

// kernel: tpu_custom_call.1
= control target key start
LH: loop header
LB: loop body
LE: loop exit
PB: predicated region body
PF: predicated region fallthrough
CT: control target
= control target key end

     0   :  { %s2810_s0 = inlined_call_operand.hbm [shape: bf16[2,8,32], index: 0, kind: input, shape index: {}]   ;;  %s2811_s1 = inlined_call_operand.hbm [shape: f32[8,8], index: 1, kind: input, shape index: {}]   ;;  %s2812_s2 = inlined_call_operand.vmem [shape: f32[1,32], index: 2, kind: input, shape index: {}]   ;;  %s2813_s3 = inlined_call_operand.vmem [shape: f32[1,32], index: 3, kind: input, shape index: {}]   ;;  %s2814_s4 = inlined_call_operand.vmem [shape: bf16[32,32], index: 4, kind: input, shape index: {}]   ;;  %s2815_s5 = inlined_call_operand.vmem [shape: f32[1,32], index: 5, kind: input, shape index: {}]   ;;  %s2816_s6 = inlined_call_operand.vmem [shape: bf16[32,32], index: 6, kind: input, shape index: {}]   ;;  %s2817_s7 = inlined_call_operand.vmem [shape: f32[1,32], index: 7, kind: input, shape index: {}]   ;;  %s2818_s8 = inlined_call_operand.vmem [shape: bf16[32,32], index: 8, kind: input, shape index: {}]   ;;  %s2819_s9 = inlined_call_operand.vmem [shape: f32[1,32], index: 9, kind: input, shape index: {}]   ;;  %s2820_s10 = inlined_call_operand.vmem [shape: bf16[32,32], index: 10, kind: input, shape index: {}]   ;;  %s2821_s11 = inlined_call_operand.vmem [shape: f32[1,32], index: 11, kind: input, shape index: {}]   ;;  %s2822_s12 = inlined_call_operand.vmem [shape: f32[1,32], index: 12, kind: input, shape index: {}]   ;;  %s2823_s13 = inlined_call_operand.vmem [shape: f32[1,32], index: 13, kind: input, shape index: {}]   ;;  %s2824_s14 = inlined_call_operand.vmem [shape: bf16[32,128], index: 14, kind: input, shape index: {}]   ;;  %s2825_s15 = inlined_call_operand.vmem [shape: f32[1,128], index: 15, kind: input, shape index: {}]   ;;  %s2826_s16 = inlined_call_operand.vmem [shape: bf16[128,32], index: 16, kind: input, shape index: {}]   ;;  %s2827_s17 = inlined_call_operand.vmem [shape: f32[1,32], index: 17, kind: input, shape index: {}]   ;;  %s2828_s18 = inlined_call_operand.hbm [shape: bf16[2,8,32], index: 18, kind: output, shape index: {}]  }
   0x1   :  { %2839 = sst [smem:[#allocation17_spill]] %s2810_s0 }
   0x2   :  { %2840 = sst [smem:[#allocation18_spill]] %s2811_s1 }
   0x3   :  { %2841 = sst [smem:[#allocation19_spill]] %s2812_s2 }
   0x4   :  { %2842 = sst [smem:[#allocation20_spill]] %s2825_s15 }
   0x5   :  { %2843 = sst [smem:[#allocation21_spill]] %s2826_s16 }
   0x6   :  { %2844 = sst [smem:[#allocation22_spill]] %s2827_s17 }
   0x7   :  { %2845 = sst [smem:[#allocation23_spill]] %s2828_s18 }
   0x8   :  { %23 = vsyncpa [#allocation3], 0 }
   0x9   :  { %25 = vsyncpa [#allocation3 + $0x1], 0 }
   0xa   :  { %26 = vsyncpa [#allocation6], 0 }
   0xb   :  { %27 = vsyncpa [#allocation4], 0 }
   0xc   :  { %29 = vsyncpa [#allocation4 + $0x1], 0  ;;  %s2324_s27 = smov 0   ;;  %s2326_s28 = smov 0  }
   0xd   :  { %s2328_s29 = smov 0   ;;  %s2330_s30 = smov 0  }
   0xe LB: > { %2846 = sst [smem:[#allocation11_spill]] %s2205_s27  ;;  %s2345_s0 = sadd.s32 4294967295, %s2217_s30   ;;  %s2217_s30 = sphi %s2330_s30, %s2869_s30   ;;  %s2213_s29 = sphi %s2328_s29, %s2871_s29   ;;  %s2209_s28 = sphi %s2326_s28, %s2873_s28   ;;  %s2205_s27 = sphi %s2324_s27, %s2872_s27  }
   0xf   : > { %2847 = sst [smem:[#allocation12_spill]] %s2213_s29  ;;  %s1862_s19 = sadd.s32 4294967294, %s2217_s30  }
  0x10   : > { %p55_p0 = scmp.ne.s32.totalorder %s2209_s28, %s2205_s27  ;;  %p56_p1 = scmp.eq.s32.totalorder %s2345_s0, 0 }
  0x11   : > { %p436_p2 = scmp.eq.s32.totalorder %s2345_s0, 1  ;;  %p442_p3 = scmp.eq.s32.totalorder %s1862_s19, 1 }
  0x12   : > { %p2354_p4 = por %p56_p1, %p55_p0  ;;  %p1863_p5 = scmp.ge.s32.totalorder %s2217_s30, 1 }
  0x13   : > { %p2359_p6 = por %p442_p3, %p55_p0  ;;  %p449_p7 = scmp.lt.s32.totalorder %s2217_s30, 3 }
  0x14   : > { %s2851_s2 = sld [smem:[#allocation18_spill]]  ;;  %s2219_s25 = smov [#allocation5]  }
  0x15   : > { %s2849_s20 = scalar_select %p2359_p6, 1, 0 }
  0x16   : > { %p2367_p8 = pnand %p1863_p5, %p449_p7  ;;  %s463_s26 = sshll.u32 %s2219_s25, 4  ;;  %s464_s26 = int_to_ptr.vmem [resolvable:$true] %s463_s26 }
  0x17   : > { %2850 = sst [smem:[#allocation13_spill]] %s2849_s20  ;;  %s2377_s19 = sadd.s32 1, %s2217_s30  }
  0x18   : > { %p1987_p10 = pneg %p2367_p8  ;;  %2853 = sst [smem:[#allocation14_spill]] %s2377_s19 }
  0x19   : > { %s42_s21 = sadd.s32 1, %s2213_s29  ;;  %s39_s22 = ssub.s32 %s2217_s30, %s2377_s19 }
  0x1a   : > { %s461_s23 = sshll.u32 %s2851_s2, 4  ;;  %p1988_p11 = pnand %p1987_p10, %p56_p1  ;;  %s462_s23 = int_to_ptr.hbm [resolvable:$true] %s461_s23 }
  0x1b   : > { %p40_p12 = scmp.eq.s32.totalorder %s39_s22, 0  ;;  %p49_p13 = scmp.ne.s32.totalorder %s2213_s29, %s2209_s28 }
  0x1c   : > { %1990 = dma.hbm_to_vmem [thread:$0]  (!%p1988_p11), %s462_s23, 128, %s464_s26, [#allocation6]  }
  0x1d   : > { %p50_p0 = scmp.eq.s32.totalorder %s2217_s30, 0  ;;  %p2390_p3 = por %p436_p2, %p49_p13 }
  0x1e   : > { %s2386_s2 = scalar_select %p40_p12, %s2213_s29, %s42_s21  }
  0x1f   : > { %s2855_s20 = scalar_select %p2390_p3, 1, 0 }
  0x20   : > { %2854 = sst [smem:[#allocation15_spill]] %s2386_s2  ;;  %p2000_p5 = scmp.lt.s32.totalorder %s2217_s30, 2 }
  0x21   : > { %2856 = sst [smem:[#allocation16_spill]] %s2855_s20  ;;  %s522_s25 = sand.u32 1, %s2213_s29  }
  0x22   : > { %s1867_s27 = sshll.u32 %s2217_s30, 2  ;;  %p51_p7 = por %p50_p0, %p49_p13 }
  0x23   : > { %s1866_s18 = sshll.u32 %s522_s25, 2  ;;  %s2857_s15 = sld [smem:[#allocation17_spill]] }
  0x24   : > { %s526_s26 = scalar_lea.vmem [#allocation2], %s1866_s18  ;;  %p2400_p10 = pnand %p2000_p5, %p51_p7 }
  0x25   : > { %s534_s22 = sshll.u32 %s526_s26, 4  ;;  %s523_s2 = scalar_lea.sflag [#allocation3], %s522_s25  ;;  %s535_s22 = int_to_ptr.vmem [resolvable:$true] %s534_s22 }
  0x26   : > { %p2121_p11 = pneg %p2400_p10 }
  0x29   : > { %s530_s19 = scalar_lea.hbm %s2857_s15, %s1867_s27  ;;  %s2124_s18 = scalar_lea.hbm %s2857_s15, 8 }
  0x2a   : > { %s532_s23 = sshll.u32 %s530_s19, 4  ;;  %s533_s23 = int_to_ptr.hbm [resolvable:$true] %s532_s23 }
  0x2b   : > { %s2117_s20 = sshra.s32 %s533_s23, 4  ;;  %s2118_s20 = int_to_ptr.hbm [resolvable:$true] %s2117_s20 }
  0x2c   : > { %s2119_s29 = scalar_lea.hbm %s2118_s20, 4  ;;  %p2125_p0 = scmp.lt.s32.totalorder %s2118_s20, %s2857_s15 }
  0x2d   : > { %p2120_p2 = scmp.ne.s32.totalorder %s2118_s20, %s2119_s29  ;;  %p2126_p5 = scmp.lt.s32.totalorder %s2124_s18, %s2119_s29 }
  0x2f   : > { %p2122_p12 = pnand %p2121_p11, %p2120_p2  ;;  %p2127_p7 = por %p2126_p5, %p2125_p0 }
  0x31   : > { %p2123_p13 = pneg %p2122_p12 }
  0x33   : > { %p2128_p9 = pnand %p2127_p7, %p2123_p13 }
  0x35   : > { %2131 = shalt.err (!%p2128_p9)
}
  0x36   : > { %1994 = dma.hbm_to_vmem [thread:$0]  (!%p2400_p10), %s533_s23, 64, %s535_s22, %s523_s2  }
  0x37   : > { %543 = sbr.rel (%p2367_p8) target bundleno = 1920 (0x780), region = 92  ;;  %s2417_s25 = sand.u32 (!%p2367_p8), 1, %s2209_s28  }
  0x38   : > { %s1869_s26 = sshll.u32 (!%p2367_p8), %s2417_s25, 2  ;;  %s546_s16 = scalar_lea.sflag (!%p2367_p8), [#allocation3], %s2417_s25 }
  0x39   : > { %s549_s29 = scalar_lea.vmem (!%p2367_p8), [#allocation2], %s1869_s26 }
  0x3c   : > { %2192 = dma.done.wait (%p2354_p4), %s546_s16, 64  }
  0x3d   : > { %2194 = vsyncadd (%p2354_p4), %s546_s16, 4294967232 }
  0x3e   : > { %2196 = dma.done.wait (%p56_p1), [#allocation6], 128  }
  0x3f   : > { %2198 = vsyncadd (%p56_p1), [#allocation6], 4294967168  ;;  %vm613_vm0 = vcmask 261120   ;;  %v609_v0 = vld [vmem:[%s549_s29] sm:$0xf]  ;;  %v2220_v3 = vmov 32.0  }
  0x40   : > { %v2431_v1 = vunpack.c.l.bf16 %v609_v0  ;;  %2055 = vrcp.f32 %v2220_v3  ;;  %v1962_v15 = vld [vmem:[%s2814_s4 + $0x8] sm:$0xff]  ;;  %v1961_v17 = vld [vmem:[%s2814_s4] sm:$0xff]  ;;  %s2859_s20 = sld [smem:[#allocation19_spill]]  ;;  %s2221_s18 = smov 112   ;;  %v2224_v53 = vmov 1983009808  }
  0x41   : > { %v1964_v16 = vld [vmem:[%s2816_s6 + $0x8] sm:$0xff]  ;;  %681 = vmatpush.bf16.msra.mxu0 %v1962_v15  ;;  %v1963_v18 = vld [vmem:[%s2816_s6] sm:$0xff]  ;;  %s2222_s27 = smov 104   ;;  %s2223_s19 = smov 120   ;;  %v771_v54 = vunpack.c.l.s4 %v2224_v53  ;;  %vm766_vm5 = vcmask 1047556   ;;  %vm1129_vm6 = vcmask 64512  }
  0x42   : > { %v614_v2 = vsel %vm613_vm0, %v2431_v1, 0.0  ;;  %714 = vmatpush.bf16.msra.mxu2 %v1964_v16  ;;  %v1966_v19 = vld [vmem:[%s2818_s8 + $0x8] sm:$0xff]  ;;  %v1965_v22 = vld [vmem:[%s2818_s8] sm:$0xff]  ;;  %v2225_v0 = vmov 1934713408   ;;  %vm1281_vm7 = vcmask 1043456  }
  0x43   : > { %615 = vadd.xlane.f32.xlu0 %v614_v2  ;;  %v2046_v33 = vld [vmem:[%s2813_s3] ss:$0 sm:$0xff]  ;;  %v2485_v60 = vunpack.c.0.s8 %v771_v54  ;;  %v795_v2 = vunpack.c.l.s4 %v2225_v0  ;;  %s2226_s1 = smov 24   ;;  %s2228_s24 = smov 8  }
  0x44   : > { %v2047_v37 = vld [vmem:[%s2815_s5] ss:$0 sm:$0xff]  ;;  %s2860_s21 = sld [smem:[#allocation20_spill]] }
  0x45   : > { %682 = vmatpush.bf16.msra.mxu0 %v1961_v17  ;;  %v2048_v41 = vld [vmem:[%s2817_s7] ss:$0 sm:$0xff]  ;;  %s2863_s2 = sld [smem:[#allocation22_spill]] }
  0x46   : > { %v2056_v4 = vpop.eup %2055  ;;  %715 = vmatpush.bf16.msra.mxu2 %v1963_v18  ;;  %v2045_v30 = vld [vmem:[%s2859_s20] ss:$0 sm:$0xff]  ;;  %s2227_s20 = smov 16  }
  0x47   : > { %v618_v5 = vmul.f32 32.0, %v2056_v4  ;;  %vm622_vm1 = vweird.f32 %v2056_v4  ;;  %v2049_v46 = vld [vmem:[%s2819_s9] ss:$0 sm:$0xff] }
  0x49   : > { %v619_v6 = vsub.f32 1.0, %v618_v5 }
  0x4a   : > { %747 = vmatpush.bf16.msrb.mxu2 %v1966_v19 }
  0x4b   : > { %v620_v7 = vmul.f32 %v2056_v4, %v619_v6 }
  0x4d   : > { %v621_v8 = vadd.f32 %v2056_v4, %v620_v7 }
  0x4e   : > { %748 = vmatpush.bf16.msrb.mxu2 %v1965_v22 }
  0x4f   : > { %v2435_v9 = vsel %vm622_vm1, %v2056_v4, %v621_v8 }
  0xb6   : > { %v616_v10 = vpop.xlane.xlu0 %615 }
  0xb7   : > { %v624_v11 = vmul.f32 %v2435_v9, %v616_v10 }
  0xb9   : > { %v625_v12 = vsub.f32 %v2431_v1, %v624_v11 }
  0xbb   : > { %v626_v13 = vmul.f32 %v625_v12, %v625_v12 }
  0xbd   : > { %v627_v14 = vsel %vm613_vm0, %v626_v13, 0.0  ;;  %v2492_v13 = vunpack.c.0.s8 %v795_v2 }
  0xbe   : > { %628 = vadd.xlane.f32.xlu0 %v627_v14 }
 0x131   : > { %v629_v20 = vpop.xlane.xlu0 %628 }
 0x132   : > { %v630_v21 = vmul.f32 %v629_v20, %v2435_v9 }
 0x134   : > { %v631_v23 = vadd.f32 1e-05, %v630_v21 }
 0x136   : > { %2057 = vrsqrt.f32 %v631_v23  ;;  %vm638_vm3 = vweird.f32 %v631_v23 }
 0x13c   : > { %v2058_v24 = vpop.eup %2057 }
 0x13d   : > { %v633_v25 = vmul.f32 %v2058_v24, %v631_v23  ;;  %vm639_vm2 = vweird.f32 %v2058_v24 }
 0x13e   : > { %vm640_vm4 = vmor %vm638_vm3, %vm639_vm2 }
 0x13f   : > { %v634_v26 = vmul.f32 %v2058_v24, %v633_v25 }
 0x141   : > { %v635_v27 = vmul.f32 0.5, %v634_v26 }
 0x143   : > { %v636_v28 = vsub.f32 1.5, %v635_v27 }
 0x145   : > { %v637_v29 = vmul.f32 %v2058_v24, %v636_v28 }
 0x147   : > { %v641_v31 = vsel %vm640_vm4, %v2058_v24, %v637_v29 }
 0x148   : > { %v642_v32 = vmul.f32 %v641_v31, %v625_v12 }
 0x14a   : > { %v646_v34 = vmul.f32 %v2045_v30, %v642_v32 }
 0x14c   : > { %v650_v35 = vadd.f32 %v2046_v33, %v646_v34 }
 0x14e   : > { %v651_v36 = vpack.c.bf16 %v650_v35, %v650_v35 }
 0x150   : > { %1880 = vmatmul.msk.bf16.vlgmr.msra.gmra.mxu0 %vm613_vm0, %v651_v36  ;;  %1889 = vmatmul.msk.bf16.vlgmr.msra.gmra.mxu2 %vm613_vm0, %v651_v36 }
 0x160   : > { %1898 = vmatmul.msk.bf16.vlgmr.msrb.gmra.mxu2 %vm613_vm0, %v651_v36 }
 0x1cd   : > { %v684_v38 = vpop.f32.mrf.mxu0 }
 0x1ce   : > { %v685_v39 = vadd.f32 %v2047_v37, %v684_v38 }
 0x1d0   : > { %v754_v40 = vmul.f32 0.35355338, %v685_v39 }
 0x1d2   : > { %759 = vrot.lane.b32.xlu0 %v754_v40, %s2221_s18  ;;  %v768_v3 = vrot.slane %v754_v40, 4 }
 0x1d3   : > { %v717_v42 = vpop.f32.mrf.mxu2 }
 0x1d4   : > { %v718_v43 = vadd.f32 %v2048_v41, %v717_v42 }
 0x1d5   : > { %v686_v44 = vpop.f32.mrf.mxu0 }
 0x1d6   : > { %887 = vrot.lane.b32.xlu2 %v718_v43, %s2222_s27  ;;  %881 = vrot.lane.b32.xlu1 %v718_v43, %s2223_s19  ;;  %v892_v6 = vrot.slane %v718_v43, 4 }
 0x1db   : > { %v719_v45 = vpop.f32.mrf.mxu2 }
 0x1de   : > { %884 = vrot.lane.b32.xlu1 %v718_v43, %s2221_s18  ;;  %756 = vrot.lane.b32.xlu2 %v754_v40, %s2223_s19 }
 0x1e3   : > { %v750_v47 = vpop.f32.mrf.mxu2 }
 0x1e4   : > { %v2477_v48 = vadd.f32 %v2049_v46, %v750_v47 }
 0x1e6   : > { %762 = vrot.lane.b32.xlu1 %v754_v40, %s2222_s27  ;;  %1005 = vrot.lane.b32.xlu2 %v2477_v48, %s2223_s19  ;;  %v1016_v36 = vrot.slane %v2477_v48, 4 }
 0x1eb   : > { %v752_v49 = vpop.f32.mrf.mxu2 }
 0x1ee   : > { %1008 = vrot.lane.b32.xlu1 %v2477_v48, %s2221_s18  ;;  %1011 = vrot.lane.b32.xlu2 %v2477_v48, %s2222_s27  ;;  %s2861_s27 = sld [smem:[#allocation21_spill]] }
 0x1f4   : > { %s2862_s19 = smov %s2861_s27 }
 0x230   : > { %v888_v50 = vpop.permute.xlu2 %887 }
 0x231   : > { %v902_v58 = vrot.slane %v888_v50, 4 }
 0x238   : > { %v2482_v51 = vpop.permute.xlu2 %756 }
 0x239   : > { %v780_v37 = vrot.slane %v2482_v51, 4 }
 0x240   : > { %v1006_v52 = vpop.permute.xlu2 %1005 }
 0x241   : > { %v1028_v7 = vrot.slane %v1006_v52, 4 }
 0x244   : > { %v760_v56 = vpop.permute.xlu0 %759 }
 0x245   : > { %v765_v61 = vrot.slane %v760_v56, 4  ;;  %v769_v10 = vsel %vm766_vm5, %v760_v56, %v768_v3 }
 0x246   : > { %v777_v20 = vperm.slane %v769_v10, %v2485_v60 }
 0x247   : > { %v767_v8 = vsel %vm766_vm5, %v765_v61, %v754_v40 }
 0x248   : > { %v882_v55 = vpop.permute.xlu1 %881  ;;  %v1012_v62 = vpop.permute.xlu2 %1011  ;;  %v773_v19 = vperm.slane %v767_v8, %v2485_v60  ;;  %v804_v39 = vrot.slane %v777_v20, 4 }
 0x249   : > { %v904_v57 = vrot.slane %v882_v55, 4  ;;  %v903_v63 = vsel %vm766_vm5, %v902_v58, %v882_v55  ;;  %v1026_v5 = vrot.slane %v1012_v62, 4  ;;  %v1029_v17 = vsel %vm766_vm5, %v1012_v62, %v1028_v7 }
 0x24a   : > { %v909_v11 = vperm.slane %v903_v63, %v2485_v60  ;;  %v2504_v27 = vperm.slane %v1029_v17, %v2485_v60  ;;  %v792_v38 = vrot.slane %v773_v19, 4 }
 0x24b   : > { %v905_v59 = vsel %vm766_vm5, %v888_v50, %v904_v57  ;;  %v1027_v21 = vsel %vm766_vm5, %v1026_v5, %v1006_v52 }
 0x24c   : > { %v913_v4 = vperm.slane %v905_v59, %v2485_v60  ;;  %v914_v23 = vrot.slane %v909_v11, 4  ;;  %v2508_v29 = vperm.slane %v1027_v21, %v2485_v60  ;;  %v1050_v42 = vrot.slane %v2504_v27, 4 }
 0x24e   : > { %v926_v16 = vrot.slane %v913_v4, 4  ;;  %v1038_v46 = vrot.slane %v2508_v29, 4 }
 0x250   : > { %v885_v12 = vpop.permute.xlu1 %884 }
 0x251   : > { %v890_v14 = vrot.slane %v885_v12, 4  ;;  %v893_v15 = vsel %vm766_vm5, %v885_v12, %v892_v6 }
 0x252   : > { %v901_v18 = vperm.slane %v893_v15, %v2485_v60 }
 0x253   : > { %v891_v22 = vsel %vm766_vm5, %v890_v14, %v718_v43 }
 0x254   : > { %v897_v24 = vperm.slane %v891_v22, %v2485_v60  ;;  %v927_v25 = vsel %vm766_vm5, %v926_v16, %v901_v18  ;;  %v928_v26 = vrot.slane %v901_v18, 4 }
 0x255   : > { %v933_v28 = vperm.slane %v927_v25, %v2492_v13 }
 0x256   : > { %v915_v30 = vsel %vm766_vm5, %v914_v23, %v897_v24  ;;  %v916_v31 = vrot.slane %v897_v24, 4  ;;  %v929_v32 = vsel %vm766_vm5, %v913_v4, %v928_v26 }
 0x257   : > { %v921_v33 = vperm.slane %v915_v30, %v2492_v13  ;;  %v937_v34 = vperm.slane %v929_v32, %v2492_v13  ;;  %v942_v35 = vrot.slane %v933_v28, 4 }
 0x258   : > { %v917_v40 = vsel %vm766_vm5, %v909_v11, %v916_v31  ;;  %v763_v41 = vpop.permute.xlu1 %762 }
 0x259   : > { %v925_v43 = vperm.slane %v917_v40, %v2492_v13  ;;  %v938_v44 = vrot.slane %v921_v33, 4  ;;  %v944_v45 = vrot.slane %v937_v34, 4  ;;  %v943_v47 = vsel %vm766_vm5, 0.0, %v942_v35 }
 0x25a   : > { %v778_v49 = vrot.slane %v763_v41, 4  ;;  %v781_v50 = vsel %vm766_vm5, %v763_v41, %v780_v37 }
 0x25b   : > { %v940_v52 = vrot.slane %v925_v43, 4  ;;  %v945_v53 = vsel %vm766_vm5, 0.0, %v944_v45  ;;  %v957_v54 = vsel %vm766_vm5, %v944_v45, %v933_v28  ;;  %v789_v55 = vperm.slane %v781_v50, %v2485_v60 }
 0x25c   : > { %v2526_v56 = vperm.slane %v957_v54, %v2485_v60  ;;  %v962_v57 = vrot.slane %v945_v53, 4  ;;  %v779_v58 = vsel %vm766_vm5, %v778_v49, %v2482_v51  ;;  %v939_v59 = vsel %vm766_vm5, 0.0, %v938_v44 }
 0x25d   : > { %v941_v61 = vsel %vm766_vm5, 0.0, %v940_v52  ;;  %v785_v62 = vperm.slane %v779_v58, %v2485_v60  ;;  %v802_v63 = vrot.slane %v789_v55, 4  ;;  %v805_v0 = vsel %vm766_vm5, %v789_v55, %v804_v39 }
 0x25e   : > { %v963_v2 = vsel %vm766_vm5, %v962_v57, %v943_v47  ;;  %v813_v3 = vperm.slane %v805_v0, %v2492_v13  ;;  %v946_v4 = vsel %vm766_vm5, %v940_v52, %v921_v33  ;;  %v951_v5 = vrot.slane %v941_v61, 4 }
 0x25f   : > { %v790_v6 = vrot.slane %v785_v62, 4  ;;  %v793_v7 = vsel %vm766_vm5, %v785_v62, %v792_v38  ;;  %v803_v51 = vsel %vm766_vm5, %v802_v63, %v777_v20  ;;  %v950_v8 = vperm.slane %v946_v4, %v2485_v60 }
 0x260   : > { %v801_v10 = vperm.slane %v793_v7, %v2492_v13  ;;  %v809_v11 = vperm.slane %v803_v51, %v2492_v13  ;;  %v820_v12 = vrot.slane %v813_v3, 4  ;;  %v1009_v14 = vpop.permute.xlu1 %1008  ;;  %v952_v15 = vsel %vm766_vm5, %v951_v5, %v939_v59 }
 0x261   : > { %v791_v16 = vsel %vm766_vm5, %v790_v6, %v773_v19  ;;  %v1014_v17 = vrot.slane %v1009_v14, 4  ;;  %v1017_v18 = vsel %vm766_vm5, %v1009_v14, %v1016_v36  ;;  %v956_v21 = vperm.slane %v952_v15, %v2485_v60 }
 0x262   : > { %v797_v22 = vperm.slane %v791_v16, %v2492_v13  ;;  %v816_v20 = vrot.slane %v801_v10, 4  ;;  %v818_v23 = vrot.slane %v809_v11, 4  ;;  %v821_v24 = vsel %vm766_vm5, 0.0, %v820_v12 }
 0x263   : > { %v833_v25 = vsel %vm766_vm5, %v820_v12, %v809_v11  ;;  %v838_v26 = vrot.slane %v821_v24, 4  ;;  %v1015_v28 = vsel %vm766_vm5, %v1014_v17, %v2477_v48  ;;  %v1025_v30 = vperm.slane %v1017_v18, %v2485_v60 }
 0x264   : > { %v814_v19 = vrot.slane %v797_v22, 4  ;;  %v817_v31 = vsel %vm766_vm5, 0.0, %v816_v20  ;;  %v819_v32 = vsel %vm766_vm5, 0.0, %v818_v23  ;;  %v2555_v33 = vperm.slane %v833_v25, %v2485_v60 }
 0x265   : > { %v827_v34 = vrot.slane %v817_v31, 4  ;;  %v839_v35 = vsel %vm766_vm5, %v838_v26, %v819_v32  ;;  %v1021_v36 = vperm.slane %v1015_v28, %v2485_v60  ;;  %v1051_v37 = vsel %vm766_vm5, %v1050_v42, %v1025_v30 }
 0x266   : > { %v1052_v38 = vrot.slane %v1025_v30, 4  ;;  %v1057_v48 = vperm.slane %v1051_v37, %v2492_v13  ;;  %v967_v39 = vperm.slane %v963_v2, %v2485_v60  ;;  %v970_v40 = vrot.slane %v950_v8, 4 }
 0x267   : > { %v1039_v41 = vsel %vm766_vm5, %v1038_v46, %v1021_v36  ;;  %v1040_v43 = vrot.slane %v1021_v36, 4  ;;  %v982_v44 = vrot.slane %v2526_v56, 4  ;;  %v968_v45 = vrot.slane %v956_v21, 4 }
 0x268   : > { %v1045_v47 = vperm.slane %v1039_v41, %v2492_v13  ;;  %v1053_v49 = vsel %vm766_vm5, %v2504_v27, %v1052_v38  ;;  %v1066_v50 = vrot.slane %v1057_v48, 4  ;;  %v971_v42 = vsel %vm766_vm5, %v956_v21, %v970_v40 }
 0x269   : > { %v1041_v52 = vsel %vm766_vm5, %v2508_v29, %v1040_v43  ;;  %v1061_v53 = vperm.slane %v1053_v49, %v2492_v13  ;;  %v979_v54 = vperm.slane %v971_v42, %v2492_v13  ;;  %v983_v46 = vsel %vm766_vm5, %v967_v39, %v982_v44 }
 0x26a   : > { %v1049_v55 = vperm.slane %v1041_v52, %v2492_v13  ;;  %v1062_v57 = vrot.slane %v1045_v47, 4  ;;  %v1067_v58 = vsel %vm766_vm5, 0.0, %v1066_v50  ;;  %v991_v59 = vperm.slane %v983_v46, %v2492_v13 }
 0x26b   : > { %v1068_v27 = vrot.slane %v1061_v53, 4  ;;  %v998_v61 = vrot.slane %v979_v54, 4  ;;  %v969_v62 = vsel %vm766_vm5, %v968_v45, %v950_v8  ;;  %v980_v63 = vrot.slane %v967_v39, 4 }
 0x26c   : > { %v1064_v0 = vrot.slane %v1049_v55, 4  ;;  %v996_v29 = vrot.slane %v991_v59, 4  ;;  %v975_v2 = vperm.slane %v969_v62, %v2492_v13  ;;  %v815_v3 = vsel %vm766_vm5, 0.0, %v814_v19 }
 0x26d   : > { %v1069_v4 = vsel %vm766_vm5, 0.0, %v1068_v27  ;;  %v1081_v5 = vsel %vm766_vm5, %v1068_v27, %v1057_v48  ;;  %v981_v6 = vsel %vm766_vm5, %v980_v63, %v2526_v56  ;;  %v999_v7 = vsel %vm766_vm5, %v991_v59, %v998_v61 }
 0x26e   : > { %v1065_v51 = vsel %vm766_vm5, 0.0, %v1064_v0  ;;  %v2586_v8 = vperm.slane %v1081_v5, %v2485_v60  ;;  %v1086_v10 = vrot.slane %v1069_v4, 4  ;;  %v997_v11 = vsel %vm766_vm5, %v996_v29, %v979_v54 }
 0x26f   : > { %v1075_v12 = vrot.slane %v1065_v51, 4  ;;  %v1002_v14 = vpack.c.bf16 %v997_v11, %v997_v11  ;;  %v987_v15 = vperm.slane %v981_v6, %v2492_v13  ;;  %v1003_v16 = vpack.c.bf16 %v999_v7, %v999_v7 }
 0x270   : > { %v1087_v17 = vsel %vm766_vm5, %v1086_v10, %v1067_v58  ;;  %v994_v18 = vrot.slane %v975_v2, 4  ;;  %v822_v56 = vsel %vm766_vm5, %v816_v20, %v797_v22  ;;  %v828_v21 = vsel %vm766_vm5, %v827_v34, %v815_v3 }
 0x271   : > { %v1172_v23 = vsel %vm1129_vm6, %v1002_v14, 0  ;;  %v992_v24 = vrot.slane %v987_v15, 4  ;;  %v1191_v25 = vsel %vm1129_vm6, %v1003_v16, 0  ;;  %v826_v26 = vperm.slane %v822_v56, %v2485_v60 }
 0x272   : > { %1181 = vmatpush.bf16.xpose.msra.mxu1 %v1172_v23  ;;  %1200 = vmatpush.bf16.xpose.msra.mxu2 %v1191_v25  ;;  %v995_v28 = vsel %vm766_vm5, %v987_v15, %v994_v18  ;;  %v832_v30 = vperm.slane %v828_v21, %v2485_v60  ;;  %v843_v19 = vperm.slane %v839_v35, %v2485_v60  ;;  %v858_v31 = vrot.slane %v2555_v33, 4 }
 0x273   : > { %v993_v22 = vsel %vm766_vm5, %v992_v24, %v975_v2  ;;  %v1001_v20 = vpack.c.bf16 %v995_v28, %v995_v28  ;;  %v846_v32 = vrot.slane %v826_v26, 4  ;;  %v1063_v34 = vsel %vm766_vm5, 0.0, %v1062_v57 }
 0x274   : > { %v1000_v36 = vpack.c.bf16 %v993_v22, %v993_v22  ;;  %v859_v37 = vsel %vm766_vm5, %v843_v19, %v858_v31  ;;  %v844_v38 = vrot.slane %v832_v30, 4  ;;  %v856_v48 = vrot.slane %v843_v19, 4 }
 0x275   : > { %v1153_v39 = vsel %vm1129_vm6, %v1001_v20, 0  ;;  %v847_v40 = vsel %vm766_vm5, %v832_v30, %v846_v32  ;;  %v867_v41 = vperm.slane %v859_v37, %v2492_v13  ;;  %v1070_v35 = vsel %vm766_vm5, %v1064_v0, %v1045_v47  ;;  %v1128_v32 = vld [vmem:[#allocation5] sm:$0xff] }
 0x276   : > { %v1134_v43 = vsel %vm1129_vm6, %v1000_v36, 0  ;;  %1162 = vmatpush.bf16.xpose.msrb.mxu0 %v1153_v39  ;;  %v855_v44 = vperm.slane %v847_v40, %v2492_v13  ;;  %v845_v45 = vsel %vm766_vm5, %v844_v38, %v826_v26  ;;  %v857_v49 = vsel %vm766_vm5, %v856_v48, %v2555_v33 }
 0x277   : > { %1143 = vmatpush.bf16.xpose.msra.mxu3 %v1134_v43  ;;  %v872_v50 = vrot.slane %v867_v41, 4  ;;  %v851_v42 = vperm.slane %v845_v45, %v2492_v13  ;;  %v863_v52 = vperm.slane %v857_v49, %v2492_v13  ;;  %v1074_v53 = vperm.slane %v1070_v35, %v2485_v60 }
 0x278   : > { %v874_v54 = vrot.slane %v855_v44, 4  ;;  %v1076_v47 = vsel %vm766_vm5, %v1075_v12, %v1063_v34  ;;  %v1091_v46 = vperm.slane %v1087_v17, %v2485_v60  ;;  %v1106_v55 = vrot.slane %v2586_v8, 4 }
 0x279   : > { %v873_v57 = vsel %vm766_vm5, %v872_v50, %v855_v44  ;;  %v868_v58 = vrot.slane %v863_v52, 4  ;;  %v870_v59 = vrot.slane %v851_v42, 4  ;;  %v1080_v33 = vperm.slane %v1076_v47, %v2485_v60 }
 0x27a   : > { %v878_v27 = vpack.c.bf16 %v873_v57, %v873_v57  ;;  %v875_v61 = vsel %vm766_vm5, %v867_v41, %v874_v54  ;;  %v1094_v62 = vrot.slane %v1074_v53, 4  ;;  %v1107_v63 = vsel %vm766_vm5, %v1091_v46, %v1106_v55 }
 0x27b   : > { %v869_v0 = vsel %vm766_vm5, %v868_v58, %v851_v42  ;;  %v879_v29 = vpack.c.bf16 %v875_v61, %v875_v61  ;;  %v871_v2 = vsel %vm766_vm5, %v863_v52, %v870_v59  ;;  %v1115_v3 = vperm.slane %v1107_v63, %v2492_v13 }
 0x27c   : > { %1901 = vmatmul.msk.bf16.vlgmr.msra.gmra.mxu1 %vm1129_vm6, %v878_v27  ;;  %v876_v4 = vpack.c.bf16 %v869_v0, %v869_v0  ;;  %v877_v5 = vpack.c.bf16 %v871_v2, %v871_v2  ;;  %v1095_v6 = vsel %vm766_vm5, %v1080_v33, %v1094_v62  ;;  %v1092_v10 = vrot.slane %v1080_v33, 4 }
 0x27d   : > { %1902 = vmatmul.msk.bf16.vlgmr.msra.gmra.mxu2 %vm1129_vm6, %v879_v29  ;;  %v1103_v7 = vperm.slane %v1095_v6, %v2492_v13  ;;  %v1120_v51 = vrot.slane %v1115_v3, 4  ;;  %v1104_v11 = vrot.slane %v1091_v46, 4 }
 0x27e   : > { %1899 = vmatmul.msk.bf16.vlgmr.msra.gmra.mxu3 %vm1129_vm6, %v876_v4  ;;  %1900 = vmatmul.msk.bf16.vlgmr.msrb.gmra.mxu0 %vm1129_vm6, %v877_v5  ;;  %v1093_v15 = vsel %vm766_vm5, %v1092_v10, %v1074_v53 }
 0x27f   : > { %v1121_v12 = vsel %vm766_vm5, %v1120_v51, %v1103_v7  ;;  %v1122_v14 = vrot.slane %v1103_v7, 4  ;;  %v1105_v16 = vsel %vm766_vm5, %v1104_v11, %v2586_v8  ;;  %v1099_v18 = vperm.slane %v1093_v15, %v2492_v13 }
 0x280   : > { %v1126_v17 = vpack.c.bf16 %v1121_v12, %v1121_v12  ;;  %v1111_v56 = vperm.slane %v1105_v16, %v2492_v13 }
 0x281   : > { %v1123_v21 = vsel %vm766_vm5, %v1115_v3, %v1122_v14  ;;  %v1118_v25 = vrot.slane %v1099_v18, 4 }
 0x282   : > { %v1321_v23 = vsel %vm1281_vm7, %v1126_v17, 0  ;;  %v1116_v24 = vrot.slane %v1111_v56, 4  ;;  %v1127_v26 = vpack.c.bf16 %v1123_v21, %v1123_v21 }
 0x283   : > { %1330 = vmatpush.bf16.msrb.mxu1 %v1321_v23  ;;  %v1119_v19 = vsel %vm766_vm5, %v1111_v56, %v1118_v25 }
 0x284   : > { %v1117_v28 = vsel %vm766_vm5, %v1116_v24, %v1099_v18  ;;  %v1340_v30 = vsel %vm1281_vm7, %v1127_v26, 0  ;;  %v1125_v31 = vpack.c.bf16 %v1119_v19, %v1119_v19 }
 0x285   : > { %v1124_v8 = vpack.c.bf16 %v1117_v28, %v1117_v28  ;;  %1349 = vmatpush.bf16.msrb.mxu2 %v1340_v30 }
 0x286   : > { %v1302_v20 = vsel %vm1281_vm7, %v1125_v31, 0 }
 0x287   : > { %v1283_v22 = vsel %vm1281_vm7, %v1124_v8, 0  ;;  %1311 = vmatpush.bf16.msra.mxu0 %v1302_v20 }
 0x288   : > { %1292 = vmatpush.bf16.msrb.mxu3 %v1283_v22 }
 0x2f9   : > { %v1183_v34 = vpop.f32.mrf.mxu1 }
 0x2fa   : > { %v1184_v36 = vadd.f32 %v1183_v34, %v1128_v32 }
 0x2fb   : > { %v1164_v37 = vpop.f32.mrf.mxu0 }
 0x2fc   : > { %v1212_v38 = vsel %vm1129_vm6, %v1184_v36, -inf  ;;  %v1165_v49 = vadd.f32 %v1164_v37, %v1128_v32 }
 0x2fd   : > { %1213 = vmax.xlane.f32.xlu0 %v1212_v38 }
 0x2fe   : > { %v1209_v52 = vsel %vm1129_vm6, %v1165_v49, -inf }
 0x300   : > { %v1202_v48 = vpop.f32.mrf.mxu2 }
 0x301   : > { %v1145_v39 = vpop.f32.mrf.mxu3  ;;  %v1185_v40 = vpop.f32.mrf.mxu1  ;;  %v1203_v41 = vadd.f32 %v1202_v48, %v1128_v32 }
 0x302   : > { %v1146_v35 = vadd.f32 %v1145_v39, %v1128_v32 }
 0x303   : > { %v1215_v43 = vsel %vm1129_vm6, %v1203_v41, -inf  ;;  %v1166_v44 = vpop.f32.mrf.mxu0 }
 0x304   : > { %1216 = vmax.xlane.f32.xlu2 %v1215_v43  ;;  %v1206_v45 = vsel %vm1129_vm6, %v1146_v35, -inf }
 0x305   : > { %1207 = vmax.xlane.f32.xlu1 %v1206_v45 }
 0x308   : > { %v1204_v50 = vpop.f32.mrf.mxu2 }
 0x309   : > { %v1147_v42 = vpop.f32.mrf.mxu3 }
 0x30c   : > { %1210 = vmax.xlane.f32.xlu2 %v1209_v52 }
 0x370   : > { %v1214_v53 = vpop.xlane.xlu0 %1213 }
 0x371   : > { %v1232_v54 = vsub.f32 %v1184_v36, %v1214_v53  ;;  %v1220_v28 = vsub.f32 -inf, %v1214_v53 }
 0x373   : > { %v1236_v47 = vpack.c.bf16 %v1232_v54, %v1232_v54  ;;  %v1226_v30 = vmul.f32 1.442695, %v1220_v28 }
 0x375   : > { %v1240_v46 = vunpack.c.l.bf16 %v1236_v47 }
 0x377   : > { %v1246_v55 = vmul.f32 1.442695, %v1240_v46  ;;  %v1217_v57 = vpop.xlane.xlu2 %1216 }
 0x378   : > { %v1233_v58 = vsub.f32 %v1203_v41, %v1217_v57  ;;  %v1208_v59 = vpop.xlane.xlu1 %1207  ;;  %v1221_v19 = vsub.f32 -inf, %v1217_v57 }
 0x379   : > { %2059 = vpow2.f32 %v1246_v55  ;;  %v1230_v33 = vsub.f32 %v1146_v35, %v1208_v59  ;;  %v1218_v8 = vsub.f32 -inf, %v1208_v59 }
 0x37a   : > { %v1237_v27 = vpack.c.bf16 %v1233_v58, %v1233_v58  ;;  %v1228_v31 = vmul.f32 1.442695, %v1221_v19 }
 0x37b   : > { %v1234_v61 = vpack.c.bf16 %v1230_v33, %v1230_v33  ;;  %v1222_v22 = vmul.f32 1.442695, %v1218_v8 }
 0x37c   : > { %v1241_v62 = vunpack.c.l.bf16 %v1237_v27 }
 0x37d   : > { %v1238_v63 = vunpack.c.l.bf16 %v1234_v61 }
 0x37e   : > { %v1248_v0 = vmul.f32 1.442695, %v1241_v62 }
 0x37f   : > { %v2060_v29 = vpop.eup %2059  ;;  %v1242_v2 = vmul.f32 1.442695, %v1238_v63  ;;  %v1211_v3 = vpop.xlane.xlu2 %1210 }
 0x380   : > { %v1252_v4 = vpack.c.bf16 %v2060_v29, %v2060_v29  ;;  %2061 = vpow2.f32 %v1248_v0  ;;  %v1231_v5 = vsub.f32 %v1165_v49, %v1211_v3  ;;  %v1219_v32 = vsub.f32 -inf, %v1211_v3 }
 0x381   : > { %2063 = vpow2.f32 %v1242_v2 }
 0x382   : > { %v1235_v6 = vpack.c.bf16 %v1231_v5, %v1231_v5  ;;  %1905 = vmatmul.msk.bf16.vlgmr.msrb.gmra.mxu1 %vm1129_vm6, %v1252_v4  ;;  %v1260_v7 = vunpack.c.l.bf16 %v1252_v4  ;;  %v1224_v37 = vmul.f32 1.442695, %v1219_v32 }
 0x384   : > { %v1239_v51 = vunpack.c.l.bf16 %v1235_v6  ;;  %v1268_v10 = vsel %vm1129_vm6, %v1260_v7, 0.0 }
 0x385   : > { %1269 = vadd.xlane.f32.xlu1 %v1268_v10 }
 0x386   : > { %v2062_v11 = vpop.eup %2061  ;;  %v1244_v12 = vmul.f32 1.442695, %v1239_v51 }
 0x387   : > { %v2064_v14 = vpop.eup %2063  ;;  %v1253_v15 = vpack.c.bf16 %v2062_v11, %v2062_v11 }
 0x388   : > { %v1250_v16 = vpack.c.bf16 %v2064_v14, %v2064_v14  ;;  %2065 = vpow2.f32 %v1244_v12 }
 0x389   : > { %1906 = vmatmul.msk.bf16.vlgmr.msrb.gmra.mxu2 %vm1129_vm6, %v1253_v15  ;;  %v1261_v17 = vunpack.c.l.bf16 %v1253_v15  ;;  %2067 = vpow2.f32 %v1226_v30 }
 0x38a   : > { %1903 = vmatmul.msk.bf16.vlgmr.msrb.gmra.mxu3 %vm1129_vm6, %v1250_v16  ;;  %v1258_v18 = vunpack.c.l.bf16 %v1250_v16  ;;  %2069 = vpow2.f32 %v1228_v31 }
 0x38b   : > { %v1271_v56 = vsel %vm1129_vm6, %v1261_v17, 0.0  ;;  %2071 = vpow2.f32 %v1222_v22 }
 0x38c   : > { %1272 = vadd.xlane.f32.xlu2 %v1271_v56  ;;  %v1262_v21 = vsel %vm1129_vm6, %v1258_v18, 0.0 }
 0x38d   : > { %1263 = vadd.xlane.f32.xlu0 %v1262_v21 }
 0x38e   : > { %v2066_v23 = vpop.eup %2065 }
 0x38f   : > { %v1251_v24 = vpack.c.bf16 %v2066_v23, %v2066_v23  ;;  %v2068_v20 = vpop.eup %2067 }
 0x390   : > { %v1256_v34 = vmul.f32 0.0, %v2068_v20  ;;  %v2070_v48 = vpop.eup %2069 }
 0x391   : > { %1904 = vmatmul.msk.bf16.vlgmr.msra.gmra.mxu0 %vm1129_vm6, %v1251_v24  ;;  %v1259_v25 = vunpack.c.l.bf16 %v1251_v24  ;;  %v2072_v39 = vpop.eup %2071  ;;  %v2656_v40 = vmul.f32 0.0, %v2070_v48 }
 0x392   : > { %v1254_v43 = vmul.f32 0.0, %v2072_v39 }
 0x393   : > { %v1265_v26 = vsel %vm1129_vm6, %v1259_v25, 0.0 }
 0x394   : > { %1266 = vadd.xlane.f32.xlu1 %v1265_v26 }
 0x3f8   : > { %v1270_v36 = vpop.xlane.xlu1 %1269 }
 0x3f9   : > { %v1276_v38 = vadd.f32 %v1270_v36, %v1256_v34 }
 0x3fb   : > { %2073 = vrcp.f32 %v1276_v38  ;;  %v1396_v59 = vand.u32 2147483647, %v1276_v38  ;;  %v1398_v33 = vand.u32 2147483648, %v1276_v38  ;;  %vm1392_vm9 = vweird.f32 %v1276_v38 }
 0x3fc   : > { %2075 = vpow2.f32 %v1224_v37 }
 0x3fd   : > { %vm1397_vm11 = vcmp.eq.f32.partialorder %v1396_v59, 8.507059e+37  ;;  %v1399_v2 = vor.u32 1.1754944e-38, %v1398_v33 }
 0x3ff   : > { %v1332_v41 = vpop.f32.mrf.mxu1  ;;  %v1273_v35 = vpop.xlane.xlu2 %1272 }
 0x400   : > { %v1277_v44 = vadd.f32 %v1273_v35, %v2656_v40  ;;  %v1264_v45 = vpop.xlane.xlu0 %1263  ;;  %v1357_v15 = vadd.f32 %v1332_v41, %v1256_v34 }
 0x401   : > { %v2074_v49 = vpop.eup %2073  ;;  %v1274_v50 = vadd.f32 %v1264_v45, %v1254_v43 }
 0x402   : > { %v1388_v42 = vmul.f32 %v2074_v49, %v1276_v38  ;;  %2077 = vrcp.f32 %v1277_v44  ;;  %v2076_v52 = vpop.eup %2075  ;;  %vm1393_vm8 = vweird.f32 %v2074_v49  ;;  %v1412_v12 = vand.u32 2147483648, %v1277_v44 }
 0x403   : > { %2079 = vrcp.f32 %v1274_v50  ;;  %v2659_v47 = vmul.f32 0.0, %v2076_v52  ;;  %vm1394_vm10 = vmor %vm1392_vm9, %vm1393_vm8  ;;  %v1368_v6 = vand.u32 2147483647, %v1274_v50  ;;  %v1370_v7 = vand.u32 2147483648, %v1274_v50 }
 0x404   : > { %v1389_v53 = vsub.f32 1.0, %v1388_v42  ;;  %vm1406_vm14 = vweird.f32 %v1277_v44  ;;  %v1410_v17 = vand.u32 2147483647, %v1277_v44  ;;  %vm1364_vm15 = vweird.f32 %v1274_v50 }
 0x405   : > { %v1371_v24 = vor.u32 1.1754944e-38, %v1370_v7  ;;  %vm1369_vm3 = vcmp.eq.f32.partialorder %v1368_v6, 8.507059e+37  ;;  %v1413_v30 = vor.u32 1.1754944e-38, %v1412_v12 }
 0x406   : > { %v1390_v54 = vmul.f32 %v2074_v49, %v1389_v53  ;;  %vm1411_vm4 = vcmp.eq.f32.partialorder %v1410_v17, 8.507059e+37 }
 0x407   : > { %v1334_v46 = vpop.f32.mrf.mxu1  ;;  %v1267_v55 = vpop.xlane.xlu1 %1266 }
 0x408   : > { %v2078_v57 = vpop.eup %2077  ;;  %v1391_v58 = vadd.f32 %v2074_v49, %v1390_v54  ;;  %v2662_v27 = vadd.f32 %v1267_v55, %v2659_v47 }
 0x409   : > { %v2080_v61 = vpop.eup %2079  ;;  %v1402_v62 = vmul.f32 %v2078_v57, %v1277_v44  ;;  %vm1407_vm12 = vweird.f32 %v2078_v57 }
 0x40a   : > { %v1360_v63 = vmul.f32 %v2080_v61, %v1274_v50  ;;  %2081 = vrcp.f32 %v2662_v27  ;;  %v1395_v0 = vsel %vm1394_vm10, %v2074_v49, %v1391_v58  ;;  %vm1365_vm13 = vweird.f32 %v2080_v61  ;;  %vm1408_vm1 = vmor %vm1406_vm14, %vm1407_vm12 }
 0x40b   : > { %v1403_v29 = vsub.f32 1.0, %v1402_v62  ;;  %v1400_v10 = vsel %vm1397_vm11, %v1399_v2, %v1395_v0  ;;  %vm1366_vm2 = vmor %vm1364_vm15, %vm1365_vm13  ;;  %v1382_v20 = vand.u32 2147483647, %v2662_v27  ;;  %v1384_v32 = vand.u32 2147483648, %v2662_v27 }
 0x40c   : > { %v1361_v3 = vsub.f32 1.0, %v1360_v63  ;;  %v1351_v4 = vpop.f32.mrf.mxu2  ;;  %v1417_v21 = vmul.f32 %v1400_v10, %v1357_v15  ;;  %vm1378_vm8 = vweird.f32 %v2662_v27  ;;  %vm1542_vm11 = vcmask 130048  }
 0x40d   : > { %v1294_v5 = vpop.f32.mrf.mxu3  ;;  %v1404_v51 = vmul.f32 %v2078_v57, %v1403_v29  ;;  %v1358_v37 = vadd.f32 %v1351_v4, %v2656_v40  ;;  %v1385_v45 = vor.u32 1.1754944e-38, %v1384_v32  ;;  %vm1383_vm10 = vcmp.eq.f32.partialorder %v1382_v20, 8.507059e+37 }
 0x40e   : > { %v1362_v11 = vmul.f32 %v2080_v61, %v1361_v3  ;;  %v1313_v14 = vpop.f32.mrf.mxu0  ;;  %v1355_v26 = vadd.f32 %v1294_v5, %v1254_v43  ;;  %v1419_v36 = vrot.slane %v1417_v21, 4  ;;  %vm1544_vm12 = vcmask 195584  }
 0x40f   : > { %v1405_v16 = vadd.f32 %v2078_v57, %v1404_v51  ;;  %v1356_v50 = vadd.f32 %v1313_v14, %v2659_v47 }
 0x410   : > { %v2082_v18 = vpop.eup %2081  ;;  %v1363_v56 = vadd.f32 %v2080_v61, %v1362_v11 }
 0x411   : > { %v1374_v23 = vmul.f32 %v2082_v18, %v2662_v27  ;;  %v1409_v25 = vsel %vm1408_vm1, %v2078_v57, %v1405_v16  ;;  %vm1379_vm7 = vweird.f32 %v2082_v18 }
 0x412   : > { %v1367_v28 = vsel %vm1366_vm2, %v2080_v61, %v1363_v56  ;;  %v1414_v22 = vsel %vm1411_vm4, %v1413_v30, %v1409_v25  ;;  %vm1380_vm9 = vmor %vm1378_vm8, %vm1379_vm7 }
 0x413   : > { %v1375_v19 = vsub.f32 1.0, %v1374_v23  ;;  %v1372_v8 = vsel %vm1369_vm3, %v1371_v24, %v1367_v28  ;;  %v1418_v43 = vmul.f32 %v1414_v22, %v1358_v37 }
 0x414   : > { %v1415_v31 = vmul.f32 %v1372_v8, %v1355_v26  ;;  %v1353_v34 = vpop.f32.mrf.mxu2 }
 0x415   : > { %v1376_v38 = vmul.f32 %v2082_v18, %v1375_v19  ;;  %v1296_v48 = vpop.f32.mrf.mxu3  ;;  %v1431_v53 = vrot.slane %v1418_v43, 4 }
 0x416   : > { %v1421_v39 = vrot.slane %v1415_v31, 4  ;;  %v1315_v41 = vpop.f32.mrf.mxu0  ;;  %v1420_v35 = vsel %vm766_vm5, %v1419_v36, %v1415_v31 }
 0x417   : > { %v1377_v44 = vadd.f32 %v2082_v18, %v1376_v38  ;;  %v1426_v40 = vperm.slane %v1420_v35, %v2485_v60 }
 0x418   : > { %v1422_v49 = vsel %vm766_vm5, %v1417_v21, %v1421_v39 }
 0x419   : > { %v1381_v42 = vsel %vm1380_vm9, %v2082_v18, %v1377_v44  ;;  %v1430_v46 = vperm.slane %v1422_v49, %v2485_v60  ;;  %v1445_v58 = vrot.slane %v1426_v40, 4 }
 0x41a   : > { %v1386_v52 = vsel %vm1383_vm10, %v1385_v45, %v1381_v42  ;;  %v1968_v42 = vld [vmem:[%s2820_s10 + $0x8] sm:$0xff] }
 0x41b   : > { %v1416_v54 = vmul.f32 %v1386_v52, %v1356_v50  ;;  %v1457_v27 = vrot.slane %v1430_v46, 4  ;;  %1576 = vmatpush.bf16.msra.mxu3 %v1968_v42 }
 0x41d   : > { %v1432_v55 = vsel %vm766_vm5, %v1431_v53, %v1416_v54  ;;  %v1433_v57 = vrot.slane %v1416_v54, 4 }
 0x41e   : > { %v1438_v59 = vperm.slane %v1432_v55, %v2485_v60 }
 0x41f   : > { %v1434_v33 = vsel %vm766_vm5, %v1418_v43, %v1433_v57 }
 0x420   : > { %v1442_v47 = vperm.slane %v1434_v33, %v2485_v60  ;;  %v1443_v61 = vrot.slane %v1438_v59, 4  ;;  %v1446_v62 = vsel %vm766_vm5, %v1438_v59, %v1445_v58  ;;  %v2050_v58 = vld [vmem:[%s2821_s11] ss:$0 sm:$0xff] }
 0x421   : > { %v1454_v63 = vperm.slane %v1446_v62, %v2492_v13 }
 0x422   : > { %v1444_v0 = vsel %vm766_vm5, %v1443_v61, %v1426_v40  ;;  %v1455_v29 = vrot.slane %v1442_v47, 4  ;;  %v1458_v2 = vsel %vm766_vm5, %v1442_v47, %v1457_v27 }
 0x423   : > { %v1450_v3 = vperm.slane %v1444_v0, %v2492_v13  ;;  %v1466_v4 = vperm.slane %v1458_v2, %v2492_v13  ;;  %v1469_v5 = vrot.slane %v1454_v63, 4 }
 0x424   : > { %v1456_v6 = vsel %vm766_vm5, %v1455_v29, %v1430_v46 }
 0x425   : > { %v1462_v7 = vperm.slane %v1456_v6, %v2492_v13  ;;  %v1467_v51 = vrot.slane %v1450_v3, 4  ;;  %v1470_v10 = vsel %vm766_vm5, 0.0, %v1469_v5  ;;  %v1473_v11 = vrot.slane %v1466_v4, 4 }
 0x426   : > { %v1480_v12 = vrot.slane %v1470_v10, 4  ;;  %v1475_v14 = vsel %vm766_vm5, %v1469_v5, %v1450_v3  ;;  %v1970_v3 = vld [vmem:[%s2824_s14 + $0x8] sm:$0xff] }
 0x427   : > { %v1468_v15 = vsel %vm766_vm5, 0.0, %v1467_v51  ;;  %v1471_v16 = vrot.slane %v1462_v7, 4  ;;  %v1474_v17 = vsel %vm766_vm5, 0.0, %v1473_v11  ;;  %v1479_v18 = vperm.slane %v1475_v14, %v2485_v60  ;;  %1646 = vmatpush.bf16.msrb.mxu0 %v1970_v3 }
 0x428   : > { %v1481_v56 = vsel %vm766_vm5, %v1480_v12, %v1468_v15  ;;  %v1486_v21 = vsel %vm766_vm5, %v1473_v11, %v1462_v7  ;;  %v1491_v23 = vrot.slane %v1474_v17, 4  ;;  %v2051_v15 = vld [vmem:[%s2822_s12] ss:$0 sm:$0xff] }
 0x429   : > { %v1472_v24 = vsel %vm766_vm5, 0.0, %v1471_v16  ;;  %v1485_v25 = vperm.slane %v1481_v56, %v2485_v60  ;;  %v1490_v26 = vperm.slane %v1486_v21, %v2485_v60  ;;  %v1499_v28 = vrot.slane %v1479_v18, 4 }
 0x42a   : > { %v1492_v30 = vsel %vm766_vm5, %v1491_v23, %v1472_v24  ;;  %v2053_v23 = vld [vmem:[%s2860_s21] ss:$0 sm:$0xff]  ;;  %v1978_v24 = vld [vmem:[%s2861_s27 + $0x38] sm:$0xff]  ;;  %s2864_s21 = sld [smem:[#allocation23_spill]]  ;;  %s607_s27 = scalar_lea.vmem [#allocation7], %s1869_s26 }
 0x42b   : > { %v1496_v19 = vperm.slane %v1492_v30, %v2485_v60  ;;  %v1500_v8 = vsel %vm766_vm5, %v1485_v25, %v1499_v28  ;;  %v1511_v31 = vrot.slane %v1490_v26, 4  ;;  %v1497_v22 = vrot.slane %v1485_v25, 4  ;;  %1749 = vmatpush.bf16.msra.mxu1 %v1978_v24  ;;  %v1977_v28 = vld [vmem:[%s2862_s19 + $0x30] sm:$0xff]  ;;  %s1779_s16 = sshll.u32 %s607_s27, 4  ;;  %s1780_s16 = int_to_ptr.vmem [resolvable:$true] %s1779_s16 }
 0x42c   : > { %v1508_v20 = vperm.slane %v1500_v8, %v2492_v13  ;;  %v1976_v8 = vld [vmem:[%s2862_s19 + $0x28] sm:$0xff] }
 0x42d   : > { %v1512_v32 = vsel %vm766_vm5, %v1496_v19, %v1511_v31  ;;  %v1498_v34 = vsel %vm766_vm5, %v1497_v22, %v1479_v18  ;;  %v1509_v36 = vrot.slane %v1496_v19, 4  ;;  %v1975_v22 = vld [vmem:[%s2862_s19 + $0x20] sm:$0xff] }
 0x42e   : > { %v1520_v37 = vperm.slane %v1512_v32, %v2492_v13  ;;  %v1527_v38 = vrot.slane %v1508_v20, 4  ;;  %v1504_v48 = vperm.slane %v1498_v34, %v2492_v13 }
 0x42f   : > { %v1510_v39 = vsel %vm766_vm5, %v1509_v36, %v1490_v26  ;;  %1750 = vmatpush.bf16.msra.mxu1 %v1977_v28  ;;  %v1974_v36 = vld [vmem:[%s2862_s19 + $0x18] sm:$0xff] }
 0x430   : > { %v1528_v60 = vsel %vm766_vm5, %v1520_v37, %v1527_v38  ;;  %v1525_v41 = vrot.slane %v1520_v37, 4  ;;  %v1516_v35 = vperm.slane %v1510_v39, %v2492_v13  ;;  %v1523_v43 = vrot.slane %v1504_v48, 4  ;;  %v1967_v13 = vld [vmem:[%s2820_s10] sm:$0xff] }
 0x431   : > { %1538 = vrot.lane.b32.xlu1 %v1528_v60, %s2226_s1  ;;  %1577 = vmatpush.bf16.msra.mxu3 %v1967_v13  ;;  %s1958_s1 = sshll.u32 %s2345_s0, 2  ;;  %s1767_s0 = scalar_lea.sflag [#allocation4], %s2417_s25 }
 0x432   : > { %v1526_v44 = vsel %vm766_vm5, %v1525_v41, %v1508_v20  ;;  %v1521_v45 = vrot.slane %v1516_v35, 4  ;;  %v1524_v49 = vsel %vm766_vm5, %v1516_v35, %v1523_v43  ;;  %v1972_v41 = vld [vmem:[%s2862_s19 + $0x8] sm:$0xff]  ;;  %s1777_s17 = scalar_lea.hbm %s2864_s21, %s1958_s1 }
 0x433   : > { %1534 = vrot.lane.b32.xlu2 %v1526_v44, %s2227_s20  ;;  %1530 = vrot.lane.b32.xlu0 %v1524_v49, %s2228_s24  ;;  %v1971_v44 = vld [vmem:[%s2862_s19] sm:$0xff]  ;;  %s1781_s29 = sshll.u32 %s1777_s17, 4  ;;  %s1782_s29 = int_to_ptr.hbm [resolvable:$true] %s1781_s29 }
 0x434   : > { %v1522_v50 = vsel %vm766_vm5, %v1521_v45, %v1504_v48  ;;  %1751 = vmatpush.bf16.msra.mxu1 %v1976_v8  ;;  %v1973_v48 = vld [vmem:[%s2862_s19 + $0x10] sm:$0xff]  ;;  %s2161_s20 = sshra.s32 %s1782_s29, 4  ;;  %s2162_s20 = int_to_ptr.hbm [resolvable:$true] %s2161_s20 }
 0x435   : > { %s2163_s24 = scalar_lea.hbm %s2162_s20, 4  ;;  %p2168_p9 = scmp.lt.s32.totalorder %s2162_s20, %s2864_s21 }
 0x436   : > { %p2164_p1 = scmp.ne.s32.totalorder %s2162_s20, %s2163_s24 }
 0x438   : > { %1752 = vmatpush.bf16.msra.mxu1 %v1975_v22  ;;  %p2165_p4 = pnand %p2164_p1, %p2390_p3 }
 0x43a   : > { %p2166_p8 = pneg %p2165_p4 }
 0x43c   : > { %1753 = vmatpush.bf16.msra.mxu1 %v1974_v36 }
 0x440   : > { %1754 = vmatpush.bf16.msra.mxu1 %v1973_v48 }
 0x444   : > { %1755 = vmatpush.bf16.msra.mxu1 %v1972_v41 }
 0x448   : > { %1756 = vmatpush.bf16.msra.mxu1 %v1971_v44 }
 0x48d   : > { %v1535_v52 = vpop.permute.xlu2 %1534 }
 0x4a3   : > { %v1539_v54 = vpop.permute.xlu1 %1538 }
 0x4a5   : > { %v1531_v40 = vpop.permute.xlu0 %1530 }
 0x4a6   : > { %v1541_v53 = vsel %vm1129_vm6, %v1522_v50, %v1531_v40 }
 0x4a7   : > { %v1543_v46 = vsel %vm1542_vm11, %v1541_v53, %v1535_v52 }
 0x4a8   : > { %v1545_v55 = vsel %vm1544_vm12, %v1543_v46, %v1539_v54 }
 0x4a9   : > { %v1546_v57 = vpack.c.bf16 %v1545_v55, %v1545_v55 }
 0x4ab   : > { %1915 = vmatmul.msk.bf16.vlgmr.msra.gmra.mxu3 %vm613_vm0, %v1546_v57 }
 0x52e   : > { %v1579_v59 = vpop.f32.mrf.mxu3 }
 0x52f   : > { %v1580_v33 = vadd.f32 %v2050_v58, %v1579_v59 }
 0x531   : > { %v2723_v27 = vadd.f32 %v1580_v33, %v2431_v1  ;;  %v1969_v1 = vld [vmem:[%s2824_s14] sm:$0xff] }
 0x532   : > { %1647 = vmatpush.bf16.msrb.mxu0 %v1969_v1 }
 0x533   : > { %v1586_v47 = vsel %vm613_vm0, %v2723_v27, 0.0 }
 0x534   : > { %1587 = vadd.xlane.f32.xlu0 %v1586_v47 }
 0x536   : > { %v1581_v61 = vpop.f32.mrf.mxu3 }
 0x5a7   : > { %v1588_v62 = vpop.xlane.xlu0 %1587 }
 0x5a8   : > { %v1589_v63 = vmul.f32 %v1588_v62, %v2435_v9  ;;  %v2054_v62 = vld [vmem:[%s2863_s2] ss:$0 sm:$0xff]  ;;  %s2167_s2 = scalar_lea.hbm %s2864_s21, 8 }
 0x5a9   : > { %p2169_p10 = scmp.lt.s32.totalorder %s2167_s2, %s2163_s24 }
 0x5aa   : > { %v1590_v0 = vsub.f32 %v2723_v27, %v1589_v63 }
 0x5ab   : > { %p2170_p2 = por %p2169_p10, %p2168_p9 }
 0x5ac   : > { %v1591_v29 = vmul.f32 %v1590_v0, %v1590_v0 }
 0x5ad   : > { %p2171_p11 = pnand %p2170_p2, %p2166_p8 }
 0x5ae   : > { %v1592_v2 = vsel %vm613_vm0, %v1591_v29, 0.0 }
 0x5af   : > { %1593 = vadd.xlane.f32.xlu2 %v1592_v2 }
 0x622   : > { %v1594_v4 = vpop.xlane.xlu2 %1593 }
 0x623   : > { %v1595_v5 = vmul.f32 %v1594_v4, %v2435_v9  ;;  %v2052_v9 = vld [vmem:[%s2823_s13] ss:$0 sm:$0xff] }
 0x625   : > { %v1596_v6 = vadd.f32 1e-05, %v1595_v5 }
 0x627   : > { %2083 = vrsqrt.f32 %v1596_v6  ;;  %vm1603_vm6 = vweird.f32 %v1596_v6 }
 0x62d   : > { %v2084_v7 = vpop.eup %2083 }
 0x62e   : > { %v1598_v51 = vmul.f32 %v2084_v7, %v1596_v6  ;;  %vm1604_vm5 = vweird.f32 %v2084_v7 }
 0x62f   : > { %vm1605_vm13 = vmor %vm1603_vm6, %vm1604_vm5 }
 0x630   : > { %v1599_v10 = vmul.f32 %v2084_v7, %v1598_v51 }
 0x632   : > { %v1600_v11 = vmul.f32 0.5, %v1599_v10 }
 0x634   : > { %v1601_v12 = vsub.f32 1.5, %v1600_v11 }
 0x636   : > { %v1602_v14 = vmul.f32 %v2084_v7, %v1601_v12 }
 0x638   : > { %v1606_v16 = vsel %vm1605_vm13, %v2084_v7, %v1602_v14 }
 0x639   : > { %v1607_v17 = vmul.f32 %v1606_v16, %v1590_v0 }
 0x63b   : > { %v1611_v18 = vmul.f32 %v2051_v15, %v1607_v17 }
 0x63d   : > { %v1615_v56 = vadd.f32 %v2052_v9, %v1611_v18 }
 0x63f   : > { %v1616_v21 = vpack.c.bf16 %v1615_v56, %v1615_v56 }
 0x641   : > { %1924 = vmatmul.msk.bf16.vlgmr.msrb.gmra.mxu0 %vm613_vm0, %v1616_v21  ;;  %vm1764_vm0 = vcmask 257024  }
 0x6be   : > { %v1649_v25 = vpop.f32.mrf.mxu0 }
 0x6bf   : > { %v1650_v26 = vadd.f32 %v2053_v23, %v1649_v25 }
 0x6c1   : > { %v1653_v30 = vpack.c.bf16 %v1650_v26, %v1650_v26 }
 0x6c3   : > { %v1654_v19 = vunpack.c.l.bf16 %v1653_v30 }
 0x6c5   : > { %v1657_v31 = vmul.f32 %v1654_v19, %v1654_v19  ;;  %v1655_v53 = vmul.f32 0.5, %v1654_v19 }
 0x6c6   : > { %v1651_v20 = vpop.f32.mrf.mxu0 }
 0x6c7   : > { %v1658_v32 = vpack.c.bf16 %v1657_v31, %v1657_v31  ;;  %v1656_v55 = vpack.c.bf16 %v1655_v53, %v1655_v53 }
 0x6c9   : > { %v1659_v34 = vunpack.c.l.bf16 %v1658_v32  ;;  %v1677_v59 = vunpack.c.l.bf16 %v1656_v55 }
 0x6cb   : > { %v1660_v37 = vmul.f32 %v1659_v34, %v1654_v19 }
 0x6cd   : > { %v1661_v38 = vpack.c.bf16 %v1660_v37, %v1660_v37 }
 0x6cf   : > { %v1662_v39 = vunpack.c.l.bf16 %v1661_v38 }
 0x6d1   : > { %v1663_v60 = vmul.f32 0.044677734, %v1662_v39 }
 0x6d3   : > { %v1664_v35 = vpack.c.bf16 %v1663_v60, %v1663_v60 }
 0x6d5   : > { %v1665_v43 = vunpack.c.l.bf16 %v1664_v35 }
 0x6d7   : > { %v1666_v45 = vadd.f32 %v1665_v43, %v1654_v19 }
 0x6d9   : > { %v1667_v49 = vpack.c.bf16 %v1666_v45, %v1666_v45 }
 0x6db   : > { %v1668_v50 = vunpack.c.l.bf16 %v1667_v49 }
 0x6dd   : > { %v1669_v42 = vmul.f32 0.796875, %v1668_v50 }
 0x6df   : > { %v1670_v13 = vpack.c.bf16 %v1669_v42, %v1669_v42 }
 0x6e1   : > { %v1671_v40 = vunpack.c.l.bf16 %v1670_v13 }
 0x6e3   : > { %2085 = vtanh.f32 %v1671_v40 }
 0x6e9   : > { %v2086_v52 = vpop.eup %2085 }
 0x6ea   : > { %v1673_v54 = vpack.c.bf16 %v2086_v52, %v2086_v52 }
 0x6ec   : > { %v1674_v46 = vunpack.c.l.bf16 %v1673_v54 }
 0x6ee   : > { %v1675_v57 = vadd.f32 1.0, %v1674_v46 }
 0x6f0   : > { %v1676_v58 = vpack.c.bf16 %v1675_v57, %v1675_v57 }
 0x6f2   : > { %v1678_v33 = vunpack.c.l.bf16 %v1676_v58 }
 0x6f4   : > { %v1679_v47 = vmul.f32 %v1678_v33, %v1677_v59 }
 0x6f6   : > { %v1680_v61 = vpack.c.bf16 %v1679_v47, %v1679_v47 }
 0x6f8   : > { %1757 = vmatmul.bf16.vlgmr.msra.gmra.mxu1 %v1680_v61 }
 0x775   : > { %v1758_v63 = vpop.f32.mrf.mxu1 }
 0x776   : > { %v1759_v0 = vadd.f32 %v2054_v62, %v1758_v63 }
 0x778   : > { %v1762_v29 = vadd.f32 %v1759_v0, %v2723_v27 }
 0x77a   : > { %v1763_v2 = vpack.c.bf16 %v1762_v29, %v1762_v29 }
 0x77c   : > { %1765 = vst.msk [vmem:[%s607_s27] sm:$0xf] %vm1764_vm0, %v1763_v2 }
 0x77d   : > { %v1760_v3 = vpop.f32.mrf.mxu1 }
 0x77e   : > { %2174 = shalt.err (!%p2171_p11)
}
 0x77f   : > { %1985 = dma.vmem_to_hbm [thread:$0]  (%p2390_p3), %s1780_s16, 64, %s1782_s29, %s1767_s0  }
 0x780 PF: > { %s2866_s25 = sld [smem:[#allocation11_spill]]  ;;  %p2868_p12 = scmp.ge.s32.totalorder %s2217_s30, 2 }
 0x782   : > { %p1996_p13 = pnand %p2868_p12, %p2359_p6 }
 0x784   : > { %p1997_p0 = pneg %p1996_p13 }
 0x786   : > { %s1793_s27 = sand.u32 1, %s2866_s25  }
 0x787   : > { %s1794_s1 = scalar_lea.sflag [#allocation4], %s1793_s27 }
 0x788   : > { %2200 = dma.done.wait (%p1997_p0), %s1794_s1, 64  }
 0x789   : > { %2202 = vsyncadd (%p1997_p0), %s1794_s1, 4294967232  ;;  %s2869_s30 = sld [smem:[#allocation14_spill]]  ;;  %s2872_s27 = smov %s2209_s28 }
 0x78a   : > { %s2870_s20 = sld [smem:[#allocation12_spill]] }
 0x78b   : > { %s2871_s29 = sld [smem:[#allocation15_spill]] }
 0x78f   : > { %p32_p5 = scmp.ge.s32.totalorder %s2869_s30, 4  }
 0x790   : > { %s2873_s28 = smov %s2870_s20 }
 0x791   :  { %34 = sbr.rel (!%p32_p5) target bundleno = 14 (0xe), region = 141 }
 0x796   :  { %1800 = vsyncpa [#allocation3], 1 }
 0x797   :  { %1802 = vsyncpa [#allocation3 + $0x1], 1 }
 0x798   :  { %1803 = vsyncpa [#allocation6], 1 }
 0x799   :  { %1804 = vsyncpa [#allocation4], 1 }
 0x79a   :  { %1806 = vsyncpa [#allocation4 + $0x1], 1 }

</bundles_post_ra>
